<compile_context>
chip_gen: v7x
topology: tpu7x:2x2x1
jax: 0.10.0
libtpu: 0.0.40
codegen_flags: <defaults>
</compile_context>

<pallas_src>
import math

import jax
import jax.numpy as jnp
from jax.experimental import pallas as pl
from jax.experimental.pallas import tpu as pltpu

# ----------------------------------------------------------------------------- config (small stand-in for the full 512/8/2048/6/1024 model)
GRID_SIZE   = 4                              # stand-in for 30 (ARC grid side)
NUM_COLORS  = 10
VOCAB_SIZE  = NUM_COLORS + 3                 # pad / start / end + colors
D_MODEL     = 128                            # lane-dense (multiple of 128)
NUM_HEADS   = 4
D_K         = D_MODEL // NUM_HEADS
D_FF        = 256
NUM_LAYERS  = 2
LATENT_DIM  = 128
MAX_LEN     = 2000
SEQ_LEN     = 1 + 2 * GRID_SIZE * GRID_SIZE  # 1 + 900 + 900 in the full model


# ----------------------------------------------------------------------------- fused encoder kernel
def _encoder_kernel(x_ref,
                    wqkv_ref, bqkv_ref, wo_ref, bo_ref,
                    ln1g_ref, ln1b_ref,
                    w1_ref, b1_ref, w2_ref, b2_ref,
                    ln2g_ref, ln2b_ref,
                    latw1_ref, latb1_ref, latw2_ref, latb2_ref,
                    out_ref):
    """One grid step == one batch element. Everything stays in VMEM / vregs."""
    scale = 1.0 / math.sqrt(D_K)

    def layer_norm(y, g, b):
        mu = jnp.mean(y, axis=-1, keepdims=True)
        var = jnp.mean((y - mu) ** 2, axis=-1, keepdims=True)
        return (y - mu) * jax.lax.rsqrt(var + 1e-5) * g + b

    x = x_ref[0].astype(jnp.float32)                       # (S, D)

    for l in range(NUM_LAYERS):                            # static unroll
        # ---- multi-head self-attention (mask=None path) -------------------
        qkv = jnp.dot(x, wqkv_ref[l],
                      preferred_element_type=jnp.float32) + bqkv_ref[l]   # (S, 3D)
        q = qkv[:, 0 * D_MODEL:1 * D_MODEL]
        k = qkv[:, 1 * D_MODEL:2 * D_MODEL]
        v = qkv[:, 2 * D_MODEL:3 * D_MODEL]

        head_outs = []
        for h in range(NUM_HEADS):                         # static unroll, lane slices
            lo, hi = h * D_K, (h + 1) * D_K
            qh, kh, vh = q[:, lo:hi], k[:, lo:hi], v[:, lo:hi]
            s = jax.lax.dot_general(qh, kh, (((1,), (1,)), ((), ())),
                                    preferred_element_type=jnp.float32) * scale
            s = s - jnp.max(s, axis=-1, keepdims=True)
            p = jnp.exp(s)
            p = p / jnp.sum(p, axis=-1, keepdims=True)
            head_outs.append(jnp.dot(p, vh, preferred_element_type=jnp.float32))
        attn = jnp.concatenate(head_outs, axis=-1)         # (S, D)
        attn = jnp.dot(attn, wo_ref[l],
                       preferred_element_type=jnp.float32) + bo_ref[l]

        x = layer_norm(x + attn, ln1g_ref[l], ln1b_ref[l])

        # ---- feed-forward --------------------------------------------------
        hid = jnp.maximum(
            jnp.dot(x, w1_ref[l], preferred_element_type=jnp.float32) + b1_ref[l],
            0.0)
        ff = jnp.dot(hid, w2_ref[l], preferred_element_type=jnp.float32) + b2_ref[l]
        x = layer_norm(x + ff, ln2g_ref[l], ln2b_ref[l])

    # ---- AdaptiveAvgPool1d(1) over sequence + latent projection ------------
    pooled = jnp.mean(x, axis=0, keepdims=True)            # (1, D)
    hlat = jnp.maximum(
        jnp.dot(pooled, latw1_ref[...], preferred_element_type=jnp.float32)
        + latb1_ref[...], 0.0)                             # (1, 2D)
    latent = (jnp.dot(hlat, latw2_ref[...], preferred_element_type=jnp.float32)
              + latb2_ref[...])                            # (1, LATENT_DIM)
    out_ref[0] = latent.astype(out_ref.dtype)


# ----------------------------------------------------------------------------- wrapper
def autoencoder_encoder_forward(params, tokens, pe):
    """tokens: (B, S) int32 -> latent (B, LATENT_DIM) float32."""
    # TODO(synk): optional `mask` argument not supported (forward default is None).
    B, S = tokens.shape
    # embedding gather + positional encoding kept in JAX glue (data-dependent gather)
    x = params["emb"][tokens] * math.sqrt(D_MODEL) + pe[:S][None, :, :]
    x = x.astype(jnp.float32)

    def full_spec(shape):
        return pl.BlockSpec(shape, lambda b, _s=shape: (0,) * len(_s))

    in_specs = [
        pl.BlockSpec((1, S, D_MODEL), lambda b: (b, 0, 0)),          # activations
        full_spec((NUM_LAYERS, D_MODEL, 3 * D_MODEL)),               # wqkv
        full_spec((NUM_LAYERS, 1, 3 * D_MODEL)),                     # bqkv
        full_spec((NUM_LAYERS, D_MODEL, D_MODEL)),                   # wo
        full_spec((NUM_LAYERS, 1, D_MODEL)),                         # bo
        full_spec((NUM_LAYERS, 1, D_MODEL)),                         # ln1 gamma
        full_spec((NUM_LAYERS, 1, D_MODEL)),                         # ln1 beta
        full_spec((NUM_LAYERS, D_MODEL, D_FF)),                      # w1
        full_spec((NUM_LAYERS, 1, D_FF)),                            # b1
        full_spec((NUM_LAYERS, D_FF, D_MODEL)),                      # w2
        full_spec((NUM_LAYERS, 1, D_MODEL)),                         # b2
        full_spec((NUM_LAYERS, 1, D_MODEL)),                         # ln2 gamma
        full_spec((NUM_LAYERS, 1, D_MODEL)),                         # ln2 beta
        full_spec((D_MODEL, 2 * D_MODEL)),                           # lat_w1
        full_spec((1, 2 * D_MODEL)),                                 # lat_b1
        full_spec((2 * D_MODEL, LATENT_DIM)),                        # lat_w2
        full_spec((1, LATENT_DIM)),                                  # lat_b2
    ]

    out = pl.pallas_call(
        _encoder_kernel,
        out_shape=jax.ShapeDtypeStruct((B, 1, LATENT_DIM), jnp.float32),
        grid=(B,),
        in_specs=in_specs,
        out_specs=pl.BlockSpec((1, 1, LATENT_DIM), lambda b: (b, 0, 0)),
        compiler_params=pltpu.CompilerParams(
            dimension_semantics=("parallel",)),
    )(x,
      params["wqkv"], params["bqkv"], params["wo"], params["bo"],
      params["ln1_g"], params["ln1_b"],
      params["w1"], params["b1"], params["w2"], params["b2"],
      params["ln2_g"], params["ln2_b"],
      params["lat_w1"], params["lat_b1"], params["lat_w2"], params["lat_b2"])
    return out.reshape(B, LATENT_DIM)


# ----------------------------------------------------------------------------- parameters / positional encoding
def sinusoidal_pe(max_len, d_model):
    pos = jnp.arange(max_len, dtype=jnp.float32)[:, None]
    div = jnp.exp(jnp.arange(0, d_model, 2, dtype=jnp.float32)
                  * (-math.log(10000.0) / d_model))
    pe = jnp.zeros((max_len, d_model), jnp.float32)
    pe = pe.at[:, 0::2].set(jnp.sin(pos * div))
    pe = pe.at[:, 1::2].set(jnp.cos(pos * div))
    return pe


def init_params(key):
    keys = iter(jax.random.split(key, 64))
    nk = lambda: next(keys)

    def xavier(shape, fan_in, fan_out):
        bound = math.sqrt(6.0 / (fan_in + fan_out))
        return jax.random.uniform(nk(), shape, jnp.float32, -bound, bound)

    # per-projection xavier (fan = D_MODEL, D_MODEL) then concatenated into one matmul
    wq = xavier((NUM_LAYERS, D_MODEL, D_MODEL), D_MODEL, D_MODEL)
    wk = xavier((NUM_LAYERS, D_MODEL, D_MODEL), D_MODEL, D_MODEL)
    wv = xavier((NUM_LAYERS, D_MODEL, D_MODEL), D_MODEL, D_MODEL)

    params = {
        "emb": 0.02 * jax.random.normal(nk(), (VOCAB_SIZE, D_MODEL), jnp.float32),
        "wqkv": jnp.concatenate([wq, wk, wv], axis=-1),              # (L, D, 3D)
        "bqkv": jnp.zeros((NUM_LAYERS, 1, 3 * D_MODEL), jnp.float32),
        "wo": xavier((NUM_LAYERS, D_MODEL, D_MODEL), D_MODEL, D_MODEL),
        "bo": jnp.zeros((NUM_LAYERS, 1, D_MODEL), jnp.float32),
        "ln1_g": jnp.ones((NUM_LAYERS, 1, D_MODEL), jnp.float32),
        "ln1_b": jnp.zeros((NUM_LAYERS, 1, D_MODEL), jnp.float32),
        "w1": xavier((NUM_LAYERS, D_MODEL, D_FF), D_MODEL, D_FF),
        "b1": jnp.zeros((NUM_LAYERS, 1, D_FF), jnp.float32),
        "w2": xavier((NUM_LAYERS, D_FF, D_MODEL), D_FF, D_MODEL),
        "b2": jnp.zeros((NUM_LAYERS, 1, D_MODEL), jnp.float32),
        "ln2_g": jnp.ones((NUM_LAYERS, 1, D_MODEL), jnp.float32),
        "ln2_b": jnp.zeros((NUM_LAYERS, 1, D_MODEL), jnp.float32),
        "lat_w1": xavier((D_MODEL, 2 * D_MODEL), D_MODEL, 2 * D_MODEL),
        "lat_b1": jnp.zeros((1, 2 * D_MODEL), jnp.float32),
        "lat_w2": xavier((2 * D_MODEL, LATENT_DIM), 2 * D_MODEL, LATENT_DIM),
        "lat_b2": jnp.zeros((1, LATENT_DIM), jnp.float32),
    }
    return params


# ----------------------------------------------------------------------------- main
if __name__ == "__main__":
    key = jax.random.PRNGKey(0)
    k_param, k_tok = jax.random.split(key)

    params = init_params(k_param)
    pe = sinusoidal_pe(MAX_LEN, D_MODEL)

    B = 2
    tokens = jax.random.randint(k_tok, (B, SEQ_LEN), 0, VOCAB_SIZE, dtype=jnp.int32)

    fwd = jax.jit(lambda t: autoencoder_encoder_forward(params, t, pe))
    latent = fwd(tokens)
    jax.block_until_ready(latent)

    assert latent.shape == (B, LATENT_DIM)
    assert bool(jnp.all(jnp.isfinite(latent)))
    # TODO(synk): dropout layers are identity (eval-mode forward); training-mode dropout omitted.
    print("KERNEL_OK")
</pallas_src>

<mosaic_0001>
module attributes {stable_mosaic.version = 11 : i64} {
  func.func @_encoder_kernel(%arg0: i32, %arg1: memref<1x33x128xf32, #tpu.memory_space<vmem>>, %arg2: memref<2x128x384xf32, #tpu.memory_space<vmem>>, %arg3: memref<2x1x384xf32, #tpu.memory_space<vmem>>, %arg4: memref<2x128x128xf32, #tpu.memory_space<vmem>>, %arg5: memref<2x1x128xf32, #tpu.memory_space<vmem>>, %arg6: memref<2x1x128xf32, #tpu.memory_space<vmem>>, %arg7: memref<2x1x128xf32, #tpu.memory_space<vmem>>, %arg8: memref<2x128x256xf32, #tpu.memory_space<vmem>>, %arg9: memref<2x1x256xf32, #tpu.memory_space<vmem>>, %arg10: memref<2x256x128xf32, #tpu.memory_space<vmem>>, %arg11: memref<2x1x128xf32, #tpu.memory_space<vmem>>, %arg12: memref<2x1x128xf32, #tpu.memory_space<vmem>>, %arg13: memref<2x1x128xf32, #tpu.memory_space<vmem>>, %arg14: memref<128x256xf32, #tpu.memory_space<vmem>>, %arg15: memref<1x256xf32, #tpu.memory_space<vmem>>, %arg16: memref<256x128xf32, #tpu.memory_space<vmem>>, %arg17: memref<1x128xf32, #tpu.memory_space<vmem>>, %arg18: memref<1x1x128xf32, #tpu.memory_space<vmem>>) attributes {dimension_semantics = [#tpu.dimension_semantics<parallel>], iteration_bounds = array<i64: 2>, scalar_prefetch = 0 : i64, scratch_operands = 0 : i64, tpu.core_type = #tpu.core_type<tc>, window_params = [{transform_indices = @transform_0, window_bounds = array<i64: 1, 33, 128>}, {pipeline_mode = #tpu.pipeline_mode<synchronous>, transform_indices = @transform_1, window_bounds = array<i64: 2, 128, 384>}, {pipeline_mode = #tpu.pipeline_mode<synchronous>, transform_indices = @transform_2, window_bounds = array<i64: 2, 1, 384>}, {pipeline_mode = #tpu.pipeline_mode<synchronous>, transform_indices = @transform_3, window_bounds = array<i64: 2, 128, 128>}, {pipeline_mode = #tpu.pipeline_mode<synchronous>, transform_indices = @transform_4, window_bounds = array<i64: 2, 1, 128>}, {pipeline_mode = #tpu.pipeline_mode<synchronous>, transform_indices = @transform_5, window_bounds = array<i64: 2, 1, 128>}, {pipeline_mode = #tpu.pipeline_mode<synchronous>, transform_indices = @transform_6, window_bounds = array<i64: 2, 1, 128>}, {pipeline_mode = #tpu.pipeline_mode<synchronous>, transform_indices = @transform_7, window_bounds = array<i64: 2, 128, 256>}, {pipeline_mode = #tpu.pipeline_mode<synchronous>, transform_indices = @transform_8, window_bounds = array<i64: 2, 1, 256>}, {pipeline_mode = #tpu.pipeline_mode<synchronous>, transform_indices = @transform_9, window_bounds = array<i64: 2, 256, 128>}, {pipeline_mode = #tpu.pipeline_mode<synchronous>, transform_indices = @transform_10, window_bounds = array<i64: 2, 1, 128>}, {pipeline_mode = #tpu.pipeline_mode<synchronous>, transform_indices = @transform_11, window_bounds = array<i64: 2, 1, 128>}, {pipeline_mode = #tpu.pipeline_mode<synchronous>, transform_indices = @transform_12, window_bounds = array<i64: 2, 1, 128>}, {pipeline_mode = #tpu.pipeline_mode<synchronous>, transform_indices = @transform_13, window_bounds = array<i64: 128, 256>}, {pipeline_mode = #tpu.pipeline_mode<synchronous>, transform_indices = @transform_14, window_bounds = array<i64: 1, 256>}, {pipeline_mode = #tpu.pipeline_mode<synchronous>, transform_indices = @transform_15, window_bounds = array<i64: 256, 128>}, {pipeline_mode = #tpu.pipeline_mode<synchronous>, transform_indices = @transform_16, window_bounds = array<i64: 1, 128>}, {transform_indices = @transform_17, window_bounds = array<i64: 1, 1, 128>}]} {
    %c0 = arith.constant 0 : index
    %c0_0 = arith.constant 0 : index
    %c0_1 = arith.constant 0 : index
    %0 = vector.load %arg1[%c0, %c0_0, %c0_1] : memref<1x33x128xf32, #tpu.memory_space<vmem>>, vector<1x33x128xf32>
    %1 = vector.shape_cast %0 : vector<1x33x128xf32> to vector<33x128xf32>
    %c0_2 = arith.constant 0 : index
    %c0_3 = arith.constant 0 : index
    %c0_4 = arith.constant 0 : index
    %2 = vector.load %arg2[%c0_2, %c0_3, %c0_4] : memref<2x128x384xf32, #tpu.memory_space<vmem>>, vector<1x128x384xf32>
    %3 = vector.shape_cast %2 : vector<1x128x384xf32> to vector<128x384xf32>
    %cst = arith.constant dense<0.000000e+00> : vector<33x384xf32>
    %4 = tpu.matmul %1, %3, %cst {dimension_numbers = #tpu.dot_dimension_numbers<[1], [0], [0], [1], [0, 0, 1, 1], [], []>} : vector<33x128xf32>, vector<128x384xf32>, vector<33x384xf32> -> vector<33x384xf32>
    %c0_5 = arith.constant 0 : index
    %c0_6 = arith.constant 0 : index
    %c0_7 = arith.constant 0 : index
    %5 = vector.load %arg3[%c0_5, %c0_6, %c0_7] : memref<2x1x384xf32, #tpu.memory_space<vmem>>, vector<1x1x384xf32>
    %6 = vector.shape_cast %5 : vector<1x1x384xf32> to vector<1x384xf32>
    %7 = vector.broadcast %6 : vector<1x384xf32> to vector<33x384xf32>
    %8 = arith.addf %4, %7 : vector<33x384xf32>
    %9 = vector.extract_strided_slice %8 {offsets = [0, 0], sizes = [33, 128], strides = [1, 1]} : vector<33x384xf32> to vector<33x128xf32>
    %10 = vector.extract_strided_slice %8 {offsets = [0, 128], sizes = [33, 128], strides = [1, 1]} : vector<33x384xf32> to vector<33x128xf32>
    %11 = vector.extract_strided_slice %8 {offsets = [0, 256], sizes = [33, 128], strides = [1, 1]} : vector<33x384xf32> to vector<33x128xf32>
    %12 = vector.extract_strided_slice %9 {offsets = [0, 0], sizes = [33, 32], strides = [1, 1]} : vector<33x128xf32> to vector<33x32xf32>
    %13 = vector.extract_strided_slice %10 {offsets = [0, 0], sizes = [33, 32], strides = [1, 1]} : vector<33x128xf32> to vector<33x32xf32>
    %14 = vector.extract_strided_slice %11 {offsets = [0, 0], sizes = [33, 32], strides = [1, 1]} : vector<33x128xf32> to vector<33x32xf32>
    %cst_8 = arith.constant dense<0.000000e+00> : vector<33x33xf32>
    %15 = tpu.matmul %12, %13, %cst_8 {dimension_numbers = #tpu.dot_dimension_numbers<[1], [1], [0], [0], [0, 0, 1, 0], [], []>} : vector<33x32xf32>, vector<33x32xf32>, vector<33x33xf32> -> vector<33x33xf32>
    %cst_9 = arith.constant 0.176776692 : f32
    %16 = vector.broadcast %cst_9 : f32 to vector<33x33xf32>
    %17 = arith.mulf %15, %16 : vector<33x33xf32>
    %cst_10 = arith.constant dense<0xFF800000> : vector<33xf32>
    %18 = vector.multi_reduction <maximumf>, %17, %cst_10 [1] : vector<33x33xf32> to vector<33xf32>
    %19 = vector.shape_cast %18 : vector<33xf32> to vector<33x1xf32>
    %20 = vector.broadcast %19 : vector<33x1xf32> to vector<33x33xf32>
    %21 = arith.subf %17, %20 : vector<33x33xf32>
    %22 = math.exp %21 : vector<33x33xf32>
    %cst_11 = arith.constant dense<0.000000e+00> : vector<33xf32>
    %23 = vector.multi_reduction <add>, %22, %cst_11 [1] : vector<33x33xf32> to vector<33xf32>
    %24 = vector.shape_cast %23 : vector<33xf32> to vector<33x1xf32>
    %25 = vector.broadcast %24 : vector<33x1xf32> to vector<33x33xf32>
    %26 = arith.divf %22, %25 : vector<33x33xf32>
    %cst_12 = arith.constant dense<0.000000e+00> : vector<33x32xf32>
    %27 = tpu.matmul %26, %14, %cst_12 {dimension_numbers = #tpu.dot_dimension_numbers<[1], [0], [0], [1], [0, 0, 1, 1], [], []>} : vector<33x33xf32>, vector<33x32xf32>, vector<33x32xf32> -> vector<33x32xf32>
    %28 = vector.extract_strided_slice %9 {offsets = [0, 32], sizes = [33, 32], strides = [1, 1]} : vector<33x128xf32> to vector<33x32xf32>
    %29 = vector.extract_strided_slice %10 {offsets = [0, 32], sizes = [33, 32], strides = [1, 1]} : vector<33x128xf32> to vector<33x32xf32>
    %30 = vector.extract_strided_slice %11 {offsets = [0, 32], sizes = [33, 32], strides = [1, 1]} : vector<33x128xf32> to vector<33x32xf32>
    %cst_13 = arith.constant dense<0.000000e+00> : vector<33x33xf32>
    %31 = tpu.matmul %28, %29, %cst_13 {dimension_numbers = #tpu.dot_dimension_numbers<[1], [1], [0], [0], [0, 0, 1, 0], [], []>} : vector<33x32xf32>, vector<33x32xf32>, vector<33x33xf32> -> vector<33x33xf32>
    %cst_14 = arith.constant 0.176776692 : f32
    %32 = vector.broadcast %cst_14 : f32 to vector<33x33xf32>
    %33 = arith.mulf %31, %32 : vector<33x33xf32>
    %cst_15 = arith.constant dense<0xFF800000> : vector<33xf32>
    %34 = vector.multi_reduction <maximumf>, %33, %cst_15 [1] : vector<33x33xf32> to vector<33xf32>
    %35 = vector.shape_cast %34 : vector<33xf32> to vector<33x1xf32>
    %36 = vector.broadcast %35 : vector<33x1xf32> to vector<33x33xf32>
    %37 = arith.subf %33, %36 : vector<33x33xf32>
    %38 = math.exp %37 : vector<33x33xf32>
    %cst_16 = arith.constant dense<0.000000e+00> : vector<33xf32>
    %39 = vector.multi_reduction <add>, %38, %cst_16 [1] : vector<33x33xf32> to vector<33xf32>
    %40 = vector.shape_cast %39 : vector<33xf32> to vector<33x1xf32>
    %41 = vector.broadcast %40 : vector<33x1xf32> to vector<33x33xf32>
    %42 = arith.divf %38, %41 : vector<33x33xf32>
    %cst_17 = arith.constant dense<0.000000e+00> : vector<33x32xf32>
    %43 = tpu.matmul %42, %30, %cst_17 {dimension_numbers = #tpu.dot_dimension_numbers<[1], [0], [0], [1], [0, 0, 1, 1], [], []>} : vector<33x33xf32>, vector<33x32xf32>, vector<33x32xf32> -> vector<33x32xf32>
    %44 = vector.extract_strided_slice %9 {offsets = [0, 64], sizes = [33, 32], strides = [1, 1]} : vector<33x128xf32> to vector<33x32xf32>
    %45 = vector.extract_strided_slice %10 {offsets = [0, 64], sizes = [33, 32], strides = [1, 1]} : vector<33x128xf32> to vector<33x32xf32>
    %46 = vector.extract_strided_slice %11 {offsets = [0, 64], sizes = [33, 32], strides = [1, 1]} : vector<33x128xf32> to vector<33x32xf32>
    %cst_18 = arith.constant dense<0.000000e+00> : vector<33x33xf32>
    %47 = tpu.matmul %44, %45, %cst_18 {dimension_numbers = #tpu.dot_dimension_numbers<[1], [1], [0], [0], [0, 0, 1, 0], [], []>} : vector<33x32xf32>, vector<33x32xf32>, vector<33x33xf32> -> vector<33x33xf32>
    %cst_19 = arith.constant 0.176776692 : f32
    %48 = vector.broadcast %cst_19 : f32 to vector<33x33xf32>
    %49 = arith.mulf %47, %48 : vector<33x33xf32>
    %cst_20 = arith.constant dense<0xFF800000> : vector<33xf32>
    %50 = vector.multi_reduction <maximumf>, %49, %cst_20 [1] : vector<33x33xf32> to vector<33xf32>
    %51 = vector.shape_cast %50 : vector<33xf32> to vector<33x1xf32>
    %52 = vector.broadcast %51 : vector<33x1xf32> to vector<33x33xf32>
    %53 = arith.subf %49, %52 : vector<33x33xf32>
    %54 = math.exp %53 : vector<33x33xf32>
    %cst_21 = arith.constant dense<0.000000e+00> : vector<33xf32>
    %55 = vector.multi_reduction <add>, %54, %cst_21 [1] : vector<33x33xf32> to vector<33xf32>
    %56 = vector.shape_cast %55 : vector<33xf32> to vector<33x1xf32>
    %57 = vector.broadcast %56 : vector<33x1xf32> to vector<33x33xf32>
    %58 = arith.divf %54, %57 : vector<33x33xf32>
    %cst_22 = arith.constant dense<0.000000e+00> : vector<33x32xf32>
    %59 = tpu.matmul %58, %46, %cst_22 {dimension_numbers = #tpu.dot_dimension_numbers<[1], [0], [0], [1], [0, 0, 1, 1], [], []>} : vector<33x33xf32>, vector<33x32xf32>, vector<33x32xf32> -> vector<33x32xf32>
    %60 = vector.extract_strided_slice %9 {offsets = [0, 96], sizes = [33, 32], strides = [1, 1]} : vector<33x128xf32> to vector<33x32xf32>
    %61 = vector.extract_strided_slice %10 {offsets = [0, 96], sizes = [33, 32], strides = [1, 1]} : vector<33x128xf32> to vector<33x32xf32>
    %62 = vector.extract_strided_slice %11 {offsets = [0, 96], sizes = [33, 32], strides = [1, 1]} : vector<33x128xf32> to vector<33x32xf32>
    %cst_23 = arith.constant dense<0.000000e+00> : vector<33x33xf32>
    %63 = tpu.matmul %60, %61, %cst_23 {dimension_numbers = #tpu.dot_dimension_numbers<[1], [1], [0], [0], [0, 0, 1, 0], [], []>} : vector<33x32xf32>, vector<33x32xf32>, vector<33x33xf32> -> vector<33x33xf32>
    %cst_24 = arith.constant 0.176776692 : f32
    %64 = vector.broadcast %cst_24 : f32 to vector<33x33xf32>
    %65 = arith.mulf %63, %64 : vector<33x33xf32>
    %cst_25 = arith.constant dense<0xFF800000> : vector<33xf32>
    %66 = vector.multi_reduction <maximumf>, %65, %cst_25 [1] : vector<33x33xf32> to vector<33xf32>
    %67 = vector.shape_cast %66 : vector<33xf32> to vector<33x1xf32>
    %68 = vector.broadcast %67 : vector<33x1xf32> to vector<33x33xf32>
    %69 = arith.subf %65, %68 : vector<33x33xf32>
    %70 = math.exp %69 : vector<33x33xf32>
    %cst_26 = arith.constant dense<0.000000e+00> : vector<33xf32>
    %71 = vector.multi_reduction <add>, %70, %cst_26 [1] : vector<33x33xf32> to vector<33xf32>
    %72 = vector.shape_cast %71 : vector<33xf32> to vector<33x1xf32>
    %73 = vector.broadcast %72 : vector<33x1xf32> to vector<33x33xf32>
    %74 = arith.divf %70, %73 : vector<33x33xf32>
    %cst_27 = arith.constant dense<0.000000e+00> : vector<33x32xf32>
    %75 = tpu.matmul %74, %62, %cst_27 {dimension_numbers = #tpu.dot_dimension_numbers<[1], [0], [0], [1], [0, 0, 1, 1], [], []>} : vector<33x33xf32>, vector<33x32xf32>, vector<33x32xf32> -> vector<33x32xf32>
    %76 = tpu.concatenate %27, %43, %59, %75 in 1 : vector<33x32xf32>, vector<33x32xf32>, vector<33x32xf32>, vector<33x32xf32> -> vector<33x128xf32>
    %c0_28 = arith.constant 0 : index
    %c0_29 = arith.constant 0 : index
    %c0_30 = arith.constant 0 : index
    %77 = vector.load %arg4[%c0_28, %c0_29, %c0_30] : memref<2x128x128xf32, #tpu.memory_space<vmem>>, vector<1x128x128xf32>
    %78 = vector.shape_cast %77 : vector<1x128x128xf32> to vector<128x128xf32>
    %cst_31 = arith.constant dense<0.000000e+00> : vector<33x128xf32>
    %79 = tpu.matmul %76, %78, %cst_31 {dimension_numbers = #tpu.dot_dimension_numbers<[1], [0], [0], [1], [0, 0, 1, 1], [], []>} : vector<33x128xf32>, vector<128x128xf32>, vector<33x128xf32> -> vector<33x128xf32>
    %c0_32 = arith.constant 0 : index
    %c0_33 = arith.constant 0 : index
    %c0_34 = arith.constant 0 : index
    %80 = vector.load %arg5[%c0_32, %c0_33, %c0_34] : memref<2x1x128xf32, #tpu.memory_space<vmem>>, vector<1x1x128xf32>
    %81 = vector.shape_cast %80 : vector<1x1x128xf32> to vector<1x128xf32>
    %82 = vector.broadcast %81 : vector<1x128xf32> to vector<33x128xf32>
    %83 = arith.addf %79, %82 : vector<33x128xf32>
    %84 = arith.addf %1, %83 : vector<33x128xf32>
    %c0_35 = arith.constant 0 : index
    %c0_36 = arith.constant 0 : index
    %c0_37 = arith.constant 0 : index
    %85 = vector.load %arg6[%c0_35, %c0_36, %c0_37] : memref<2x1x128xf32, #tpu.memory_space<vmem>>, vector<1x1x128xf32>
    %86 = vector.shape_cast %85 : vector<1x1x128xf32> to vector<1x128xf32>
    %c0_38 = arith.constant 0 : index
    %c0_39 = arith.constant 0 : index
    %c0_40 = arith.constant 0 : index
    %87 = vector.load %arg7[%c0_38, %c0_39, %c0_40] : memref<2x1x128xf32, #tpu.memory_space<vmem>>, vector<1x1x128xf32>
    %88 = vector.shape_cast %87 : vector<1x1x128xf32> to vector<1x128xf32>
    %cst_41 = arith.constant dense<0.000000e+00> : vector<33xf32>
    %89 = vector.multi_reduction <add>, %84, %cst_41 [1] : vector<33x128xf32> to vector<33xf32>
    %90 = vector.shape_cast %89 : vector<33xf32> to vector<33x1xf32>
    %cst_42 = arith.constant 1.280000e+02 : f32
    %91 = vector.broadcast %cst_42 : f32 to vector<33x1xf32>
    %92 = arith.divf %90, %91 : vector<33x1xf32>
    %93 = vector.broadcast %92 : vector<33x1xf32> to vector<33x128xf32>
    %94 = arith.subf %84, %93 : vector<33x128xf32>
    %95 = arith.mulf %94, %94 : vector<33x128xf32>
    %cst_43 = arith.constant dense<0.000000e+00> : vector<33xf32>
    %96 = vector.multi_reduction <add>, %95, %cst_43 [1] : vector<33x128xf32> to vector<33xf32>
    %97 = vector.shape_cast %96 : vector<33xf32> to vector<33x1xf32>
    %cst_44 = arith.constant 1.280000e+02 : f32
    %98 = vector.broadcast %cst_44 : f32 to vector<33x1xf32>
    %99 = arith.divf %97, %98 : vector<33x1xf32>
    %100 = vector.broadcast %92 : vector<33x1xf32> to vector<33x128xf32>
    %101 = arith.subf %84, %100 : vector<33x128xf32>
    %cst_45 = arith.constant 9.99999974E-6 : f32
    %102 = vector.broadcast %cst_45 : f32 to vector<33x1xf32>
    %103 = arith.addf %99, %102 : vector<33x1xf32>
    %104 = math.rsqrt %103 : vector<33x1xf32>
    %105 = vector.broadcast %104 : vector<33x1xf32> to vector<33x128xf32>
    %106 = arith.mulf %101, %105 : vector<33x128xf32>
    %107 = vector.broadcast %86 : vector<1x128xf32> to vector<33x128xf32>
    %108 = arith.mulf %106, %107 : vector<33x128xf32>
    %109 = vector.broadcast %88 : vector<1x128xf32> to vector<33x128xf32>
    %110 = arith.addf %108, %109 : vector<33x128xf32>
    %c0_46 = arith.constant 0 : index
    %c0_47 = arith.constant 0 : index
    %c0_48 = arith.constant 0 : index
    %111 = vector.load %arg8[%c0_46, %c0_47, %c0_48] : memref<2x128x256xf32, #tpu.memory_space<vmem>>, vector<1x128x256xf32>
    %112 = vector.shape_cast %111 : vector<1x128x256xf32> to vector<128x256xf32>
    %cst_49 = arith.constant dense<0.000000e+00> : vector<33x256xf32>
    %113 = tpu.matmul %110, %112, %cst_49 {dimension_numbers = #tpu.dot_dimension_numbers<[1], [0], [0], [1], [0, 0, 1, 1], [], []>} : vector<33x128xf32>, vector<128x256xf32>, vector<33x256xf32> -> vector<33x256xf32>
    %c0_50 = arith.constant 0 : index
    %c0_51 = arith.constant 0 : index
    %c0_52 = arith.constant 0 : index
    %114 = vector.load %arg9[%c0_50, %c0_51, %c0_52] : memref<2x1x256xf32, #tpu.memory_space<vmem>>, vector<1x1x256xf32>
    %115 = vector.shape_cast %114 : vector<1x1x256xf32> to vector<1x256xf32>
    %116 = vector.broadcast %115 : vector<1x256xf32> to vector<33x256xf32>
    %117 = arith.addf %113, %116 : vector<33x256xf32>
    %cst_53 = arith.constant 0.000000e+00 : f32
    %118 = vector.broadcast %cst_53 : f32 to vector<33x256xf32>
    %119 = arith.maximumf %117, %118 : vector<33x256xf32>
    %c0_54 = arith.constant 0 : index
    %c0_55 = arith.constant 0 : index
    %c0_56 = arith.constant 0 : index
    %120 = vector.load %arg10[%c0_54, %c0_55, %c0_56] : memref<2x256x128xf32, #tpu.memory_space<vmem>>, vector<1x256x128xf32>
    %121 = vector.shape_cast %120 : vector<1x256x128xf32> to vector<256x128xf32>
    %cst_57 = arith.constant dense<0.000000e+00> : vector<33x128xf32>
    %122 = tpu.matmul %119, %121, %cst_57 {dimension_numbers = #tpu.dot_dimension_numbers<[1], [0], [0], [1], [0, 0, 1, 1], [], []>} : vector<33x256xf32>, vector<256x128xf32>, vector<33x128xf32> -> vector<33x128xf32>
    %c0_58 = arith.constant 0 : index
    %c0_59 = arith.constant 0 : index
    %c0_60 = arith.constant 0 : index
    %123 = vector.load %arg11[%c0_58, %c0_59, %c0_60] : memref<2x1x128xf32, #tpu.memory_space<vmem>>, vector<1x1x128xf32>
    %124 = vector.shape_cast %123 : vector<1x1x128xf32> to vector<1x128xf32>
    %125 = vector.broadcast %124 : vector<1x128xf32> to vector<33x128xf32>
    %126 = arith.addf %122, %125 : vector<33x128xf32>
    %127 = arith.addf %110, %126 : vector<33x128xf32>
    %c0_61 = arith.constant 0 : index
    %c0_62 = arith.constant 0 : index
    %c0_63 = arith.constant 0 : index
    %128 = vector.load %arg12[%c0_61, %c0_62, %c0_63] : memref<2x1x128xf32, #tpu.memory_space<vmem>>, vector<1x1x128xf32>
    %129 = vector.shape_cast %128 : vector<1x1x128xf32> to vector<1x128xf32>
    %c0_64 = arith.constant 0 : index
    %c0_65 = arith.constant 0 : index
    %c0_66 = arith.constant 0 : index
    %130 = vector.load %arg13[%c0_64, %c0_65, %c0_66] : memref<2x1x128xf32, #tpu.memory_space<vmem>>, vector<1x1x128xf32>
    %131 = vector.shape_cast %130 : vector<1x1x128xf32> to vector<1x128xf32>
    %cst_67 = arith.constant dense<0.000000e+00> : vector<33xf32>
    %132 = vector.multi_reduction <add>, %127, %cst_67 [1] : vector<33x128xf32> to vector<33xf32>
    %133 = vector.shape_cast %132 : vector<33xf32> to vector<33x1xf32>
    %cst_68 = arith.constant 1.280000e+02 : f32
    %134 = vector.broadcast %cst_68 : f32 to vector<33x1xf32>
    %135 = arith.divf %133, %134 : vector<33x1xf32>
    %136 = vector.broadcast %135 : vector<33x1xf32> to vector<33x128xf32>
    %137 = arith.subf %127, %136 : vector<33x128xf32>
    %138 = arith.mulf %137, %137 : vector<33x128xf32>
    %cst_69 = arith.constant dense<0.000000e+00> : vector<33xf32>
    %139 = vector.multi_reduction <add>, %138, %cst_69 [1] : vector<33x128xf32> to vector<33xf32>
    %140 = vector.shape_cast %139 : vector<33xf32> to vector<33x1xf32>
    %cst_70 = arith.constant 1.280000e+02 : f32
    %141 = vector.broadcast %cst_70 : f32 to vector<33x1xf32>
    %142 = arith.divf %140, %141 : vector<33x1xf32>
    %143 = vector.broadcast %135 : vector<33x1xf32> to vector<33x128xf32>
    %144 = arith.subf %127, %143 : vector<33x128xf32>
    %cst_71 = arith.constant 9.99999974E-6 : f32
    %145 = vector.broadcast %cst_71 : f32 to vector<33x1xf32>
    %146 = arith.addf %142, %145 : vector<33x1xf32>
    %147 = math.rsqrt %146 : vector<33x1xf32>
    %148 = vector.broadcast %147 : vector<33x1xf32> to vector<33x128xf32>
    %149 = arith.mulf %144, %148 : vector<33x128xf32>
    %150 = vector.broadcast %129 : vector<1x128xf32> to vector<33x128xf32>
    %151 = arith.mulf %149, %150 : vector<33x128xf32>
    %152 = vector.broadcast %131 : vector<1x128xf32> to vector<33x128xf32>
    %153 = arith.addf %151, %152 : vector<33x128xf32>
    %c1 = arith.constant 1 : index
    %c0_72 = arith.constant 0 : index
    %c0_73 = arith.constant 0 : index
    %154 = vector.load %arg2[%c1, %c0_72, %c0_73] : memref<2x128x384xf32, #tpu.memory_space<vmem>>, vector<1x128x384xf32>
    %155 = vector.shape_cast %154 : vector<1x128x384xf32> to vector<128x384xf32>
    %cst_74 = arith.constant dense<0.000000e+00> : vector<33x384xf32>
    %156 = tpu.matmul %153, %155, %cst_74 {dimension_numbers = #tpu.dot_dimension_numbers<[1], [0], [0], [1], [0, 0, 1, 1], [], []>} : vector<33x128xf32>, vector<128x384xf32>, vector<33x384xf32> -> vector<33x384xf32>
    %c1_75 = arith.constant 1 : index
    %c0_76 = arith.constant 0 : index
    %c0_77 = arith.constant 0 : index
    %157 = vector.load %arg3[%c1_75, %c0_76, %c0_77] : memref<2x1x384xf32, #tpu.memory_space<vmem>>, vector<1x1x384xf32>
    %158 = vector.shape_cast %157 : vector<1x1x384xf32> to vector<1x384xf32>
    %159 = vector.broadcast %158 : vector<1x384xf32> to vector<33x384xf32>
    %160 = arith.addf %156, %159 : vector<33x384xf32>
    %161 = vector.extract_strided_slice %160 {offsets = [0, 0], sizes = [33, 128], strides = [1, 1]} : vector<33x384xf32> to vector<33x128xf32>
    %162 = vector.extract_strided_slice %160 {offsets = [0, 128], sizes = [33, 128], strides = [1, 1]} : vector<33x384xf32> to vector<33x128xf32>
    %163 = vector.extract_strided_slice %160 {offsets = [0, 256], sizes = [33, 128], strides = [1, 1]} : vector<33x384xf32> to vector<33x128xf32>
    %164 = vector.extract_strided_slice %161 {offsets = [0, 0], sizes = [33, 32], strides = [1, 1]} : vector<33x128xf32> to vector<33x32xf32>
    %165 = vector.extract_strided_slice %162 {offsets = [0, 0], sizes = [33, 32], strides = [1, 1]} : vector<33x128xf32> to vector<33x32xf32>
    %166 = vector.extract_strided_slice %163 {offsets = [0, 0], sizes = [33, 32], strides = [1, 1]} : vector<33x128xf32> to vector<33x32xf32>
    %cst_78 = arith.constant dense<0.000000e+00> : vector<33x33xf32>
    %167 = tpu.matmul %164, %165, %cst_78 {dimension_numbers = #tpu.dot_dimension_numbers<[1], [1], [0], [0], [0, 0, 1, 0], [], []>} : vector<33x32xf32>, vector<33x32xf32>, vector<33x33xf32> -> vector<33x33xf32>
    %cst_79 = arith.constant 0.176776692 : f32
    %168 = vector.broadcast %cst_79 : f32 to vector<33x33xf32>
    %169 = arith.mulf %167, %168 : vector<33x33xf32>
    %cst_80 = arith.constant dense<0xFF800000> : vector<33xf32>
    %170 = vector.multi_reduction <maximumf>, %169, %cst_80 [1] : vector<33x33xf32> to vector<33xf32>
    %171 = vector.shape_cast %170 : vector<33xf32> to vector<33x1xf32>
    %172 = vector.broadcast %171 : vector<33x1xf32> to vector<33x33xf32>
    %173 = arith.subf %169, %172 : vector<33x33xf32>
    %174 = math.exp %173 : vector<33x33xf32>
    %cst_81 = arith.constant dense<0.000000e+00> : vector<33xf32>
    %175 = vector.multi_reduction <add>, %174, %cst_81 [1] : vector<33x33xf32> to vector<33xf32>
    %176 = vector.shape_cast %175 : vector<33xf32> to vector<33x1xf32>
    %177 = vector.broadcast %176 : vector<33x1xf32> to vector<33x33xf32>
    %178 = arith.divf %174, %177 : vector<33x33xf32>
    %cst_82 = arith.constant dense<0.000000e+00> : vector<33x32xf32>
    %179 = tpu.matmul %178, %166, %cst_82 {dimension_numbers = #tpu.dot_dimension_numbers<[1], [0], [0], [1], [0, 0, 1, 1], [], []>} : vector<33x33xf32>, vector<33x32xf32>, vector<33x32xf32> -> vector<33x32xf32>
    %180 = vector.extract_strided_slice %161 {offsets = [0, 32], sizes = [33, 32], strides = [1, 1]} : vector<33x128xf32> to vector<33x32xf32>
    %181 = vector.extract_strided_slice %162 {offsets = [0, 32], sizes = [33, 32], strides = [1, 1]} : vector<33x128xf32> to vector<33x32xf32>
    %182 = vector.extract_strided_slice %163 {offsets = [0, 32], sizes = [33, 32], strides = [1, 1]} : vector<33x128xf32> to vector<33x32xf32>
    %cst_83 = arith.constant dense<0.000000e+00> : vector<33x33xf32>
    %183 = tpu.matmul %180, %181, %cst_83 {dimension_numbers = #tpu.dot_dimension_numbers<[1], [1], [0], [0], [0, 0, 1, 0], [], []>} : vector<33x32xf32>, vector<33x32xf32>, vector<33x33xf32> -> vector<33x33xf32>
    %cst_84 = arith.constant 0.176776692 : f32
    %184 = vector.broadcast %cst_84 : f32 to vector<33x33xf32>
    %185 = arith.mulf %183, %184 : vector<33x33xf32>
    %cst_85 = arith.constant dense<0xFF800000> : vector<33xf32>
    %186 = vector.multi_reduction <maximumf>, %185, %cst_85 [1] : vector<33x33xf32> to vector<33xf32>
    %187 = vector.shape_cast %186 : vector<33xf32> to vector<33x1xf32>
    %188 = vector.broadcast %187 : vector<33x1xf32> to vector<33x33xf32>
    %189 = arith.subf %185, %188 : vector<33x33xf32>
    %190 = math.exp %189 : vector<33x33xf32>
    %cst_86 = arith.constant dense<0.000000e+00> : vector<33xf32>
    %191 = vector.multi_reduction <add>, %190, %cst_86 [1] : vector<33x33xf32> to vector<33xf32>
    %192 = vector.shape_cast %191 : vector<33xf32> to vector<33x1xf32>
    %193 = vector.broadcast %192 : vector<33x1xf32> to vector<33x33xf32>
    %194 = arith.divf %190, %193 : vector<33x33xf32>
    %cst_87 = arith.constant dense<0.000000e+00> : vector<33x32xf32>
    %195 = tpu.matmul %194, %182, %cst_87 {dimension_numbers = #tpu.dot_dimension_numbers<[1], [0], [0], [1], [0, 0, 1, 1], [], []>} : vector<33x33xf32>, vector<33x32xf32>, vector<33x32xf32> -> vector<33x32xf32>
    %196 = vector.extract_strided_slice %161 {offsets = [0, 64], sizes = [33, 32], strides = [1, 1]} : vector<33x128xf32> to vector<33x32xf32>
    %197 = vector.extract_strided_slice %162 {offsets = [0, 64], sizes = [33, 32], strides = [1, 1]} : vector<33x128xf32> to vector<33x32xf32>
    %198 = vector.extract_strided_slice %163 {offsets = [0, 64], sizes = [33, 32], strides = [1, 1]} : vector<33x128xf32> to vector<33x32xf32>
    %cst_88 = arith.constant dense<0.000000e+00> : vector<33x33xf32>
    %199 = tpu.matmul %196, %197, %cst_88 {dimension_numbers = #tpu.dot_dimension_numbers<[1], [1], [0], [0], [0, 0, 1, 0], [], []>} : vector<33x32xf32>, vector<33x32xf32>, vector<33x33xf32> -> vector<33x33xf32>
    %cst_89 = arith.constant 0.176776692 : f32
    %200 = vector.broadcast %cst_89 : f32 to vector<33x33xf32>
    %201 = arith.mulf %199, %200 : vector<33x33xf32>
    %cst_90 = arith.constant dense<0xFF800000> : vector<33xf32>
    %202 = vector.multi_reduction <maximumf>, %201, %cst_90 [1] : vector<33x33xf32> to vector<33xf32>
    %203 = vector.shape_cast %202 : vector<33xf32> to vector<33x1xf32>
    %204 = vector.broadcast %203 : vector<33x1xf32> to vector<33x33xf32>
    %205 = arith.subf %201, %204 : vector<33x33xf32>
    %206 = math.exp %205 : vector<33x33xf32>
    %cst_91 = arith.constant dense<0.000000e+00> : vector<33xf32>
    %207 = vector.multi_reduction <add>, %206, %cst_91 [1] : vector<33x33xf32> to vector<33xf32>
    %208 = vector.shape_cast %207 : vector<33xf32> to vector<33x1xf32>
    %209 = vector.broadcast %208 : vector<33x1xf32> to vector<33x33xf32>
    %210 = arith.divf %206, %209 : vector<33x33xf32>
    %cst_92 = arith.constant dense<0.000000e+00> : vector<33x32xf32>
    %211 = tpu.matmul %210, %198, %cst_92 {dimension_numbers = #tpu.dot_dimension_numbers<[1], [0], [0], [1], [0, 0, 1, 1], [], []>} : vector<33x33xf32>, vector<33x32xf32>, vector<33x32xf32> -> vector<33x32xf32>
    %212 = vector.extract_strided_slice %161 {offsets = [0, 96], sizes = [33, 32], strides = [1, 1]} : vector<33x128xf32> to vector<33x32xf32>
    %213 = vector.extract_strided_slice %162 {offsets = [0, 96], sizes = [33, 32], strides = [1, 1]} : vector<33x128xf32> to vector<33x32xf32>
    %214 = vector.extract_strided_slice %163 {offsets = [0, 96], sizes = [33, 32], strides = [1, 1]} : vector<33x128xf32> to vector<33x32xf32>
    %cst_93 = arith.constant dense<0.000000e+00> : vector<33x33xf32>
    %215 = tpu.matmul %212, %213, %cst_93 {dimension_numbers = #tpu.dot_dimension_numbers<[1], [1], [0], [0], [0, 0, 1, 0], [], []>} : vector<33x32xf32>, vector<33x32xf32>, vector<33x33xf32> -> vector<33x33xf32>
    %cst_94 = arith.constant 0.176776692 : f32
    %216 = vector.broadcast %cst_94 : f32 to vector<33x33xf32>
    %217 = arith.mulf %215, %216 : vector<33x33xf32>
    %cst_95 = arith.constant dense<0xFF800000> : vector<33xf32>
    %218 = vector.multi_reduction <maximumf>, %217, %cst_95 [1] : vector<33x33xf32> to vector<33xf32>
    %219 = vector.shape_cast %218 : vector<33xf32> to vector<33x1xf32>
    %220 = vector.broadcast %219 : vector<33x1xf32> to vector<33x33xf32>
    %221 = arith.subf %217, %220 : vector<33x33xf32>
    %222 = math.exp %221 : vector<33x33xf32>
    %cst_96 = arith.constant dense<0.000000e+00> : vector<33xf32>
    %223 = vector.multi_reduction <add>, %222, %cst_96 [1] : vector<33x33xf32> to vector<33xf32>
    %224 = vector.shape_cast %223 : vector<33xf32> to vector<33x1xf32>
    %225 = vector.broadcast %224 : vector<33x1xf32> to vector<33x33xf32>
    %226 = arith.divf %222, %225 : vector<33x33xf32>
    %cst_97 = arith.constant dense<0.000000e+00> : vector<33x32xf32>
    %227 = tpu.matmul %226, %214, %cst_97 {dimension_numbers = #tpu.dot_dimension_numbers<[1], [0], [0], [1], [0, 0, 1, 1], [], []>} : vector<33x33xf32>, vector<33x32xf32>, vector<33x32xf32> -> vector<33x32xf32>
    %228 = tpu.concatenate %179, %195, %211, %227 in 1 : vector<33x32xf32>, vector<33x32xf32>, vector<33x32xf32>, vector<33x32xf32> -> vector<33x128xf32>
    %c1_98 = arith.constant 1 : index
    %c0_99 = arith.constant 0 : index
    %c0_100 = arith.constant 0 : index
    %229 = vector.load %arg4[%c1_98, %c0_99, %c0_100] : memref<2x128x128xf32, #tpu.memory_space<vmem>>, vector<1x128x128xf32>
    %230 = vector.shape_cast %229 : vector<1x128x128xf32> to vector<128x128xf32>
    %cst_101 = arith.constant dense<0.000000e+00> : vector<33x128xf32>
    %231 = tpu.matmul %228, %230, %cst_101 {dimension_numbers = #tpu.dot_dimension_numbers<[1], [0], [0], [1], [0, 0, 1, 1], [], []>} : vector<33x128xf32>, vector<128x128xf32>, vector<33x128xf32> -> vector<33x128xf32>
    %c1_102 = arith.constant 1 : index
    %c0_103 = arith.constant 0 : index
    %c0_104 = arith.constant 0 : index
    %232 = vector.load %arg5[%c1_102, %c0_103, %c0_104] : memref<2x1x128xf32, #tpu.memory_space<vmem>>, vector<1x1x128xf32>
    %233 = vector.shape_cast %232 : vector<1x1x128xf32> to vector<1x128xf32>
    %234 = vector.broadcast %233 : vector<1x128xf32> to vector<33x128xf32>
    %235 = arith.addf %231, %234 : vector<33x128xf32>
    %236 = arith.addf %153, %235 : vector<33x128xf32>
    %c1_105 = arith.constant 1 : index
    %c0_106 = arith.constant 0 : index
    %c0_107 = arith.constant 0 : index
    %237 = vector.load %arg6[%c1_105, %c0_106, %c0_107] : memref<2x1x128xf32, #tpu.memory_space<vmem>>, vector<1x1x128xf32>
    %238 = vector.shape_cast %237 : vector<1x1x128xf32> to vector<1x128xf32>
    %c1_108 = arith.constant 1 : index
    %c0_109 = arith.constant 0 : index
    %c0_110 = arith.constant 0 : index
    %239 = vector.load %arg7[%c1_108, %c0_109, %c0_110] : memref<2x1x128xf32, #tpu.memory_space<vmem>>, vector<1x1x128xf32>
    %240 = vector.shape_cast %239 : vector<1x1x128xf32> to vector<1x128xf32>
    %cst_111 = arith.constant dense<0.000000e+00> : vector<33xf32>
    %241 = vector.multi_reduction <add>, %236, %cst_111 [1] : vector<33x128xf32> to vector<33xf32>
    %242 = vector.shape_cast %241 : vector<33xf32> to vector<33x1xf32>
    %cst_112 = arith.constant 1.280000e+02 : f32
    %243 = vector.broadcast %cst_112 : f32 to vector<33x1xf32>
    %244 = arith.divf %242, %243 : vector<33x1xf32>
    %245 = vector.broadcast %244 : vector<33x1xf32> to vector<33x128xf32>
    %246 = arith.subf %236, %245 : vector<33x128xf32>
    %247 = arith.mulf %246, %246 : vector<33x128xf32>
    %cst_113 = arith.constant dense<0.000000e+00> : vector<33xf32>
    %248 = vector.multi_reduction <add>, %247, %cst_113 [1] : vector<33x128xf32> to vector<33xf32>
    %249 = vector.shape_cast %248 : vector<33xf32> to vector<33x1xf32>
    %cst_114 = arith.constant 1.280000e+02 : f32
    %250 = vector.broadcast %cst_114 : f32 to vector<33x1xf32>
    %251 = arith.divf %249, %250 : vector<33x1xf32>
    %252 = vector.broadcast %244 : vector<33x1xf32> to vector<33x128xf32>
    %253 = arith.subf %236, %252 : vector<33x128xf32>
    %cst_115 = arith.constant 9.99999974E-6 : f32
    %254 = vector.broadcast %cst_115 : f32 to vector<33x1xf32>
    %255 = arith.addf %251, %254 : vector<33x1xf32>
    %256 = math.rsqrt %255 : vector<33x1xf32>
    %257 = vector.broadcast %256 : vector<33x1xf32> to vector<33x128xf32>
    %258 = arith.mulf %253, %257 : vector<33x128xf32>
    %259 = vector.broadcast %238 : vector<1x128xf32> to vector<33x128xf32>
    %260 = arith.mulf %258, %259 : vector<33x128xf32>
    %261 = vector.broadcast %240 : vector<1x128xf32> to vector<33x128xf32>
    %262 = arith.addf %260, %261 : vector<33x128xf32>
    %c1_116 = arith.constant 1 : index
    %c0_117 = arith.constant 0 : index
    %c0_118 = arith.constant 0 : index
    %263 = vector.load %arg8[%c1_116, %c0_117, %c0_118] : memref<2x128x256xf32, #tpu.memory_space<vmem>>, vector<1x128x256xf32>
    %264 = vector.shape_cast %263 : vector<1x128x256xf32> to vector<128x256xf32>
    %cst_119 = arith.constant dense<0.000000e+00> : vector<33x256xf32>
    %265 = tpu.matmul %262, %264, %cst_119 {dimension_numbers = #tpu.dot_dimension_numbers<[1], [0], [0], [1], [0, 0, 1, 1], [], []>} : vector<33x128xf32>, vector<128x256xf32>, vector<33x256xf32> -> vector<33x256xf32>
    %c1_120 = arith.constant 1 : index
    %c0_121 = arith.constant 0 : index
    %c0_122 = arith.constant 0 : index
    %266 = vector.load %arg9[%c1_120, %c0_121, %c0_122] : memref<2x1x256xf32, #tpu.memory_space<vmem>>, vector<1x1x256xf32>
    %267 = vector.shape_cast %266 : vector<1x1x256xf32> to vector<1x256xf32>
    %268 = vector.broadcast %267 : vector<1x256xf32> to vector<33x256xf32>
    %269 = arith.addf %265, %268 : vector<33x256xf32>
    %cst_123 = arith.constant 0.000000e+00 : f32
    %270 = vector.broadcast %cst_123 : f32 to vector<33x256xf32>
    %271 = arith.maximumf %269, %270 : vector<33x256xf32>
    %c1_124 = arith.constant 1 : index
    %c0_125 = arith.constant 0 : index
    %c0_126 = arith.constant 0 : index
    %272 = vector.load %arg10[%c1_124, %c0_125, %c0_126] : memref<2x256x128xf32, #tpu.memory_space<vmem>>, vector<1x256x128xf32>
    %273 = vector.shape_cast %272 : vector<1x256x128xf32> to vector<256x128xf32>
    %cst_127 = arith.constant dense<0.000000e+00> : vector<33x128xf32>
    %274 = tpu.matmul %271, %273, %cst_127 {dimension_numbers = #tpu.dot_dimension_numbers<[1], [0], [0], [1], [0, 0, 1, 1], [], []>} : vector<33x256xf32>, vector<256x128xf32>, vector<33x128xf32> -> vector<33x128xf32>
    %c1_128 = arith.constant 1 : index
    %c0_129 = arith.constant 0 : index
    %c0_130 = arith.constant 0 : index
    %275 = vector.load %arg11[%c1_128, %c0_129, %c0_130] : memref<2x1x128xf32, #tpu.memory_space<vmem>>, vector<1x1x128xf32>
    %276 = vector.shape_cast %275 : vector<1x1x128xf32> to vector<1x128xf32>
    %277 = vector.broadcast %276 : vector<1x128xf32> to vector<33x128xf32>
    %278 = arith.addf %274, %277 : vector<33x128xf32>
    %279 = arith.addf %262, %278 : vector<33x128xf32>
    %c1_131 = arith.constant 1 : index
    %c0_132 = arith.constant 0 : index
    %c0_133 = arith.constant 0 : index
    %280 = vector.load %arg12[%c1_131, %c0_132, %c0_133] : memref<2x1x128xf32, #tpu.memory_space<vmem>>, vector<1x1x128xf32>
    %281 = vector.shape_cast %280 : vector<1x1x128xf32> to vector<1x128xf32>
    %c1_134 = arith.constant 1 : index
    %c0_135 = arith.constant 0 : index
    %c0_136 = arith.constant 0 : index
    %282 = vector.load %arg13[%c1_134, %c0_135, %c0_136] : memref<2x1x128xf32, #tpu.memory_space<vmem>>, vector<1x1x128xf32>
    %283 = vector.shape_cast %282 : vector<1x1x128xf32> to vector<1x128xf32>
    %cst_137 = arith.constant dense<0.000000e+00> : vector<33xf32>
    %284 = vector.multi_reduction <add>, %279, %cst_137 [1] : vector<33x128xf32> to vector<33xf32>
    %285 = vector.shape_cast %284 : vector<33xf32> to vector<33x1xf32>
    %cst_138 = arith.constant 1.280000e+02 : f32
    %286 = vector.broadcast %cst_138 : f32 to vector<33x1xf32>
    %287 = arith.divf %285, %286 : vector<33x1xf32>
    %288 = vector.broadcast %287 : vector<33x1xf32> to vector<33x128xf32>
    %289 = arith.subf %279, %288 : vector<33x128xf32>
    %290 = arith.mulf %289, %289 : vector<33x128xf32>
    %cst_139 = arith.constant dense<0.000000e+00> : vector<33xf32>
    %291 = vector.multi_reduction <add>, %290, %cst_139 [1] : vector<33x128xf32> to vector<33xf32>
    %292 = vector.shape_cast %291 : vector<33xf32> to vector<33x1xf32>
    %cst_140 = arith.constant 1.280000e+02 : f32
    %293 = vector.broadcast %cst_140 : f32 to vector<33x1xf32>
    %294 = arith.divf %292, %293 : vector<33x1xf32>
    %295 = vector.broadcast %287 : vector<33x1xf32> to vector<33x128xf32>
    %296 = arith.subf %279, %295 : vector<33x128xf32>
    %cst_141 = arith.constant 9.99999974E-6 : f32
    %297 = vector.broadcast %cst_141 : f32 to vector<33x1xf32>
    %298 = arith.addf %294, %297 : vector<33x1xf32>
    %299 = math.rsqrt %298 : vector<33x1xf32>
    %300 = vector.broadcast %299 : vector<33x1xf32> to vector<33x128xf32>
    %301 = arith.mulf %296, %300 : vector<33x128xf32>
    %302 = vector.broadcast %281 : vector<1x128xf32> to vector<33x128xf32>
    %303 = arith.mulf %301, %302 : vector<33x128xf32>
    %304 = vector.broadcast %283 : vector<1x128xf32> to vector<33x128xf32>
    %305 = arith.addf %303, %304 : vector<33x128xf32>
    %cst_142 = arith.constant dense<0.000000e+00> : vector<128xf32>
    %306 = vector.multi_reduction <add>, %305, %cst_142 [0] : vector<33x128xf32> to vector<128xf32>
    %307 = vector.shape_cast %306 : vector<128xf32> to vector<1x128xf32>
    %cst_143 = arith.constant 3.300000e+01 : f32
    %308 = vector.broadcast %cst_143 : f32 to vector<1x128xf32>
    %309 = arith.divf %307, %308 : vector<1x128xf32>
    %c0_144 = arith.constant 0 : index
    %c0_145 = arith.constant 0 : index
    %310 = vector.load %arg14[%c0_144, %c0_145] : memref<128x256xf32, #tpu.memory_space<vmem>>, vector<128x256xf32>
    %cst_146 = arith.constant dense<0.000000e+00> : vector<1x256xf32>
    %311 = tpu.matmul %309, %310, %cst_146 {dimension_numbers = #tpu.dot_dimension_numbers<[1], [0], [0], [1], [0, 0, 1, 1], [], []>} : vector<1x128xf32>, vector<128x256xf32>, vector<1x256xf32> -> vector<1x256xf32>
    %c0_147 = arith.constant 0 : index
    %c0_148 = arith.constant 0 : index
    %312 = vector.load %arg15[%c0_147, %c0_148] : memref<1x256xf32, #tpu.memory_space<vmem>>, vector<1x256xf32>
    %313 = arith.addf %311, %312 : vector<1x256xf32>
    %cst_149 = arith.constant 0.000000e+00 : f32
    %314 = vector.broadcast %cst_149 : f32 to vector<1x256xf32>
    %315 = arith.maximumf %313, %314 : vector<1x256xf32>
    %c0_150 = arith.constant 0 : index
    %c0_151 = arith.constant 0 : index
    %316 = vector.load %arg16[%c0_150, %c0_151] : memref<256x128xf32, #tpu.memory_space<vmem>>, vector<256x128xf32>
    %cst_152 = arith.constant dense<0.000000e+00> : vector<1x128xf32>
    %317 = tpu.matmul %315, %316, %cst_152 {dimension_numbers = #tpu.dot_dimension_numbers<[1], [0], [0], [1], [0, 0, 1, 1], [], []>} : vector<1x256xf32>, vector<256x128xf32>, vector<1x128xf32> -> vector<1x128xf32>
    %c0_153 = arith.constant 0 : index
    %c0_154 = arith.constant 0 : index
    %318 = vector.load %arg17[%c0_153, %c0_154] : memref<1x128xf32, #tpu.memory_space<vmem>>, vector<1x128xf32>
    %319 = arith.addf %317, %318 : vector<1x128xf32>
    %c0_155 = arith.constant 0 : index
    %c0_156 = arith.constant 0 : index
    %c0_157 = arith.constant 0 : index
    %320 = vector.load %arg18[%c0_155, %c0_156, %c0_157] : memref<1x1x128xf32, #tpu.memory_space<vmem>>, vector<1x1x128xf32>
    %321 = vector.shape_cast %320 : vector<1x1x128xf32> to vector<1x128xf32>
    %322 = vector.shape_cast %319 : vector<1x128xf32> to vector<1x1x128xf32>
    tpu.vector_store %arg18[%c0_155, %c0_156, %c0_157], %322 {strides = array<i32>} : memref<1x1x128xf32, #tpu.memory_space<vmem>>, vector<1x1x128xf32>,
    return
  }
  func.func @transform_0(%arg0: i32) -> (i32, i32, i32) {
    %c0_i32 = arith.constant 0 : i32
    %c0_i32_0 = arith.constant 0 : i32
    %c0_i32_1 = arith.constant 0 : i32
    return %arg0, %c0_i32, %c0_i32_0 : i32, i32, i32
  }
  func.func @transform_1(%arg0: i32) -> (i32, i32, i32) {
    %c0_i32 = arith.constant 0 : i32
    %c0_i32_0 = arith.constant 0 : i32
    %c0_i32_1 = arith.constant 0 : i32
    %c0_i32_2 = arith.constant 0 : i32
    return %c0_i32, %c0_i32_0, %c0_i32_1 : i32, i32, i32
  }
  func.func @transform_2(%arg0: i32) -> (i32, i32, i32) {
    %c0_i32 = arith.constant 0 : i32
    %c0_i32_0 = arith.constant 0 : i32
    %c0_i32_1 = arith.constant 0 : i32
    %c0_i32_2 = arith.constant 0 : i32
    return %c0_i32, %c0_i32_0, %c0_i32_1 : i32, i32, i32
  }
  func.func @transform_3(%arg0: i32) -> (i32, i32, i32) {
    %c0_i32 = arith.constant 0 : i32
    %c0_i32_0 = arith.constant 0 : i32
    %c0_i32_1 = arith.constant 0 : i32
    %c0_i32_2 = arith.constant 0 : i32
    return %c0_i32, %c0_i32_0, %c0_i32_1 : i32, i32, i32
  }
  func.func @transform_4(%arg0: i32) -> (i32, i32, i32) {
    %c0_i32 = arith.constant 0 : i32
    %c0_i32_0 = arith.constant 0 : i32
    %c0_i32_1 = arith.constant 0 : i32
    %c0_i32_2 = arith.constant 0 : i32
    return %c0_i32, %c0_i32_0, %c0_i32_1 : i32, i32, i32
  }
  func.func @transform_5(%arg0: i32) -> (i32, i32, i32) {
    %c0_i32 = arith.constant 0 : i32
    %c0_i32_0 = arith.constant 0 : i32
    %c0_i32_1 = arith.constant 0 : i32
    %c0_i32_2 = arith.constant 0 : i32
    return %c0_i32, %c0_i32_0, %c0_i32_1 : i32, i32, i32
  }
  func.func @transform_6(%arg0: i32) -> (i32, i32, i32) {
    %c0_i32 = arith.constant 0 : i32
    %c0_i32_0 = arith.constant 0 : i32
    %c0_i32_1 = arith.constant 0 : i32
    %c0_i32_2 = arith.constant 0 : i32
    return %c0_i32, %c0_i32_0, %c0_i32_1 : i32, i32, i32
  }
  func.func @transform_7(%arg0: i32) -> (i32, i32, i32) {
    %c0_i32 = arith.constant 0 : i32
    %c0_i32_0 = arith.constant 0 : i32
    %c0_i32_1 = arith.constant 0 : i32
    %c0_i32_2 = arith.constant 0 : i32
    return %c0_i32, %c0_i32_0, %c0_i32_1 : i32, i32, i32
  }
  func.func @transform_8(%arg0: i32) -> (i32, i32, i32) {
    %c0_i32 = arith.constant 0 : i32
    %c0_i32_0 = arith.constant 0 : i32
    %c0_i32_1 = arith.constant 0 : i32
    %c0_i32_2 = arith.constant 0 : i32
    return %c0_i32, %c0_i32_0, %c0_i32_1 : i32, i32, i32
  }
  func.func @transform_9(%arg0: i32) -> (i32, i32, i32) {
    %c0_i32 = arith.constant 0 : i32
    %c0_i32_0 = arith.constant 0 : i32
    %c0_i32_1 = arith.constant 0 : i32
    %c0_i32_2 = arith.constant 0 : i32
    return %c0_i32, %c0_i32_0, %c0_i32_1 : i32, i32, i32
  }
  func.func @transform_10(%arg0: i32) -> (i32, i32, i32) {
    %c0_i32 = arith.constant 0 : i32
    %c0_i32_0 = arith.constant 0 : i32
    %c0_i32_1 = arith.constant 0 : i32
    %c0_i32_2 = arith.constant 0 : i32
    return %c0_i32, %c0_i32_0, %c0_i32_1 : i32, i32, i32
  }
  func.func @transform_11(%arg0: i32) -> (i32, i32, i32) {
    %c0_i32 = arith.constant 0 : i32
    %c0_i32_0 = arith.constant 0 : i32
    %c0_i32_1 = arith.constant 0 : i32
    %c0_i32_2 = arith.constant 0 : i32
    return %c0_i32, %c0_i32_0, %c0_i32_1 : i32, i32, i32
  }
  func.func @transform_12(%arg0: i32) -> (i32, i32, i32) {
    %c0_i32 = arith.constant 0 : i32
    %c0_i32_0 = arith.constant 0 : i32
    %c0_i32_1 = arith.constant 0 : i32
    %c0_i32_2 = arith.constant 0 : i32
    return %c0_i32, %c0_i32_0, %c0_i32_1 : i32, i32, i32
  }
  func.func @transform_13(%arg0: i32) -> (i32, i32) {
    %c0_i32 = arith.constant 0 : i32
    %c0_i32_0 = arith.constant 0 : i32
    %c0_i32_1 = arith.constant 0 : i32
    return %c0_i32, %c0_i32_0 : i32, i32
  }
  func.func @transform_14(%arg0: i32) -> (i32, i32) {
    %c0_i32 = arith.constant 0 : i32
    %c0_i32_0 = arith.constant 0 : i32
    %c0_i32_1 = arith.constant 0 : i32
    return %c0_i32, %c0_i32_0 : i32, i32
  }
  func.func @transform_15(%arg0: i32) -> (i32, i32) {
    %c0_i32 = arith.constant 0 : i32
    %c0_i32_0 = arith.constant 0 : i32
    %c0_i32_1 = arith.constant 0 : i32
    return %c0_i32, %c0_i32_0 : i32, i32
  }
  func.func @transform_16(%arg0: i32) -> (i32, i32) {
    %c0_i32 = arith.constant 0 : i32
    %c0_i32_0 = arith.constant 0 : i32
    %c0_i32_1 = arith.constant 0 : i32
    return %c0_i32, %c0_i32_0 : i32, i32
  }
  func.func @transform_17(%arg0: i32) -> (i32, i32, i32) {
    %c0_i32 = arith.constant 0 : i32
    %c0_i32_0 = arith.constant 0 : i32
    %c0_i32_1 = arith.constant 0 : i32
    return %arg0, %c0_i32, %c0_i32_0 : i32, i32, i32
  }
}

</mosaic_0001>

<bundles_post_ra>
// kernel: _lambda_.1
= control target key start
LH: loop header
LB: loop body
LE: loop exit
PB: predicated region body
PF: predicated region fallthrough
CT: control target
= control target key end

     0   :  { %s9548_s0 = inlined_call_operand.vmem [shape: f32[2,33,128], index: 0, kind: input, shape index: {}]   ;;  %s9549_s1 = inlined_call_operand.vmem [shape: f32[2,128,384], index: 1, kind: input, shape index: {}]   ;;  %s9550_s2 = inlined_call_operand.vmem [shape: f32[2,1,384], index: 2, kind: input, shape index: {}]   ;;  %s9551_s3 = inlined_call_operand.vmem [shape: f32[2,128,128], index: 3, kind: input, shape index: {}]   ;;  %s9552_s4 = inlined_call_operand.vmem [shape: f32[2,1,128], index: 4, kind: input, shape index: {}, may-alias: {4,6,10,12}]   ;;  %s9553_s5 = inlined_call_operand.vmem [shape: f32[2,1,128], index: 5, kind: input, shape index: {}, may-alias: {5,11}]   ;;  %s9554_s6 = inlined_call_operand.vmem [shape: f32[2,1,128], index: 6, kind: input, shape index: {}, may-alias: {4,6,10,12}]   ;;  %s9555_s7 = inlined_call_operand.hbm [shape: f32[2,128,256], index: 7, kind: input, shape index: {}]   ;;  %s9556_s8 = inlined_call_operand.vmem [shape: f32[2,1,256], index: 8, kind: input, shape index: {}]   ;;  %s9557_s9 = inlined_call_operand.hbm [shape: f32[2,256,128], index: 9, kind: input, shape index: {}]   ;;  %s9558_s10 = inlined_call_operand.vmem [shape: f32[2,1,128], index: 10, kind: input, shape index: {}, may-alias: {4,6,10,12}]   ;;  %s9559_s11 = inlined_call_operand.vmem [shape: f32[2,1,128], index: 11, kind: input, shape index: {}, may-alias: {5,11}]   ;;  %s9560_s12 = inlined_call_operand.vmem [shape: f32[2,1,128], index: 12, kind: input, shape index: {}, may-alias: {4,6,10,12}]   ;;  %s9561_s13 = inlined_call_operand.hbm [shape: f32[128,256], index: 13, kind: input, shape index: {}]   ;;  %s9562_s14 = inlined_call_operand.vmem [shape: f32[1,256], index: 14, kind: input, shape index: {}]   ;;  %s9563_s15 = inlined_call_operand.hbm [shape: f32[256,128], index: 15, kind: input, shape index: {}]   ;;  %s9564_s16 = inlined_call_operand.vmem [shape: f32[1,128], index: 16, kind: input, shape index: {}]   ;;  %s9565_s17 = inlined_call_operand.hbm [shape: f32[2,1,128], index: 17, kind: output, shape index: {}]  }
   0x1   :  { %9581 = sst [smem:[#allocation22_spill]] %s9548_s0 }
   0x2   :  { %9582 = sst [smem:[#allocation23_spill]] %s9549_s1 }
   0x3   :  { %9583 = sst [smem:[#allocation24_spill]] %s9557_s9 }
   0x4   :  { %9584 = sst [smem:[#allocation25_spill]] %s9562_s14 }
   0x5   :  { %9585 = sst [smem:[#allocation26_spill]] %s9564_s16 }
   0x6   :  { %9586 = sst [smem:[#allocation27_spill]] %s9565_s17 }
   0x7   :  { %22 = vsyncpa [#allocation3], 0 }
   0x8   :  { %23 = vsyncpa [#allocation6], 0 }
   0x9   :  { %24 = vsyncpa [#allocation9], 0 }
   0xa   :  { %25 = vsyncpa [#allocation4], 0 }
   0xb   :  { %27 = vsyncpa [#allocation4 + $0x1], 0  ;;  %s7600_s24 = smov 0   ;;  %s7602_s25 = smov 0  }
   0xc   :  { %s7604_s26 = smov 0   ;;  %s7606_s27 = smov 0  }
   0xd LB: > { %9587 = sst [smem:[#allocation15_spill]] %s7481_s24  ;;  %s7621_s28 = sadd.s32 4294967295, %s7493_s27   ;;  %s7493_s27 = sphi %s7606_s27, %s9622_s27   ;;  %s7489_s26 = sphi %s7604_s26, %s9624_s26   ;;  %s7485_s25 = sphi %s7602_s25, %s9626_s25   ;;  %s7481_s24 = sphi %s7600_s24, %s9625_s24  }
   0xe   : > { %9588 = sst [smem:[#allocation16_spill]] %s7489_s26  ;;  %s5198_s29 = sadd.s32 4294967294, %s7493_s27  }
   0xf   : > { %9589 = sst [smem:[#allocation17_spill]] %s7493_s27  ;;  %s7625_s0 = sadd.s32 1, %s7493_s27  }
  0x10   : > { %9590 = sst [smem:[#allocation18_spill]] %s7625_s0  ;;  %s402_s30 = sadd.s32 1, %s7489_s26 }
  0x11   : > { %s399_s18 = ssub.s32 %s7493_s27, %s7625_s0  ;;  %p412_p0 = scmp.ne.s32.totalorder %s7489_s26, %s7485_s25 }
  0x12   : > { %p400_p1 = scmp.eq.s32.totalorder %s399_s18, 0  ;;  %p413_p2 = scmp.eq.s32.totalorder %s7621_s28, 1 }
  0x13   : > { %p418_p3 = scmp.ne.s32.totalorder %s7485_s25, %s7481_s24  ;;  %p419_p4 = scmp.eq.s32.totalorder %s5198_s29, 1 }
  0x14   : > { %s7636_s19 = scalar_select %p400_p1, %s7489_s26, %s402_s30  }
  0x15   : > { %p7638_p5 = por %p413_p2, %p412_p0  ;;  %p7642_p6 = por %p419_p4, %p418_p3 }
  0x16   : > { %9591 = sst [smem:[#allocation19_spill]] %s7636_s19  ;;  %p5199_p7 = scmp.ge.s32.totalorder %s7493_s27, 1 }
  0x17   : > { %s9592_s1 = scalar_select %p7638_p5, 1, 0 }
  0x18   : > { %s9594_s20 = scalar_select %p7642_p6, 1, 0 }
  0x19   : > { %9593 = sst [smem:[#allocation20_spill]] %s9592_s1  ;;  %p426_p8 = scmp.lt.s32.totalorder %s7493_s27, 3 }
  0x1a   : > { %9595 = sst [smem:[#allocation21_spill]] %s9594_s20  ;;  %p9573_p9 = scmp.eq.s32.totalorder %s7621_s28, 0 }
  0x1b   : > { %p7649_p10 = pnand %p5199_p7, %p426_p8  ;;  %s7495_s22 = smov [#allocation5]  }
  0x1c   : > { %s472_s23 = sshll.u32 %s7495_s22, 4  ;;  %s7496_s30 = smov [#allocation2]   ;;  %s473_s23 = int_to_ptr.vmem [resolvable:$true] %s472_s23 }
  0x1d   : > { %s9596_s21 = scalar_select %p7649_p10, 1, 0 }
  0x1e   : > { %p6870_p11 = pneg %p7649_p10  ;;  %s456_s18 = sshll.u32 %s7496_s30, 4  ;;  %s7661_s18 = int_to_ptr.vmem [resolvable:$true] %s456_s18 }
  0x1f   : > { %s9598_s9 = sld [smem:[#allocation24_spill]] }
  0x20   : > { %p7657_p12 = pnand %p9573_p9, %p6870_p11 }
  0x22   : > { %p7671_p0 = pneg %p7657_p12 }
  0x25   : > { %s7307_s0 = scalar_lea.hbm %s9598_s9, 8192 }
  0x26   : > { %p7308_p13 = scmp.ne.s32.totalorder %s9598_s9, %s7307_s0  ;;  %p7314_p3 = scmp.lt.u32.totalorder %s7307_s0, %s9598_s9 }
  0x28   : > { %p7310_p1 = pnand %p7671_p0, %p7308_p13 }
  0x2a   : > { %p7311_p2 = pneg %p7310_p1 }
  0x2c   : > { %p7316_p4 = pnand %p7314_p3, %p7311_p2 }
  0x2e   : > { %7319 = shalt.err (!%p7316_p4)
}
  0x2f   : > { %s7320_s26 = scalar_lea.vmem %s473_s23, 8192  ;;  %p7328_p9 = scmp.lt.s32.totalorder %s473_s23, %s473_s23 }
  0x30   : > { %p7321_p7 = scmp.ne.s32.totalorder %s473_s23, %s7320_s26  ;;  %p7329_p6 = scmp.lt.s32.totalorder %s7320_s26, %s7320_s26 }
  0x32   : > { %p7323_p8 = pnand %p7321_p7, %p7671_p0  ;;  %p7330_p5 = por %p7329_p6, %p7328_p9 }
  0x34   : > { %p7324_p11 = pneg %p7323_p8 }
  0x36   : > { %p7331_p10 = pnand %p7330_p5, %p7324_p11 }
  0x38   : > { %7334 = shalt.err (!%p7331_p10)
}
  0x39   : > { %s9579_s24 = smov 128   ;;  %s9580_s19 = smov 8  }
  0x3a   : > { %6876 = dma.hbm_to_vmem [thread:$0]  (!%p7657_p12), %s9598_s9, 8192, %s473_s23, [#allocation6], %s9579_s24, %s9579_s24, %s9580_s19  }
  0x3b   : > { %s7335_s17 = scalar_lea.hbm %s9555_s7, 8192 }
  0x3c   : > { %p7336_p5 = scmp.ne.s32.totalorder %s9555_s7, %s7335_s17  ;;  %p7342_p10 = scmp.lt.u32.totalorder %s7335_s17, %s9555_s7 }
  0x3e   : > { %p7338_p6 = pnand %p7336_p5, %p7671_p0 }
  0x40   : > { %p7339_p9 = pneg %p7338_p6 }
  0x42   : > { %p7344_p13 = pnand %p7342_p10, %p7339_p9 }
  0x44   : > { %7347 = shalt.err (!%p7344_p13)
}
  0x45   : > { %s7348_s23 = scalar_lea.vmem %s7661_s18, 8192  ;;  %p7356_p4 = scmp.lt.s32.totalorder %s7661_s18, %s7661_s18 }
  0x46   : > { %p7349_p1 = scmp.ne.s32.totalorder %s7661_s18, %s7348_s23  ;;  %p7357_p7 = scmp.lt.s32.totalorder %s7348_s23, %s7348_s23 }
  0x48   : > { %p7351_p2 = pnand %p7349_p1, %p7671_p0  ;;  %p7358_p8 = por %p7357_p7, %p7356_p4 }
  0x4a   : > { %p7352_p3 = pneg %p7351_p2 }
  0x4c   : > { %p7359_p11 = pnand %p7358_p8, %p7352_p3 }
  0x4e   : > { %7362 = shalt.err (!%p7359_p11)
}
  0x4f   : > { %s7499_s16 = smov 256   ;;  %s7500_s14 = smov 16  }
  0x50   : > { %6873 = dma.hbm_to_vmem [thread:$0]  (!%p7657_p12), %s9555_s7, 8192, %s7661_s18, [#allocation3], %s7499_s16, %s7499_s16, %s7500_s14  }
  0x51   : > { %s7501_s27 = smov [#allocation7]   ;;  %s7502_s20 = smov [#allocation8]  }
  0x52   : > { %s494_s0 = sshll.u32 %s7501_s27, 4  ;;  %s510_s30 = sshll.u32 %s7502_s20, 4  ;;  %s495_s0 = int_to_ptr.vmem [resolvable:$true] %s494_s0  ;;  %s7713_s30 = int_to_ptr.vmem [resolvable:$true] %s510_s30 }
  0x53   : > { %s7363_s24 = scalar_lea.hbm %s9561_s13, 4096 }
  0x54   : > { %p7364_p5 = scmp.ne.s32.totalorder %s9561_s13, %s7363_s24  ;;  %p7370_p10 = scmp.lt.u32.totalorder %s7363_s24, %s9561_s13 }
  0x56   : > { %p7366_p6 = pnand %p7364_p5, %p7671_p0 }
  0x58   : > { %p7367_p9 = pneg %p7366_p6 }
  0x5a   : > { %p7372_p13 = pnand %p7370_p10, %p7367_p9 }
  0x5c   : > { %7375 = shalt.err (!%p7372_p13)
}
  0x5d   : > { %s7376_s1 = scalar_lea.vmem %s495_s0, 4096  ;;  %p7384_p4 = scmp.lt.s32.totalorder %s495_s0, %s495_s0 }
  0x5e   : > { %p7377_p1 = scmp.ne.s32.totalorder %s495_s0, %s7376_s1  ;;  %p7385_p7 = scmp.lt.s32.totalorder %s7376_s1, %s7376_s1 }
  0x60   : > { %p7379_p2 = pnand %p7377_p1, %p7671_p0  ;;  %p7386_p8 = por %p7385_p7, %p7384_p4 }
  0x62   : > { %p7380_p3 = pneg %p7379_p2 }
  0x64   : > { %p7387_p11 = pnand %p7386_p8, %p7380_p3 }
  0x66   : > { %7390 = shalt.err (!%p7387_p11)
}
  0x67   : > { %6879 = dma.hbm_to_vmem [thread:$0]  (!%p7657_p12), %s9561_s13, 4096, %s495_s0, [#allocation6], %s7499_s16, %s7499_s16, %s7500_s14  }
  0x68   : > { %s7391_s20 = scalar_lea.hbm %s9563_s15, 4096 }
  0x69   : > { %p7392_p5 = scmp.ne.s32.totalorder %s9563_s15, %s7391_s20  ;;  %p7398_p10 = scmp.lt.u32.totalorder %s7391_s20, %s9563_s15 }
  0x6b   : > { %p7394_p6 = pnand %p7392_p5, %p7671_p0 }
  0x6d   : > { %p7395_p9 = pneg %p7394_p6 }
  0x6f   : > { %p7400_p13 = pnand %p7398_p10, %p7395_p9 }
  0x71   : > { %7403 = shalt.err (!%p7400_p13)
}
  0x72   : > { %s7404_s16 = scalar_lea.vmem %s7713_s30, 4096  ;;  %p7412_p4 = scmp.lt.s32.totalorder %s7713_s30, %s7713_s30 }
  0x73   : > { %p7405_p1 = scmp.ne.s32.totalorder %s7713_s30, %s7404_s16  ;;  %p7413_p7 = scmp.lt.s32.totalorder %s7404_s16, %s7404_s16 }
  0x75   : > { %p7407_p2 = pnand %p7405_p1, %p7671_p0  ;;  %p7414_p8 = por %p7413_p7, %p7412_p4 }
  0x77   : > { %p7408_p3 = pneg %p7407_p2 }
  0x79   : > { %p7415_p11 = pnand %p7414_p8, %p7408_p3 }
  0x7b   : > { %7418 = shalt.err (!%p7415_p11)
}
  0x7c   : > { %s9600_s14 = smov 8   ;;  %s9601_s0 = smov 128  }
  0x7d   : > { %6882 = dma.hbm_to_vmem [thread:$0]  (!%p7657_p12), %s9563_s15, 4096, %s7713_s30, [#allocation9], %s9601_s0, %s9601_s0, %s9600_s14  }
  0x7e   : > { %p9602_p5 = scmp.ne.s32.totalorder %s9596_s21, 0 }
  0x7f   : > { %p9603_p0 = scmp.eq.s32.totalorder (!%p9602_p5), %s7621_s28, 0 }
  0x80   : > { %537 = sbr.rel (%p9602_p5) target bundleno = 5834 (0x16ca), region = 88 }
  0x87   : > { %7464 = dma.done.wait (%p9603_p0), [#allocation3], 8192   ;;  %p9604_p6 = pmov %p9603_p0 }
  0x88   : > { %p9605_p9 = pmov %p9603_p0 }
  0x89   : > { %7466 = vsyncadd (%p9604_p6), [#allocation3], 4294959104 }
  0x8a   : > { %7468 = dma.done.wait (%p9605_p9), [#allocation6], 12288   ;;  %p9606_p10 = pmov %p9603_p0 }
  0x8b   : > { %p9607_p13 = pmov %p9603_p0 }
  0x8c   : > { %7470 = vsyncadd (%p9606_p10), [#allocation6], 4294955008 }
  0x8d   : > { %7472 = dma.done.wait (%p9607_p13), [#allocation9], 4096   ;;  %p9608_p12 = pmov %p9603_p0 }
  0x8e   : > { %v7503_v0 = vmov 0.0   ;;  %v7504_v1 = vmov 0.0|0.0   ;;  %vm7505_vm0 = vmmov 0   ;;  %s9609_s22 = sld [smem:[#allocation23_spill]]  ;;  %p600_p1 = scmp.lt.s32.totalorder %s7621_s28, 1  ;;  %vm860_vm1 = vcmask 261120  }
  0x8f   : > { %7474 = vsyncadd (%p9608_p12), [#allocation9], 4294963200  ;;  %739 = vmatprep.mubr.f32.mxu0 %v7503_v0  ;;  %6419 = vmatprep.subr.bf16.mxu1 %v7504_v1  ;;  %s9610_s0 = sld [smem:[#allocation22_spill]]  ;;  %s7506_s17 = smov 96   ;;  %vm1058_vm3 = vcmask 1040384   ;;  %vm986_vm4 = vcmask 269312  }
  0x90   : > { %5831 = vmatprep.mubr.msk.f32.mxu1 %vm7505_vm0, %v7503_v0  ;;  %s601_s23 = scalar_select %p600_p1, %s7621_s28, 1  ;;  %vm7974_vm2 = vmpackc.low %vm860_vm1, %vm860_vm1  ;;  %vm999_vm5 = vcmask 262144   ;;  %vm2154_vm6 = vcmask 523264   ;;  %vm2160_vm7 = vcmask 785408  }
  0x91   : > { %s7507_s18 = smov 64   ;;  %s7508_s16 = smov 32  }
  0x92   : > { %s6851_s27 = smul.u32 40, %s601_s23  ;;  %s9615_s20 = sld [smem:[#allocation26_spill]] }
  0x93   : > { %s5423_s26 = sshll.u32 %s7621_s28, 4  ;;  %s9616_s21 = sld [smem:[#allocation27_spill]] }
  0x94   : > { %v611_v2 = vld [vmem:[%s9609_s22 + $0x8] sm:$0xff]  ;;  %v614_v3 = vld [vmem:[%s9609_s22 + $0x20] sm:$0xff]  ;;  %v613_v6 = vld [vmem:[%s9609_s22 + $0x18] sm:$0xff]  ;;  %s7509_s28 = smov [#allocation10]  }
  0x95   : > { %v610_v4 = vld [vmem:[%s9609_s22] sm:$0xff]  ;;  %v6387_v5 = vpack.c.bf16 %v614_v3, %v611_v2  ;;  %v617_v7 = vld [vmem:[%s9609_s22 + $0x38] sm:$0xff]  ;;  %v620_v8 = vld [vmem:[%s9609_s22 + $0x50] sm:$0xff]  ;;  %s7920_s1 = scalar_lea.vmem %s9610_s0, %s6851_s27  ;;  %s7423_s24 = sshll.u32 %s7509_s28, 4  ;;  %s7424_s24 = int_to_ptr.vmem [resolvable:$false] %s7423_s24 }
  0x96   : > { %v6389_v9 = vpack.c.bf16 %v613_v6, %v610_v4  ;;  %v6391_v10 = vpack.c.bf16 %v620_v8, %v617_v7  ;;  %v616_v11 = vld [vmem:[%s9609_s22 + $0x30] sm:$0xff]  ;;  %v619_v12 = vld [vmem:[%s9609_s22 + $0x48] sm:$0xff]  ;;  %v626_v14 = vld [vmem:[%s9609_s22 + $0x80] sm:$0xff] }
  0x97   : > { %v623_v13 = vld [vmem:[%s9609_s22 + $0x68] sm:$0xff]  ;;  %6388 = vmatprep.subr.bf16.mxu0 %v6387_v5  ;;  %v6393_v15 = vpack.c.bf16 %v619_v12, %v616_v11  ;;  %v622_v17 = vld [vmem:[%s9609_s22 + $0x60] sm:$0xff]  ;;  %v625_v18 = vld [vmem:[%s9609_s22 + $0x78] sm:$0xff] }
  0x98   : > { %6390 = vmatpush1.bf16.msra.mxu0 %v6389_v9  ;;  %v6395_v16 = vpack.c.bf16 %v626_v14, %v623_v13  ;;  %v629_v19 = vld [vmem:[%s9609_s22 + $0x98] sm:$0xff]  ;;  %v632_v20 = vld [vmem:[%s9609_s22 + $0xb0] sm:$0xff]  ;;  %v6397_v21 = vpack.c.bf16 %v625_v18, %v622_v17  ;;  %v631_v24 = vld [vmem:[%s9609_s22 + $0xa8] sm:$0xff]  ;;  %v660_v17 = vlaneseq }
  0x99   : > { %6392 = vmatprep.subr.bf16.mxu0 %v6391_v10  ;;  %v6399_v22 = vpack.c.bf16 %v632_v20, %v629_v19  ;;  %v628_v23 = vld [vmem:[%s9609_s22 + $0x90] sm:$0xff]  ;;  %v635_v25 = vld [vmem:[%s9609_s22 + $0xc8] sm:$0xff]  ;;  %v638_v26 = vld [vmem:[%s9609_s22 + $0xe0] sm:$0xff]  ;;  %s9506_s29 = scalar_lea.hbm %s9616_s21, %s5423_s26 }
  0x9a   : > { %v6401_v27 = vpack.c.bf16 %v631_v24, %v628_v23  ;;  %v634_v28 = vld [vmem:[%s9609_s22 + $0xc0] sm:$0xff]  ;;  %v612_v29 = vld [vmem:[%s9609_s22 + $0x10] sm:$0xff]  ;;  %v615_v30 = vld [vmem:[%s9609_s22 + $0x28] sm:$0xff]  ;;  %v6403_v31 = vpack.c.bf16 %v638_v26, %v635_v25  ;;  %v7960_v18 = vshrl.u32 %v660_v17, 7 }
  0x9b   : > { %v637_v32 = vld [vmem:[%s9609_s22 + $0xd8] sm:$0xff]  ;;  %v6420_v33 = vpack.c.bf16 %v615_v30, %v612_v29  ;;  %v618_v34 = vld [vmem:[%s9609_s22 + $0x40] sm:$0xff]  ;;  %v644_v37 = vld [vmem:[%s9609_s22 + $0x110] sm:$0xff] }
  0x9c   : > { %6394 = vmatpush1.bf16.msra.mxu0 %v6393_v15  ;;  %v621_v35 = vld [vmem:[%s9609_s22 + $0x58] sm:$0xff]  ;;  %v6405_v39 = vpack.c.bf16 %v637_v32, %v634_v28  ;;  %v624_v40 = vld [vmem:[%s9609_s22 + $0x70] sm:$0xff]  ;;  %v627_v41 = vld [vmem:[%s9609_s22 + $0x88] sm:$0xff]  ;;  %v7963_v19 = vsub.s32 1, %v7960_v18 }
  0x9d   : > { %6396 = vmatprep.subr.bf16.mxu0 %v6395_v16  ;;  %v641_v36 = vld [vmem:[%s9609_s22 + $0xf8] sm:$0xff]  ;;  %6421 = vmatpush3.bf16.msra.mxu1 %v6420_v33  ;;  %v6423_v38 = vpack.c.bf16 %v621_v35, %v618_v34  ;;  %v640_v43 = vld [vmem:[%s9609_s22 + $0xf0] sm:$0xff]  ;;  %v643_v44 = vld [vmem:[%s9609_s22 + $0x108] sm:$0xff]  ;;  %v6426_v47 = vpack.c.bf16 %v627_v41, %v624_v40  ;;  %v7982_v33 = vsub.s32 0, %v7960_v18 }
  0x9e   : > { %6422 = vmatprep.subr.bf16.mxu1 %v7504_v1  ;;  %v6407_v42 = vpack.c.bf16 %v644_v37, %v641_v36  ;;  %v647_v45 = vld [vmem:[%s9609_s22 + $0x128] sm:$0xff]  ;;  %v650_v46 = vld [vmem:[%s9609_s22 + $0x140] sm:$0xff]  ;;  %v6409_v48 = vpack.c.bf16 %v643_v44, %v640_v43  ;;  %v633_v50 = vld [vmem:[%s9609_s22 + $0xb8] sm:$0xff] }
  0x9f   : > { %v630_v49 = vld [vmem:[%s9609_s22 + $0xa0] sm:$0xff]  ;;  %v6411_v51 = vpack.c.bf16 %v650_v46, %v647_v45  ;;  %v649_v53 = vld [vmem:[%s9609_s22 + $0x138] sm:$0xff]  ;;  %v656_v55 = vld [vmem:[%s9609_s22 + $0x170] sm:$0xff] }
  0xa0   : > { %6398 = vmatpush1.bf16.msra.mxu0 %v6397_v21  ;;  %v646_v52 = vld [vmem:[%s9609_s22 + $0x120] sm:$0xff]  ;;  %v653_v54 = vld [vmem:[%s9609_s22 + $0x158] sm:$0xff]  ;;  %v6429_v56 = vpack.c.bf16 %v633_v50, %v630_v49  ;;  %v636_v58 = vld [vmem:[%s9609_s22 + $0xd0] sm:$0xff]  ;;  %v670_v49 = vsub.s32 2, %v7960_v18 }
  0xa1   : > { %6400 = vmatprep.subr.bf16.mxu0 %v6399_v22  ;;  %6424 = vmatpush3.bf16.msra.mxu1 %v6423_v38  ;;  %v6413_v57 = vpack.c.bf16 %v649_v53, %v646_v52  ;;  %v639_v59 = vld [vmem:[%s9609_s22 + $0xe8] sm:$0xff]  ;;  %v6415_v60 = vpack.c.bf16 %v656_v55, %v653_v54  ;;  %v652_v61 = vld [vmem:[%s9609_s22 + $0x150] sm:$0xff]  ;;  %v642_v3 = vld [vmem:[%s9609_s22 + $0x100] sm:$0xff] }
  0xa2   : > { %6425 = vmatprep.subr.bf16.mxu1 %v7504_v1  ;;  %v655_v62 = vld [vmem:[%s9609_s22 + $0x168] sm:$0xff]  ;;  %v6432_v63 = vpack.c.bf16 %v639_v59, %v636_v58  ;;  %v645_v4 = vld [vmem:[%s9609_s22 + $0x118] sm:$0xff]  ;;  %v605_v6 = vld [vmem:[%s7920_s1] sm:$0xff] }
  0xa3   : > { %v6417_v2 = vpack.c.bf16 %v655_v62, %v652_v61  ;;  %v6435_v5 = vpack.c.bf16 %v645_v4, %v642_v3  ;;  %v648_v7 = vld [vmem:[%s9609_s22 + $0x130] sm:$0xff]  ;;  %v651_v8 = vld [vmem:[%s9609_s22 + $0x148] sm:$0xff]  ;;  %v654_v11 = vld [vmem:[%s9609_s22 + $0x160] sm:$0xff] }
  0xa4   : > { %6402 = vmatpush1.bf16.msra.mxu0 %v6401_v27  ;;  %v6438_v9 = vpack.c.bf16 %v651_v8, %v648_v7  ;;  %v606_v10 = vld [vmem:[%s7920_s1 + $0x8] sm:$0xff]  ;;  %v657_v12 = vld [vmem:[%s9609_s22 + $0x178] sm:$0xff]  ;;  %v607_v14 = vld [vmem:[%s7920_s1 + $0x10] sm:$0xff] }
  0xa5   : > { %6404 = vmatprep.subr.bf16.mxu0 %v6403_v31  ;;  %6427 = vmatpush3.bf16.msra.mxu1 %v6426_v47  ;;  %v6441_v13 = vpack.c.bf16 %v657_v12, %v654_v11  ;;  %v608_v15 = vld [vmem:[%s7920_s1 + $0x18] sm:$0xff]  ;;  %v609_v16 = vld [vmem:[%s7920_s1 + $0x20] sm:$0x1] }
  0xa6   : > { %6428 = vmatprep.subr.bf16.mxu1 %v7504_v1  ;;  %v7968_v20 = vld [vmem:[%s9550_s2] sm:$0x7] }
  0xa7   : > { %v667_v23 = vrot.slane %v7968_v20, %v7963_v19  ;;  %v663_v38 = vrot.slane %v7968_v20, %v7982_v33  ;;  %v671_v52 = vrot.slane %v7968_v20, %v670_v49 }
  0xa8   : > { %6406 = vmatpush1.bf16.msra.mxu0 %v6405_v39 }
  0xa9   : > { %6408 = vmatprep.subr.bf16.mxu0 %v6407_v42  ;;  %6430 = vmatpush3.bf16.msra.mxu1 %v6429_v56 }
  0xaa   : > { %6431 = vmatprep.subr.bf16.mxu1 %v7504_v1 }
  0xac   : > { %6410 = vmatpush1.bf16.msra.mxu0 %v6409_v48 }
  0xad   : > { %6412 = vmatprep.subr.bf16.mxu0 %v6411_v51  ;;  %6433 = vmatpush3.bf16.msra.mxu1 %v6432_v63 }
  0xae   : > { %6434 = vmatprep.subr.bf16.mxu1 %v7504_v1 }
  0xb0   : > { %6414 = vmatpush1.bf16.msra.mxu0 %v6413_v57 }
  0xb1   : > { %6416 = vmatprep.subr.bf16.mxu0 %v6415_v60  ;;  %6436 = vmatpush3.bf16.msra.mxu1 %v6435_v5 }
  0xb2   : > { %6437 = vmatprep.subr.bf16.mxu1 %v7504_v1 }
  0xb4   : > { %6418 = vmatpush1.bf16.msra.mxu0 %v6417_v2 }
  0xb5   : > { %6457 = vmatprep.subr.bf16.mxu0 %v7504_v1  ;;  %6439 = vmatpush3.bf16.msra.mxu1 %v6438_v9 }
  0xb6   : > { %6440 = vmatprep.subr.bf16.mxu1 %v7504_v1 }
  0xb7   : > { %740 = vmatmul.mubr.f32.vlgmr.msra.gmra.mrb[0].mxu0 %v605_v6 }
  0xb8   : > { %745 = vmatprep.mubr.f32.mxu0 %v7503_v0 }
  0xb9   : > { %6442 = vmatpush3.bf16.msra.mxu1 %v6441_v13 }
  0xba   : > { %6443 = vmatprep.subr.bf16.mxu1 %v7504_v1 }
  0xbb   : > { %746 = vmatmul.mubr.f32.gmra.mrb[2].mxu0 %v606_v10 }
  0xbc   : > { %751 = vmatprep.mubr.f32.mxu0 %v7503_v0  ;;  %5832 = vmatmul.mubr.f32.vlgmr.msra.gmra.mrb[0].mxu1 %v605_v6 }
  0xbd   : > { %5834 = vmatprep.mubr.msk.f32.mxu1 %vm7505_vm0, %v7503_v0 }
  0xbf   : > { %752 = vmatmul.mubr.f32.gmra.mrb[4].mxu0 %v607_v14 }
  0xc0   : > { %757 = vmatprep.mubr.f32.mxu0 %v7503_v0  ;;  %5835 = vmatmul.mubr.f32.gmra.mrb[2].mxu1 %v606_v10 }
  0xc1   : > { %5837 = vmatprep.mubr.msk.f32.mxu1 %vm7505_vm0, %v7503_v0 }
  0xc3   : > { %758 = vmatmul.mubr.f32.gmra.mrb[6].mxu0 %v608_v15 }
  0xc4   : > { %763 = vmatprep.mubr.f32.mxu0 %v7503_v0  ;;  %5838 = vmatmul.mubr.f32.gmra.mrb[4].mxu1 %v607_v14 }
  0xc5   : > { %5840 = vmatprep.mubr.msk.f32.mxu1 %vm7505_vm0, %v7503_v0 }
  0xc7   : > { %764 = vmatmul.mubr.f32.gmra.mrb[8].mxu0 %v609_v16 }
  0xc8   : > { %5906 = vmatprep.mubr.msk.f32.mxu0 %vm7505_vm0, %v7503_v0  ;;  %5841 = vmatmul.mubr.f32.gmra.mrb[6].mxu1 %v608_v15 }
  0xc9   : > { %5843 = vmatprep.mubr.msk.f32.mxu1 %vm7505_vm0, %v7503_v0 }
  0xcc   : > { %5844 = vmatmul.mubr.f32.gmra.mrb[8].mxu1 %v609_v16 }
  0xcd   : > { %5856 = vmatprep.mubr.msk.f32.mxu1 %vm7505_vm0, %v7503_v0 }
 0x18a   : > { %v741_v21 = vpop.f32.mrb[0].mxu0 }
 0x18b   : > { %v743_v22 = vpop.f32.mrb[1].mxu0  ;;  %v742_v44 = vadd.f32 %v741_v21, %v663_v38 }
 0x18c   : > { %v744_v26 = vadd.f32 %v743_v22, %v667_v23 }
 0x18e   : > { %v747_v24 = vpop.f32.mrb[2].mxu0 }
 0x18f   : > { %v749_v25 = vpop.f32.mrb[3].mxu0  ;;  %v748_v45 = vadd.f32 %v747_v24, %v663_v38  ;;  %v836_v50 = vpop.f32.mrb[0].mxu1 }
 0x190   : > { %v750_v27 = vadd.f32 %v749_v25, %v667_v23  ;;  %v5833_v51 = vpop.f32.mrb[1].mxu1  ;;  %v837_v55 = vadd.f32 %v836_v50, %v671_v52 }
 0x192   : > { %v6444_v29 = vpack.c.bf16 %v750_v27, %v744_v26  ;;  %v753_v30 = vpop.f32.mrb[4].mxu0  ;;  %v6942_v31 = vpack.i.bf16 %v750_v27, %v744_v26 }
 0x193   : > { %v755_v32 = vpop.f32.mrb[5].mxu0  ;;  %v754_v47 = vadd.f32 %v753_v30, %v663_v38  ;;  %v841_v53 = vpop.f32.mrb[2].mxu1 }
 0x194   : > { %6943 = vrot.lane.b32.xlu0 %v6942_v31, %s7506_s17  ;;  %6446 = vmatpush3.bf16.xpose.msk.msra.mxu1 %vm7974_vm2, %v6444_v29  ;;  %v756_v36 = vadd.f32 %v755_v32, %v667_v23  ;;  %v5836_v54 = vpop.f32.mrb[3].mxu1  ;;  %v842_v56 = vadd.f32 %v841_v53, %v671_v52 }
 0x195   : > { %6447 = vmatprep.subr.bf16.mxu1 %v7504_v1 }
 0x196   : > { %v759_v34 = vpop.f32.mrb[6].mxu0  ;;  %v8034_v61 = vpack.i.bf16 %v842_v56, %v837_v55  ;;  %v6452_v62 = vpack.c.bf16 %v842_v56, %v837_v55 }
 0x197   : > { %v761_v35 = vpop.f32.mrb[7].mxu0  ;;  %v760_v46 = vadd.f32 %v759_v34, %v663_v38  ;;  %v846_v57 = vpop.f32.mrb[4].mxu1 }
 0x198   : > { %v762_v37 = vadd.f32 %v761_v35, %v667_v23  ;;  %v847_v58 = vadd.f32 %v846_v57, %v671_v52  ;;  %v5839_v59 = vpop.f32.mrb[5].mxu1 }
 0x19a   : > { %v6448_v39 = vpack.c.bf16 %v762_v37, %v756_v36  ;;  %v765_v40 = vpop.f32.mrb[8].mxu0  ;;  %v6947_v41 = vpack.i.bf16 %v762_v37, %v756_v36 }
 0x19b   : > { %v767_v42 = vpop.f32.mrb[9].mxu0  ;;  %v766_v48 = vadd.f32 %v765_v40, %v663_v38  ;;  %v851_v60 = vpop.f32.mrb[6].mxu1 }
 0x19c   : > { %v768_v43 = vadd.f32 %v767_v42, %v667_v23  ;;  %6948 = vrot.lane.b32.xlu0 %v6947_v41, %s7506_s17  ;;  %6450 = vmatpush3.bf16.xpose.msk.msra.mxu1 %vm7974_vm2, %v6448_v39  ;;  %v852_v63 = vadd.f32 %v851_v60, %v671_v52  ;;  %v5842_v2 = vpop.f32.mrb[7].mxu1 }
 0x19d   : > { %5854 = vmatprep.subr.mxu1 %v7503_v0 }
 0x19e   : > { %1170 = vrot.lane.b32.xlu1 %v768_v43, %s7506_s17  ;;  %v6455_v5 = vpack.c.bf16 %v852_v63, %v847_v58  ;;  %v8047_v7 = vpack.i.bf16 %v852_v63, %v847_v58 }
 0x19f   : > { %v856_v3 = vpop.f32.mrb[8].mxu1 }
 0x1a0   : > { %1152 = vrot.lane.b32.xlu0 %v742_v44, %s7506_s17  ;;  %v8038_v4 = vadd.f32 %v856_v3, %v671_v52  ;;  %v5845_v6 = vpop.f32.mrb[9].mxu1 }
 0x1a2   : > { %6953 = vrot.lane.b32.xlu1 %v6942_v31, %s7507_s18 }
 0x1a4   : > { %5855 = vmatpush3.xpose.msk.msra.mxu1 %vm860_vm1, %v768_v43  ;;  %6958 = vrot.lane.b32.xlu0 %v6947_v41, %s7507_s18 }
 0x1a5   : > { %6451 = vmatprep.subr.bf16.mxu1 %v7504_v1 }
 0x1a6   : > { %1154 = vrot.lane.b32.xlu1 %v748_v45, %s7506_s17 }
 0x1a7   : > { %5857 = vmatmul.mubr.msk.f32.vlgmr.msra.gmra.mrb[10].mxu1 %vm860_vm1, %v742_v44 }
 0x1a8   : > { %1158 = vrot.lane.b32.xlu0 %v760_v46, %s7506_s17  ;;  %5859 = vmatprep.mubr.msk.f32.mxu1 %vm7505_vm0, %v7503_v0 }
 0x1a9   : > { %6453 = vmatpush3.bf16.msra.mxu1 %v6452_v62 }
 0x1aa   : > { %1156 = vrot.lane.b32.xlu1 %v754_v47, %s7506_s17  ;;  %6454 = vmatprep.subr.bf16.mxu1 %v7504_v1 }
 0x1ab   : > { %5860 = vmatmul.mubr.msk.f32.gmra.mrb[12].mxu1 %vm860_vm1, %v748_v45 }
 0x1ac   : > { %1485 = vrot.lane.b32.xlu0 %v768_v43, %s7507_s18  ;;  %5862 = vmatprep.mubr.msk.f32.mxu1 %vm7505_vm0, %v7503_v0 }
 0x1ad   : > { %6456 = vmatpush3.bf16.msra.mxu1 %v6455_v5 }
 0x1ae   : > { %1160 = vrot.lane.b32.xlu1 %v766_v48, %s7506_s17  ;;  %5879 = vmatprep.subr.mxu1 %v7503_v0 }
 0x1af   : > { %5863 = vmatmul.mubr.msk.f32.gmra.mrb[14].mxu1 %vm860_vm1, %v754_v47 }
 0x1b0   : > { %1467 = vrot.lane.b32.xlu0 %v742_v44, %s7507_s18  ;;  %5865 = vmatprep.mubr.msk.f32.mxu1 %vm7505_vm0, %v7503_v0 }
 0x1b1   : > { %5880 = vmatpush3.msk.msra.mxu1 %vm1058_vm3, %v8038_v4 }
 0x1b2   : > { %6963 = vrot.lane.b32.xlu1 %v6942_v31, %s7508_s16  ;;  %6465 = vmatprep.subr.bf16.mxu1 %v7504_v1 }
 0x1b3   : > { %5866 = vmatmul.mubr.msk.f32.gmra.mrb[16].mxu1 %vm860_vm1, %v760_v46 }
 0x1b4   : > { %6968 = vrot.lane.b32.xlu0 %v6947_v41, %s7508_s16  ;;  %5868 = vmatprep.mubr.msk.f32.mxu1 %vm7505_vm0, %v7503_v0 }
 0x1b6   : > { %1469 = vrot.lane.b32.xlu1 %v748_v45, %s7507_s18 }
 0x1b7   : > { %5869 = vmatmul.mubr.msk.f32.gmra.mrb[18].mxu1 %vm860_vm1, %v766_v48 }
 0x1b8   : > { %1473 = vrot.lane.b32.xlu0 %v760_v46, %s7507_s18  ;;  %5881 = vmatprep.mubr.msk.f32.mxu1 %vm7505_vm0, %v7503_v0 }
 0x1ba   : > { %1471 = vrot.lane.b32.xlu1 %v754_v47, %s7507_s18 }
 0x1bc   : > { %1796 = vrot.lane.b32.xlu0 %v768_v43, %s7508_s16 }
 0x1be   : > { %1475 = vrot.lane.b32.xlu1 %v766_v48, %s7507_s18 }
 0x1c0   : > { %1780 = vrot.lane.b32.xlu0 %v748_v45, %s7508_s16 }
 0x1c2   : > { %1778 = vrot.lane.b32.xlu1 %v742_v44, %s7508_s16 }
 0x1c4   : > { %1784 = vrot.lane.b32.xlu0 %v760_v46, %s7508_s16 }
 0x1c6   : > { %1782 = vrot.lane.b32.xlu1 %v754_v47, %s7508_s16 }
 0x1ca   : > { %1786 = vrot.lane.b32.xlu1 %v766_v48, %s7508_s16 }
 0x1ce   : > { %6973 = vrot.lane.b32.xlu1 %v8034_v61, %s7506_s17 }
 0x1d2   : > { %1354 = vrot.lane.b32.xlu1 %v8038_v4, %s7506_s17 }
 0x206   : > { %v6944_v8 = vpop.permute.xlu0 %6943 }
 0x207   : > { %v6946_v9 = vunpack.i.h.bf16 %v6944_v8  ;;  %v6945_v10 = vunpack.i.l.bf16 %v6944_v8 }
 0x209   : > { %v6458_v11 = vpack.c.bf16 %v6946_v9, %v6945_v10 }
 0x20b   : > { %6460 = vmatpush3.bf16.xpose.msk.msra.mxu0 %vm7974_vm2, %v6458_v11 }
 0x20c   : > { %6461 = vmatprep.subr.bf16.mxu0 %v7504_v1 }
 0x20e   : > { %v6949_v12 = vpop.permute.xlu0 %6948 }
 0x20f   : > { %v6951_v13 = vunpack.i.h.bf16 %v6949_v12  ;;  %v6950_v14 = vunpack.i.l.bf16 %v6949_v12 }
 0x210   : > { %v1171_v15 = vpop.permute.xlu1 %1170 }
 0x211   : > { %v6462_v16 = vpack.c.bf16 %v6951_v13, %v6950_v14 }
 0x212   : > { %v1153_v17 = vpop.permute.xlu0 %1152 }
 0x213   : > { %6464 = vmatpush3.bf16.xpose.msk.msra.mxu0 %vm7974_vm2, %v6462_v16 }
 0x214   : > { %v6954_v20 = vpop.permute.xlu1 %6953  ;;  %5904 = vmatprep.subr.mxu0 %v7503_v0 }
 0x215   : > { %v6956_v22 = vunpack.i.h.bf16 %v6954_v20  ;;  %v6955_v23 = vunpack.i.l.bf16 %v6954_v20 }
 0x216   : > { %v6959_v24 = vpop.permute.xlu0 %6958 }
 0x217   : > { %v6472_v25 = vpack.c.bf16 %v6956_v22, %v6955_v23  ;;  %v6961_v29 = vunpack.i.h.bf16 %v6959_v24  ;;  %v6960_v30 = vunpack.i.l.bf16 %v6959_v24 }
 0x218   : > { %v1155_v21 = vpop.permute.xlu1 %1154 }
 0x219   : > { %v6476_v32 = vpack.c.bf16 %v6961_v29, %v6960_v30 }
 0x21a   : > { %v1159_v27 = vpop.permute.xlu0 %1158 }
 0x21b   : > { %5905 = vmatpush3.xpose.msk.msra.mxu0 %vm860_vm1, %v1171_v15 }
 0x21c   : > { %6471 = vmatprep.subr.bf16.mxu0 %v7504_v1  ;;  %v1157_v26 = vpop.permute.xlu1 %1156 }
 0x21e   : > { %5907 = vmatmul.mubr.msk.f32.vlgmr.msra.gmra.mrb[10].mxu0 %vm860_vm1, %v1153_v17  ;;  %v1486_v34 = vpop.permute.xlu0 %1485 }
 0x21f   : > { %6474 = vmatpush3.bf16.xpose.msk.msra.mxu0 %vm7974_vm2, %v6472_v25  ;;  %5909 = vmatprep.mubr.msk.f32.mxu0 %vm7505_vm0, %v7503_v0 }
 0x220   : > { %6475 = vmatprep.subr.bf16.mxu0 %v7504_v1  ;;  %v1161_v31 = vpop.permute.xlu1 %1160 }
 0x222   : > { %5910 = vmatmul.mubr.msk.f32.gmra.mrb[12].mxu0 %vm860_vm1, %v1155_v21  ;;  %v1468_v36 = vpop.permute.xlu0 %1467 }
 0x223   : > { %5912 = vmatprep.mubr.msk.f32.mxu0 %vm7505_vm0, %v7503_v0 }
 0x224   : > { %v6964_v35 = vpop.permute.xlu1 %6963 }
 0x225   : > { %v6966_v37 = vunpack.i.h.bf16 %v6964_v35  ;;  %v6965_v38 = vunpack.i.l.bf16 %v6964_v35 }
 0x226   : > { %5913 = vmatmul.mubr.msk.f32.gmra.mrb[14].mxu0 %vm860_vm1, %v1157_v26  ;;  %v6969_v40 = vpop.permute.xlu0 %6968 }
 0x227   : > { %6478 = vmatpush3.bf16.xpose.msk.msra.mxu0 %vm7974_vm2, %v6476_v32  ;;  %5915 = vmatprep.mubr.msk.f32.mxu0 %vm7505_vm0, %v7503_v0  ;;  %v6486_v39 = vpack.c.bf16 %v6966_v37, %v6965_v38  ;;  %v6971_v42 = vunpack.i.h.bf16 %v6969_v40  ;;  %v6970_v43 = vunpack.i.l.bf16 %v6969_v40 }
 0x228   : > { %5954 = vmatprep.subr.mxu0 %v7503_v0  ;;  %v1470_v41 = vpop.permute.xlu1 %1469 }
 0x229   : > { %v6490_v44 = vpack.c.bf16 %v6971_v42, %v6970_v43 }
 0x22a   : > { %5916 = vmatmul.mubr.msk.f32.gmra.mrb[16].mxu0 %vm860_vm1, %v1159_v27  ;;  %v1474_v46 = vpop.permute.xlu0 %1473 }
 0x22b   : > { %5918 = vmatprep.mubr.msk.f32.mxu0 %vm7505_vm0, %v7503_v0 }
 0x22c   : > { %v1472_v45 = vpop.permute.xlu1 %1471 }
 0x22e   : > { %5919 = vmatmul.mubr.msk.f32.gmra.mrb[18].mxu0 %vm860_vm1, %v1161_v31  ;;  %v1797_v48 = vpop.permute.xlu0 %1796 }
 0x22f   : > { %5955 = vmatpush3.xpose.msk.msra.mxu0 %vm860_vm1, %v1486_v34  ;;  %5956 = vmatprep.mubr.msk.f32.mxu0 %vm7505_vm0, %v7503_v0 }
 0x230   : > { %6485 = vmatprep.subr.bf16.mxu0 %v7504_v1  ;;  %v1476_v47 = vpop.permute.xlu1 %1475 }
 0x232   : > { %5957 = vmatmul.mubr.msk.f32.vlgmr.msra.gmra.mrb[20].mxu0 %vm860_vm1, %v1468_v36  ;;  %v1781_v51 = vpop.permute.xlu0 %1780 }
 0x233   : > { %6488 = vmatpush3.bf16.xpose.msk.msra.mxu0 %vm7974_vm2, %v6486_v39  ;;  %5959 = vmatprep.mubr.msk.f32.mxu0 %vm7505_vm0, %v7503_v0 }
 0x234   : > { %6489 = vmatprep.subr.bf16.mxu0 %v7504_v1  ;;  %v1779_v50 = vpop.permute.xlu1 %1778 }
 0x236   : > { %5960 = vmatmul.mubr.msk.f32.gmra.mrb[22].mxu0 %vm860_vm1, %v1470_v41  ;;  %v1785_v53 = vpop.permute.xlu0 %1784 }
 0x237   : > { %5962 = vmatprep.mubr.msk.f32.mxu0 %vm7505_vm0, %v7503_v0 }
 0x238   : > { %v1783_v52 = vpop.permute.xlu1 %1782 }
 0x23a   : > { %5963 = vmatmul.mubr.msk.f32.gmra.mrb[24].mxu0 %vm860_vm1, %v1472_v45 }
 0x23b   : > { %6492 = vmatpush3.bf16.xpose.msk.msra.mxu0 %vm7974_vm2, %v6490_v44  ;;  %5965 = vmatprep.mubr.msk.f32.mxu0 %vm7505_vm0, %v7503_v0 }
 0x23c   : > { %6004 = vmatprep.subr.mxu0 %v7503_v0  ;;  %v1787_v54 = vpop.permute.xlu1 %1786 }
 0x23e   : > { %5966 = vmatmul.mubr.msk.f32.gmra.mrb[26].mxu0 %vm860_vm1, %v1474_v46 }
 0x23f   : > { %5968 = vmatprep.mubr.msk.f32.mxu0 %vm7505_vm0, %v7503_v0 }
 0x240   : > { %v8162_v43 = vpop.permute.xlu1 %6973 }
 0x242   : > { %5969 = vmatmul.mubr.msk.f32.gmra.mrb[28].mxu0 %vm860_vm1, %v1476_v47 }
 0x243   : > { %6005 = vmatpush3.xpose.msk.msra.mxu0 %vm860_vm1, %v1797_v48  ;;  %6006 = vmatprep.mubr.msk.f32.mxu0 %vm7505_vm0, %v7503_v0 }
 0x244   : > { %6499 = vmatprep.subr.bf16.mxu0 %v7504_v1  ;;  %v8168_v48 = vpop.permute.xlu1 %1354 }
 0x246   : > { %6007 = vmatmul.mubr.msk.f32.vlgmr.msra.gmra.mrb[30].mxu0 %vm860_vm1, %v1779_v50 }
 0x247   : > { %6009 = vmatprep.mubr.msk.f32.mxu0 %vm7505_vm0, %v7503_v0 }
 0x24a   : > { %6010 = vmatmul.mubr.msk.f32.gmra.mrb[32].mxu0 %vm860_vm1, %v1781_v51 }
 0x24b   : > { %6012 = vmatprep.mubr.msk.f32.mxu0 %vm7505_vm0, %v7503_v0 }
 0x24e   : > { %6013 = vmatmul.mubr.msk.f32.gmra.mrb[34].mxu0 %vm860_vm1, %v1783_v52 }
 0x24f   : > { %6015 = vmatprep.mubr.msk.f32.mxu0 %vm7505_vm0, %v7503_v0 }
 0x252   : > { %6016 = vmatmul.mubr.msk.f32.gmra.mrb[36].mxu0 %vm860_vm1, %v1785_v53 }
 0x253   : > { %6018 = vmatprep.mubr.msk.f32.mxu0 %vm7505_vm0, %v7503_v0 }
 0x256   : > { %6019 = vmatmul.mubr.msk.f32.gmra.mrb[38].mxu0 %vm860_vm1, %v1787_v54 }
 0x257   : > { %6078 = vmatprep.mubr.msk.f32.mxu0 %vm7505_vm0, %v7503_v0 }
 0x27a   : > { %v957_v55 = vpop.f32.mrb[10].mxu1 }
 0x27b   : > { %v8118_v56 = vmul.f32 0.17677669, %v957_v55  ;;  %v5858_v57 = vpop.f32.mrb[11].mxu1 }
 0x27d   : > { %v987_v58 = vsel %vm986_vm4, %v8118_v56, -inf }
 0x27e   : > { %988 = vmax.xlane.f32.xlu0 %v987_v58  ;;  %v962_v59 = vpop.f32.mrb[12].mxu1 }
 0x27f   : > { %v8122_v60 = vmul.f32 0.17677669, %v962_v59  ;;  %v5861_v62 = vpop.f32.mrb[13].mxu1 }
 0x281   : > { %v990_v63 = vsel %vm986_vm4, %v8122_v60, -inf }
 0x282   : > { %991 = vmax.xlane.f32.xlu1 %v990_v63  ;;  %v967_v2 = vpop.f32.mrb[14].mxu1 }
 0x283   : > { %v5864_v3 = vpop.f32.mrb[15].mxu1  ;;  %v8132_v12 = vmul.f32 0.17677669, %v967_v2 }
 0x285   : > { %v993_v14 = vsel %vm986_vm4, %v8132_v12, -inf }
 0x286   : > { %v972_v5 = vpop.f32.mrb[16].mxu1 }
 0x287   : > { %v5867_v6 = vpop.f32.mrb[17].mxu1  ;;  %v8134_v13 = vmul.f32 0.17677669, %v972_v5 }
 0x289   : > { %v996_v15 = vsel %vm986_vm4, %v8134_v13, -inf }
 0x28a   : > { %v977_v8 = vpop.f32.mrb[18].mxu1 }
 0x28b   : > { %v8126_v9 = vmul.f32 0.17677669, %v977_v8  ;;  %v5870_v10 = vpop.f32.mrb[19].mxu1 }
 0x28d   : > { %v1000_v11 = vsel %vm999_vm5, %v8126_v9, -inf }
 0x28e   : > { %1001 = vmax.xlane.f32.xlu1 %v1000_v11 }
 0x294   : > { %6978 = vrot.lane.b32.xlu0 %v8047_v7, %s7506_s17 }
 0x2b3   : > { %994 = vmax.xlane.f32.xlu0 %v993_v14 }
 0x2b7   : > { %997 = vmax.xlane.f32.xlu0 %v996_v15 }
 0x2f1   : > { %v1258_v16 = vpop.f32.mrb[10].mxu0 }
 0x2f2   : > { %v8140_v17 = vmul.f32 0.17677669, %v1258_v16  ;;  %v5908_v20 = vpop.f32.mrb[11].mxu0 }
 0x2f4   : > { %v1287_v21 = vsel %vm986_vm4, %v8140_v17, -inf }
 0x2f5   : > { %v1263_v22 = vpop.f32.mrb[12].mxu0  ;;  %1288 = vmax.xlane.f32.xlu0 %v1287_v21 }
 0x2f6   : > { %v8144_v23 = vmul.f32 0.17677669, %v1263_v22  ;;  %v5911_v24 = vpop.f32.mrb[13].mxu0 }
 0x2f8   : > { %v1290_v25 = vsel %vm986_vm4, %v8144_v23, -inf }
 0x2f9   : > { %v1268_v26 = vpop.f32.mrb[14].mxu0  ;;  %1291 = vmax.xlane.f32.xlu1 %v1290_v25 }
 0x2fa   : > { %v8148_v27 = vmul.f32 0.17677669, %v1268_v26  ;;  %v5914_v29 = vpop.f32.mrb[15].mxu0 }
 0x2fc   : > { %v1293_v30 = vsel %vm986_vm4, %v8148_v27, -inf }
 0x2fd   : > { %v1273_v31 = vpop.f32.mrb[16].mxu0  ;;  %1294 = vmax.xlane.f32.xlu0 %v1293_v30 }
 0x2fe   : > { %v8152_v32 = vmul.f32 0.17677669, %v1273_v31  ;;  %v5917_v34 = vpop.f32.mrb[17].mxu0 }
 0x300   : > { %v1296_v35 = vsel %vm986_vm4, %v8152_v32, -inf }
 0x301   : > { %v1278_v36 = vpop.f32.mrb[18].mxu0  ;;  %1297 = vmax.xlane.f32.xlu1 %v1296_v35 }
 0x302   : > { %v8156_v37 = vmul.f32 0.17677669, %v1278_v36  ;;  %v5920_v38 = vpop.f32.mrb[19].mxu0 }
 0x304   : > { %v1299_v39 = vsel %vm999_vm5, %v8156_v37, -inf }
 0x305   : > { %v1573_v40 = vpop.f32.mrb[20].mxu0  ;;  %1300 = vmax.xlane.f32.xlu0 %v1299_v39 }
 0x306   : > { %v8160_v41 = vmul.f32 0.17677669, %v1573_v40  ;;  %v5958_v42 = vpop.f32.mrb[21].mxu0 }
 0x308   : > { %v1602_v44 = vsel %vm986_vm4, %v8160_v41, -inf }
 0x309   : > { %v1578_v45 = vpop.f32.mrb[22].mxu0  ;;  %1603 = vmax.xlane.f32.xlu1 %v1602_v44 }
 0x30a   : > { %v8166_v46 = vmul.f32 0.17677669, %v1578_v45  ;;  %v5961_v47 = vpop.f32.mrb[23].mxu0 }
 0x30b   : > { %v989_v50 = vpop.xlane.xlu0 %988 }
 0x30c   : > { %v1003_v51 = vsub.f32 %v8118_v56, %v989_v50  ;;  %v1605_v52 = vsel %vm986_vm4, %v8166_v46, -inf }
 0x30d   : > { %v1583_v53 = vpop.f32.mrb[24].mxu0  ;;  %1606 = vmax.xlane.f32.xlu0 %v1605_v52 }
 0x30e   : > { %v1008_v54 = vmul.f32 1.442695, %v1003_v51  ;;  %v8173_v55 = vmul.f32 0.17677669, %v1583_v53  ;;  %v5964_v57 = vpop.f32.mrb[25].mxu0 }
 0x30f   : > { %v992_v58 = vpop.xlane.xlu1 %991  ;;  %v8206_v44 = vpop.permute.xlu0 %6978 }
 0x310   : > { %7102 = vpow2.f32 %v1008_v54  ;;  %v1004_v59 = vsub.f32 %v8122_v60, %v992_v58  ;;  %v1608_v63 = vsel %vm986_vm4, %v8173_v55, -inf }
 0x311   : > { %v1588_v62 = vpop.f32.mrb[26].mxu0  ;;  %1609 = vmax.xlane.f32.xlu1 %v1608_v63 }
 0x312   : > { %v1010_v2 = vmul.f32 1.442695, %v1004_v59  ;;  %v8178_v3 = vmul.f32 0.17677669, %v1588_v62  ;;  %v5967_v56 = vpop.f32.mrb[27].mxu0 }
 0x314   : > { %7104 = vpow2.f32 %v1010_v2  ;;  %v1611_v5 = vsel %vm986_vm4, %v8178_v3, -inf }
 0x315   : > { %v1593_v6 = vpop.f32.mrb[28].mxu0  ;;  %1612 = vmax.xlane.f32.xlu0 %v1611_v5 }
 0x316   : > { %v8182_v8 = vmul.f32 0.17677669, %v1593_v6  ;;  %v5970_v10 = vpop.f32.mrb[29].mxu0 }
 0x318   : > { %v1614_v60 = vsel %vm999_vm5, %v8182_v8, -inf }
 0x319   : > { %v1884_v11 = vpop.f32.mrb[30].mxu0  ;;  %1615 = vmax.xlane.f32.xlu1 %v1614_v60 }
 0x31a   : > { %v8186_v14 = vpop.eup %7102  ;;  %v8188_v15 = vmul.f32 0.17677669, %v1884_v11  ;;  %v6008_v16 = vpop.f32.mrb[31].mxu0 }
 0x31b   : > { %v1018_v20 = vsel %vm986_vm4, %v8186_v14, 0.0  ;;  %v1002_v2 = vpop.xlane.xlu1 %1001 }
 0x31c   : > { %v1913_v21 = vsel %vm986_vm4, %v8188_v15, -inf  ;;  %v1007_v56 = vsub.f32 %v8126_v9, %v1002_v2 }
 0x31d   : > { %v1889_v22 = vpop.f32.mrb[32].mxu0  ;;  %1914 = vmax.xlane.f32.xlu0 %v1913_v21  ;;  %1019 = vadd.xlane.f32.xlu1 %v1018_v20 }
 0x31e   : > { %v8194_v24 = vpop.eup %7104  ;;  %v8196_v25 = vmul.f32 0.17677669, %v1889_v22  ;;  %v6011_v26 = vpop.f32.mrb[33].mxu0  ;;  %v1016_v5 = vmul.f32 1.442695, %v1007_v56 }
 0x31f   : > { %v1021_v29 = vsel %vm986_vm4, %v8194_v24, 0.0 }
 0x320   : > { %v1916_v30 = vsel %vm986_vm4, %v8196_v25, -inf }
 0x321   : > { %v1894_v31 = vpop.f32.mrb[34].mxu0  ;;  %1022 = vadd.xlane.f32.xlu0 %v1021_v29  ;;  %1917 = vmax.xlane.f32.xlu1 %v1916_v30 }
 0x322   : > { %v8202_v34 = vmul.f32 0.17677669, %v1894_v31  ;;  %v6014_v35 = vpop.f32.mrb[35].mxu0 }
 0x324   : > { %v1919_v36 = vsel %vm986_vm4, %v8202_v34, -inf }
 0x325   : > { %v1899_v38 = vpop.f32.mrb[36].mxu0  ;;  %1920 = vmax.xlane.f32.xlu0 %v1919_v36 }
 0x326   : > { %v6017_v39 = vpop.f32.mrb[37].mxu0  ;;  %v8212_v57 = vmul.f32 0.17677669, %v1899_v38 }
 0x329   : > { %v1904_v40 = vpop.f32.mrb[38].mxu0 }
 0x32a   : > { %v6020_v42 = vpop.f32.mrb[39].mxu0  ;;  %v8218_v62 = vmul.f32 0.17677669, %v1904_v40 }
 0x32c   : > { %v1925_v63 = vsel %vm999_vm5, %v8218_v62, -inf }
 0x340   : > { %v995_v45 = vpop.xlane.xlu0 %994 }
 0x341   : > { %v1005_v47 = vsub.f32 %v8132_v12, %v995_v45 }
 0x343   : > { %v1012_v50 = vmul.f32 1.442695, %v1005_v47 }
 0x344   : > { %v998_v51 = vpop.xlane.xlu0 %997 }
 0x345   : > { %7106 = vpow2.f32 %v1012_v50  ;;  %v1006_v52 = vsub.f32 %v8134_v13, %v998_v51  ;;  %v1922_v13 = vsel %vm986_vm4, %v8212_v57, -inf }
 0x347   : > { %v1014_v53 = vmul.f32 1.442695, %v1006_v52 }
 0x349   : > { %7108 = vpow2.f32 %v1014_v53 }
 0x34a   : > { %7110 = vpow2.f32 %v1016_v5 }
 0x34f   : > { %v8210_v54 = vpop.eup %7106 }
 0x350   : > { %v1024_v58 = vsel %vm986_vm4, %v8210_v54, 0.0 }
 0x351   : > { %1025 = vadd.xlane.f32.xlu1 %v1024_v58 }
 0x353   : > { %v8216_v59 = vpop.eup %7108 }
 0x354   : > { %v1027_v12 = vsel %vm986_vm4, %v8216_v59, 0.0  ;;  %v8235_v21 = vpop.eup %7110 }
 0x355   : > { %1028 = vadd.xlane.f32.xlu0 %v1027_v12  ;;  %1923 = vmax.xlane.f32.xlu1 %v1922_v13  ;;  %v1030_v9 = vsel %vm999_vm5, %v8235_v21, 0.0 }
 0x359   : > { %1926 = vmax.xlane.f32.xlu0 %v1925_v63 }
 0x366   : > { %6988 = vrot.lane.b32.xlu1 %v8047_v7, %s7507_s18 }
 0x36a   : > { %1665 = vrot.lane.b32.xlu1 %v8038_v4, %s7507_s18 }
 0x36f   : > { %6983 = vrot.lane.b32.xlu0 %v8034_v61, %s7507_s18 }
 0x382   : > { %v1289_v6 = vpop.xlane.xlu0 %1288 }
 0x383   : > { %v1302_v10 = vsub.f32 %v8140_v17, %v1289_v6 }
 0x385   : > { %v1307_v60 = vmul.f32 1.442695, %v1302_v10 }
 0x386   : > { %v1292_v11 = vpop.xlane.xlu1 %1291 }
 0x387   : > { %7112 = vpow2.f32 %v1307_v60  ;;  %v1303_v16 = vsub.f32 %v8144_v23, %v1292_v11 }
 0x389   : > { %v1309_v20 = vmul.f32 1.442695, %v1303_v16 }
 0x38a   : > { %v1295_v22 = vpop.xlane.xlu0 %1294 }
 0x38b   : > { %7114 = vpow2.f32 %v1309_v20  ;;  %v1304_v26 = vsub.f32 %v8148_v27, %v1295_v22 }
 0x38d   : > { %v1311_v29 = vmul.f32 1.442695, %v1304_v26 }
 0x38e   : > { %1031 = vadd.xlane.f32.xlu1 %v1030_v9  ;;  %v1298_v30 = vpop.xlane.xlu1 %1297 }
 0x38f   : > { %7116 = vpow2.f32 %v1311_v29  ;;  %v1305_v17 = vsub.f32 %v8152_v32, %v1298_v30 }
 0x391   : > { %v8241_v31 = vpop.eup %7112  ;;  %v1313_v35 = vmul.f32 1.442695, %v1305_v17 }
 0x392   : > { %v1301_v23 = vpop.xlane.xlu0 %1300  ;;  %v1317_v36 = vsel %vm986_vm4, %v8241_v31, 0.0 }
 0x393   : > { %7118 = vpow2.f32 %v1313_v35  ;;  %v1306_v38 = vsub.f32 %v8156_v37, %v1301_v23  ;;  %1318 = vadd.xlane.f32.xlu0 %v1317_v36  ;;  %v6975_v23 = vunpack.i.l.bf16 %v8162_v43 }
 0x395   : > { %v8246_v27 = vpop.eup %7114  ;;  %v1315_v39 = vmul.f32 1.442695, %v1306_v38 }
 0x396   : > { %v1320_v40 = vsel %vm986_vm4, %v8246_v27, 0.0  ;;  %v8254_v47 = vpop.xlane.xlu1 %1603 }
 0x397   : > { %7120 = vpow2.f32 %v1315_v39  ;;  %1321 = vadd.xlane.f32.xlu1 %v1320_v40 }
 0x399   : > { %v8250_v32 = vpop.eup %7116 }
 0x39a   : > { %v1607_v42 = vpop.xlane.xlu0 %1606  ;;  %v1323_v45 = vsel %vm986_vm4, %v8250_v32, 0.0 }
 0x39b   : > { %v1618_v50 = vsub.f32 %v8166_v46, %v1607_v42  ;;  %1324 = vadd.xlane.f32.xlu0 %v1323_v45  ;;  %v6981_v45 = vunpack.i.h.bf16 %v8206_v44 }
 0x39d   : > { %v8257_v37 = vpop.eup %7118  ;;  %v1624_v51 = vmul.f32 1.442695, %v1618_v50 }
 0x39e   : > { %v1326_v52 = vsel %vm986_vm4, %v8257_v37, 0.0  ;;  %v1610_v53 = vpop.xlane.xlu1 %1609 }
 0x39f   : > { %7122 = vpow2.f32 %v1624_v51  ;;  %1327 = vadd.xlane.f32.xlu1 %v1326_v52  ;;  %v1619_v58 = vsub.f32 %v8173_v55, %v1610_v53 }
 0x3a1   : > { %v8262_v12 = vpop.eup %7120  ;;  %v1626_v13 = vmul.f32 1.442695, %v1619_v58 }
 0x3a2   : > { %v1613_v63 = vpop.xlane.xlu0 %1612  ;;  %v1329_v2 = vsel %vm999_vm5, %v8262_v12, 0.0 }
 0x3a3   : > { %v1620_v46 = vsub.f32 %v8178_v3, %v1613_v63  ;;  %1330 = vadd.xlane.f32.xlu0 %v1329_v2  ;;  %7124 = vpow2.f32 %v1626_v13 }
 0x3a5   : > { %v1628_v56 = vmul.f32 1.442695, %v1620_v46 }
 0x3a6   : > { %v1616_v5 = vpop.xlane.xlu1 %1615 }
 0x3a7   : > { %7126 = vpow2.f32 %v1628_v56  ;;  %v1621_v6 = vsub.f32 %v8182_v8, %v1616_v5 }
 0x3a9   : > { %v8268_v10 = vpop.eup %7122  ;;  %v1630_v60 = vmul.f32 1.442695, %v1621_v6 }
 0x3aa   : > { %v1915_v55 = vpop.xlane.xlu0 %1914  ;;  %v1020_v11 = vpop.xlane.xlu1 %1019  ;;  %v1635_v16 = vsel %vm986_vm4, %v8268_v10, 0.0 }
 0x3ab   : > { %7128 = vpow2.f32 %v1630_v60  ;;  %1636 = vadd.xlane.f32.xlu0 %v1635_v16  ;;  %v1928_v58 = vsub.f32 %v8188_v15, %v1915_v55 }
 0x3ac   : > { %7130 = vrcp.f32 %v1020_v11 }
 0x3ad   : > { %v8272_v20 = vpop.eup %7124 }
 0x3ae   : > { %v1023_v3 = vpop.xlane.xlu0 %1022  ;;  %v1918_v22 = vpop.xlane.xlu1 %1917  ;;  %v1638_v8 = vsel %vm986_vm4, %v8272_v20, 0.0 }
 0x3af   : > { %v1929_v26 = vsub.f32 %v8196_v25, %v1918_v22  ;;  %7132 = vrcp.f32 %v1023_v3  ;;  %1639 = vadd.xlane.f32.xlu0 %v1638_v8  ;;  %v6976_v25 = vunpack.i.h.bf16 %v8162_v43 }
 0x3b0   : > { %6993 = vrot.lane.b32.xlu1 %v8034_v61, %s7508_s16 }
 0x3b1   : > { %v8279_v29 = vpop.eup %7126  ;;  %v1935_v9 = vmul.f32 1.442695, %v1929_v26  ;;  %v6466_v42 = vpack.c.bf16 %v6976_v25, %v6975_v23 }
 0x3b2   : > { %v1921_v30 = vpop.xlane.xlu0 %1920  ;;  %v1641_v17 = vsel %vm986_vm4, %v8279_v29, 0.0 }
 0x3b3   : > { %7134 = vpow2.f32 %v1935_v9  ;;  %v1930_v35 = vsub.f32 %v8202_v34, %v1921_v30  ;;  %1642 = vadd.xlane.f32.xlu0 %v1641_v17  ;;  %v6980_v34 = vunpack.i.l.bf16 %v8206_v44  ;;  %v1617_v44 = vsub.f32 %v8160_v41, %v8254_v47 }
 0x3b4   : > { %v1933_v47 = vmul.f32 1.442695, %v1928_v58 }
 0x3b5   : > { %v8286_v36 = vpop.eup %7128  ;;  %v1937_v38 = vmul.f32 1.442695, %v1930_v35  ;;  %v6469_v51 = vpack.c.bf16 %v6981_v45, %v6980_v34 }
 0x3b6   : > { %v7131_v39 = vpop.eup %7130  ;;  %v1644_v61 = vsel %vm999_vm5, %v8286_v36, 0.0 }
 0x3b7   : > { %v1034_v40 = vmul.f32 %v7131_v39, %v8186_v14  ;;  %7136 = vpow2.f32 %v1937_v38  ;;  %1645 = vadd.xlane.f32.xlu0 %v1644_v61 }
 0x3b9   : > { %5882 = vmatmul.mubr.msk.f32.vlgmr.msra.gmra.mrb[20].mxu1 %vm986_vm4, %v1034_v40  ;;  %v7133_v43 = vpop.eup %7132 }
 0x3ba   : > { %6467 = vmatpush3.bf16.msra.mxu1 %v6466_v42  ;;  %5884 = vmatprep.mubr.msk.f32.mxu1 %vm7505_vm0, %v7503_v0  ;;  %v1036_v50 = vmul.f32 %v7133_v43, %v8194_v24  ;;  %v1622_v24 = vmul.f32 1.442695, %v1617_v44 }
 0x3bb   : > { %6468 = vmatprep.subr.bf16.mxu1 %v7504_v1 }
 0x3bc   : > { %7138 = vpow2.f32 %v1622_v24 }
 0x3bd   : > { %v8298_v14 = vpop.eup %7134  ;;  %5885 = vmatmul.mubr.msk.f32.gmra.mrb[22].mxu1 %vm986_vm4, %v1036_v50  ;;  %7140 = vpow2.f32 %v1933_v47 }
 0x3be   : > { %6470 = vmatpush3.bf16.msra.mxu1 %v6469_v51  ;;  %v1946_v52 = vsel %vm986_vm4, %v8298_v14, 0.0  ;;  %5887 = vmatprep.mubr.msk.f32.mxu1 %vm7505_vm0, %v7503_v0 }
 0x3bf   : > { %5929 = vmatprep.subr.mxu1 %v7503_v0  ;;  %1947 = vadd.xlane.f32.xlu0 %v1946_v52 }
 0x3c1   : > { %v8308_v53 = vpop.eup %7136 }
 0x3c2   : > { %5930 = vmatpush3.msk.msra.mxu1 %vm1058_vm3, %v8168_v48  ;;  %v1949_v41 = vsel %vm986_vm4, %v8308_v53, 0.0 }
 0x3c3   : > { %1950 = vadd.xlane.f32.xlu0 %v1949_v41  ;;  %6479 = vmatprep.subr.bf16.mxu1 %v7504_v1 }
 0x3c6   : > { %v8316_v13 = vpop.eup %7138 }
 0x3c7   : > { %v1632_v63 = vsel %vm986_vm4, %v8316_v13, 0.0  ;;  %v8320_v2 = vpop.eup %7140 }
 0x3c8   : > { %v1943_v48 = vsel %vm986_vm4, %v8320_v2, 0.0 }
 0x3d4   : > { %1633 = vadd.xlane.f32.xlu1 %v1632_v63 }
 0x3d8   : > { %1944 = vadd.xlane.f32.xlu1 %v1943_v48 }
 0x3de   : > { %v1026_v15 = vpop.xlane.xlu1 %1025 }
 0x3df   : > { %7142 = vrcp.f32 %v1026_v15 }
 0x3e2   : > { %v1029_v46 = vpop.xlane.xlu0 %1028  ;;  %v1924_v56 = vpop.xlane.xlu1 %1923 }
 0x3e3   : > { %7144 = vrcp.f32 %v1029_v46  ;;  %v1931_v5 = vsub.f32 %v8212_v57, %v1924_v56 }
 0x3e5   : > { %v1939_v6 = vmul.f32 1.442695, %v1931_v5 }
 0x3e6   : > { %v1927_v60 = vpop.xlane.xlu0 %1926 }
 0x3e7   : > { %7146 = vpow2.f32 %v1939_v6  ;;  %v1932_v55 = vsub.f32 %v8218_v62, %v1927_v60 }
 0x3e9   : > { %v7143_v11 = vpop.eup %7142  ;;  %v1941_v16 = vmul.f32 1.442695, %v1932_v55  ;;  %6998 = vrot.lane.b32.xlu1 %v8047_v7, %s7508_s16 }
 0x3ea   : > { %v1038_v3 = vmul.f32 %v7143_v11, %v8210_v54  ;;  %v6984_v30 = vpop.permute.xlu0 %6983 }
 0x3eb   : > { %7148 = vpow2.f32 %v1941_v16  ;;  %v6986_v39 = vunpack.i.h.bf16 %v6984_v30  ;;  %v6985_v61 = vunpack.i.l.bf16 %v6984_v30 }
 0x3ec   : > { %5888 = vmatmul.mubr.msk.f32.gmra.mrb[24].mxu1 %vm986_vm4, %v1038_v3 }
 0x3ed   : > { %v7145_v22 = vpop.eup %7144  ;;  %5890 = vmatprep.mubr.msk.f32.mxu1 %vm7505_vm0, %v7503_v0  ;;  %v6480_v43 = vpack.c.bf16 %v6986_v39, %v6985_v61 }
 0x3ee   : > { %v1040_v57 = vmul.f32 %v7145_v22, %v8216_v59  ;;  %v6989_v59 = vpop.permute.xlu1 %6988 }
 0x3ef   : > { %v6991_v45 = vunpack.i.h.bf16 %v6989_v59  ;;  %v6990_v34 = vunpack.i.l.bf16 %v6989_v59 }
 0x3f0   : > { %5891 = vmatmul.mubr.msk.f32.gmra.mrb[26].mxu1 %vm986_vm4, %v1040_v57 }
 0x3f1   : > { %v8334_v26 = vpop.eup %7146  ;;  %5893 = vmatprep.mubr.msk.f32.mxu1 %vm7505_vm0, %v7503_v0  ;;  %v6483_v44 = vpack.c.bf16 %v6991_v45, %v6990_v34 }
 0x3f2   : > { %v1952_v7 = vsel %vm986_vm4, %v8334_v26, 0.0  ;;  %v1666_v8 = vpop.permute.xlu1 %1665 }
 0x3f3   : > { %1953 = vadd.xlane.f32.xlu0 %v1952_v7 }
 0x3f5   : > { %v8340_v54 = vpop.eup %7148 }
 0x3f6   : > { %v1955_v62 = vsel %vm999_vm5, %v8340_v54, 0.0 }
 0x3f7   : > { %1956 = vadd.xlane.f32.xlu0 %v1955_v62 }
 0x40d   : > { %1976 = vrot.lane.b32.xlu0 %v8038_v4, %s7508_s16 }
 0x41b   : > { %v1032_v9 = vpop.xlane.xlu1 %1031 }
 0x41c   : > { %7150 = vrcp.f32 %v1032_v9 }
 0x420   : > { %v1319_v17 = vpop.xlane.xlu0 %1318 }
 0x421   : > { %7152 = vrcp.f32 %v1319_v17 }
 0x424   : > { %v1322_v35 = vpop.xlane.xlu1 %1321 }
 0x425   : > { %7154 = vrcp.f32 %v1322_v35 }
 0x426   : > { %v7151_v25 = vpop.eup %7150 }
 0x427   : > { %v1042_v23 = vmul.f32 %v7151_v25, %v8235_v21 }
 0x428   : > { %v1325_v38 = vpop.xlane.xlu0 %1324 }
 0x429   : > { %7156 = vrcp.f32 %v1325_v38  ;;  %5894 = vmatmul.mubr.msk.f32.gmra.mrb[28].mxu1 %vm986_vm4, %v1042_v23 }
 0x42a   : > { %5931 = vmatprep.mubr.msk.f32.mxu1 %vm7505_vm0, %v7503_v0 }
 0x42b   : > { %v7153_v4 = vpop.eup %7152 }
 0x42c   : > { %v1333_v40 = vmul.f32 %v7153_v4, %v8241_v31  ;;  %v1328_v42 = vpop.xlane.xlu1 %1327 }
 0x42d   : > { %7158 = vrcp.f32 %v1328_v42 }
 0x42e   : > { %5932 = vmatmul.mubr.msk.f32.vlgmr.msra.gmra.mrb[30].mxu1 %vm986_vm4, %v1333_v40 }
 0x42f   : > { %v7155_v21 = vpop.eup %7154  ;;  %6481 = vmatpush3.bf16.msra.mxu1 %v6480_v43  ;;  %5934 = vmatprep.mubr.msk.f32.mxu1 %vm7505_vm0, %v7503_v0 }
 0x430   : > { %v1331_v50 = vpop.xlane.xlu0 %1330  ;;  %6482 = vmatprep.subr.bf16.mxu1 %v7504_v1  ;;  %v1335_v51 = vmul.f32 %v7155_v21, %v8246_v27  ;;  %v6994_v47 = vpop.permute.xlu1 %6993 }
 0x431   : > { %7160 = vrcp.f32 %v1331_v50  ;;  %v6996_v46 = vunpack.i.h.bf16 %v6994_v47  ;;  %v6995_v56 = vunpack.i.l.bf16 %v6994_v47 }
 0x432   : > { %5935 = vmatmul.mubr.msk.f32.gmra.mrb[32].mxu1 %vm986_vm4, %v1335_v51 }
 0x433   : > { %v7157_v31 = vpop.eup %7156  ;;  %6484 = vmatpush3.bf16.msra.mxu1 %v6483_v44  ;;  %5937 = vmatprep.mubr.msk.f32.mxu1 %vm7505_vm0, %v7503_v0  ;;  %v6494_v11 = vpack.c.bf16 %v6996_v46, %v6995_v56  ;;  %v2166_v44 = vld [vmem:[%s9551_s3] sm:$0xff]  ;;  %v2168_v46 = vld [vmem:[%s9551_s3 + $0x10] sm:$0xff]  ;;  %v2169_v56 = vld [vmem:[%s9551_s3 + $0x18] sm:$0xff] }
 0x434   : > { %5979 = vmatprep.subr.mxu1 %v7503_v0  ;;  %v1337_v52 = vmul.f32 %v7157_v31, %v8250_v32 }
 0x436   : > { %5938 = vmatmul.mubr.msk.f32.gmra.mrb[34].mxu1 %vm986_vm4, %v1337_v52 }
 0x437   : > { %v7159_v24 = vpop.eup %7158  ;;  %5980 = vmatpush3.msk.msra.mxu1 %vm1058_vm3, %v1666_v8  ;;  %5940 = vmatprep.mubr.msk.f32.mxu1 %vm7505_vm0, %v7503_v0 }
 0x438   : > { %v1339_v27 = vmul.f32 %v7159_v24, %v8257_v37  ;;  %6493 = vmatprep.subr.bf16.mxu1 %v7504_v1  ;;  %v1637_v41 = vpop.xlane.xlu0 %1636 }
 0x43a   : > { %5941 = vmatmul.mubr.msk.f32.gmra.mrb[36].mxu1 %vm986_vm4, %v1339_v27 }
 0x43b   : > { %v7161_v58 = vpop.eup %7160  ;;  %5943 = vmatprep.mubr.msk.f32.mxu1 %vm7505_vm0, %v7503_v0 }
 0x43c   : > { %v1341_v32 = vmul.f32 %v7161_v58, %v8262_v12  ;;  %v1640_v63 = vpop.xlane.xlu0 %1639 }
 0x43e   : > { %5944 = vmatmul.mubr.msk.f32.gmra.mrb[38].mxu1 %vm986_vm4, %v1341_v32 }
 0x43f   : > { %5981 = vmatprep.mubr.msk.f32.mxu1 %vm7505_vm0, %v7503_v0 }
 0x440   : > { %v1643_v15 = vpop.xlane.xlu0 %1642 }
 0x444   : > { %v1646_v12 = vpop.xlane.xlu0 %1645 }
 0x44c   : > { %v1948_v59 = vpop.xlane.xlu0 %1947 }
 0x450   : > { %v1951_v9 = vpop.xlane.xlu0 %1950 }
 0x461   : > { %v1634_v48 = vpop.xlane.xlu1 %1633 }
 0x462   : > { %7162 = vrcp.f32 %v1634_v48 }
 0x463   : > { %7164 = vrcp.f32 %v1637_v41 }
 0x464   : > { %7166 = vrcp.f32 %v1640_v63 }
 0x465   : > { %v1945_v37 = vpop.xlane.xlu1 %1944  ;;  %7168 = vrcp.f32 %v1643_v15 }
 0x466   : > { %7170 = vrcp.f32 %v1646_v12  ;;  %v2171_v12 = vld [vmem:[%s9551_s3 + $0x28] sm:$0xff] }
 0x467   : > { %7172 = vrcp.f32 %v1945_v37 }
 0x468   : > { %7174 = vrcp.f32 %v1948_v59 }
 0x469   : > { %v6999_v5 = vpop.permute.xlu1 %6998  ;;  %7176 = vrcp.f32 %v1951_v9  ;;  %v2177_v9 = vld [vmem:[%s9551_s3 + $0x58] sm:$0xff] }
 0x46a   : > { %v7001_v16 = vunpack.i.h.bf16 %v6999_v5  ;;  %v7000_v3 = vunpack.i.l.bf16 %v6999_v5  ;;  %v2170_v5 = vld [vmem:[%s9551_s3 + $0x20] sm:$0xff] }
 0x46c   : > { %v7163_v6 = vpop.eup %7162  ;;  %v6497_v7 = vpack.c.bf16 %v7001_v16, %v7000_v3 }
 0x46d   : > { %v1648_v60 = vmul.f32 %v7163_v6, %v8316_v13  ;;  %v7165_v55 = vpop.eup %7164  ;;  %v6503_v6 = vpack.c.bf16 %v2169_v56, %v2168_v46 }
 0x46e   : > { %v1650_v22 = vmul.f32 %v7165_v55, %v8268_v10  ;;  %v7167_v57 = vpop.eup %7166  ;;  %v2172_v55 = vld [vmem:[%s9551_s3 + $0x30] sm:$0xff] }
 0x46f   : > { %5982 = vmatmul.mubr.msk.f32.vlgmr.msra.gmra.mrb[40].mxu1 %vm986_vm4, %v1648_v60  ;;  %v1652_v13 = vmul.f32 %v7167_v57, %v8272_v20  ;;  %v7169_v62 = vpop.eup %7168  ;;  %v6506_v60 = vpack.c.bf16 %v2171_v12, %v2170_v5  ;;  %v2174_v57 = vld [vmem:[%s9551_s3 + $0x40] sm:$0xff] }
 0x470   : > { %6495 = vmatpush3.bf16.msra.mxu1 %v6494_v11  ;;  %5984 = vmatprep.mubr.msk.f32.mxu1 %vm7505_vm0, %v7503_v0  ;;  %v1654_v10 = vmul.f32 %v7169_v62, %v8279_v29  ;;  %v7171_v8 = vpop.eup %7170  ;;  %v2173_v11 = vld [vmem:[%s9551_s3 + $0x38] sm:$0xff] }
 0x471   : > { %6496 = vmatprep.subr.bf16.mxu1 %v7504_v1  ;;  %v1656_v20 = vmul.f32 %v7171_v8, %v8286_v36  ;;  %v7173_v29 = vpop.eup %7172  ;;  %v2176_v8 = vld [vmem:[%s9551_s3 + $0x50] sm:$0xff] }
 0x472   : > { %v1959_v35 = vmul.f32 %v7173_v29, %v8320_v2  ;;  %v7175_v23 = vpop.eup %7174  ;;  %v2178_v29 = vld [vmem:[%s9551_s3 + $0x60] sm:$0xff] }
 0x473   : > { %5985 = vmatmul.mubr.msk.f32.gmra.mrb[42].mxu1 %vm986_vm4, %v1650_v22  ;;  %v1961_v38 = vmul.f32 %v7175_v23, %v8298_v14  ;;  %v7177_v39 = vpop.eup %7176  ;;  %v6509_v22 = vpack.c.bf16 %v2173_v11, %v2172_v55 }
 0x474   : > { %6498 = vmatpush3.bf16.msra.mxu1 %v6497_v7  ;;  %5987 = vmatprep.mubr.msk.f32.mxu1 %vm7505_vm0, %v7503_v0  ;;  %v1963_v4 = vmul.f32 %v7177_v39, %v8308_v53  ;;  %v2175_v7 = vld [vmem:[%s9551_s3 + $0x48] sm:$0xff] }
 0x475   : > { %6029 = vmatprep.subr.mxu1 %v7503_v0 }
 0x477   : > { %5988 = vmatmul.mubr.msk.f32.gmra.mrb[44].mxu1 %vm986_vm4, %v1652_v13 }
 0x478   : > { %5990 = vmatprep.mubr.msk.f32.mxu1 %vm7505_vm0, %v7503_v0 }
 0x47b   : > { %5991 = vmatmul.mubr.msk.f32.gmra.mrb[46].mxu1 %vm986_vm4, %v1654_v10  ;;  %v6512_v10 = vpack.c.bf16 %v2175_v7, %v2174_v57 }
 0x47c   : > { %5993 = vmatprep.mubr.msk.f32.mxu1 %vm7505_vm0, %v7503_v0 }
 0x47f   : > { %5994 = vmatmul.mubr.msk.f32.gmra.mrb[48].mxu1 %vm986_vm4, %v1656_v20 }
 0x480   : > { %v1954_v30 = vpop.xlane.xlu0 %1953  ;;  %6031 = vmatprep.mubr.msk.f32.mxu1 %vm7505_vm0, %v7503_v0 }
 0x481   : > { %7178 = vrcp.f32 %v1954_v30 }
 0x484   : > { %v1957_v17 = vpop.xlane.xlu0 %1956 }
 0x485   : > { %7180 = vrcp.f32 %v1957_v17  ;;  %v6515_v17 = vpack.c.bf16 %v2177_v9, %v2176_v8 }
 0x488   : > { %v1977_v25 = vpop.permute.xlu0 %1976 }
 0x489   : > { %6030 = vmatpush3.msk.msra.mxu1 %vm1058_vm3, %v1977_v25 }
 0x48a   : > { %6032 = vmatmul.mubr.msk.f32.vlgmr.msra.gmra.mrb[50].mxu1 %vm986_vm4, %v1959_v35  ;;  %v2179_v35 = vld [vmem:[%s9551_s3 + $0x68] sm:$0xff] }
 0x48b   : > { %6034 = vmatprep.mubr.msk.f32.mxu1 %vm7505_vm0, %v7503_v0  ;;  %v7179_v40 = vpop.eup %7178 }
 0x48c   : > { %v8401_v36 = vpop.f32.mrb[20].mxu1  ;;  %v1965_v14 = vmul.f32 %v7179_v40, %v8334_v26  ;;  %v2181_v40 = vld [vmem:[%s9551_s3 + $0x78] sm:$0xff] }
 0x48d   : > { %v5883_v61 = vpop.f32.mrb[21].mxu1 }
 0x48e   : > { %6035 = vmatmul.mubr.msk.f32.gmra.mrb[52].mxu1 %vm986_vm4, %v1961_v38  ;;  %v6518_v38 = vpack.c.bf16 %v2179_v35, %v2178_v29  ;;  %v7302_v35 = vld [vmem:[%s7920_s1] sm:$0xff] }
 0x48f   : > { %6037 = vmatprep.mubr.msk.f32.mxu1 %vm7505_vm0, %v7503_v0  ;;  %v7181_v45 = vpop.eup %7180 }
 0x490   : > { %v8407_v2 = vpop.f32.mrb[22].mxu1  ;;  %v1967_v34 = vmul.f32 %v7181_v45, %v8340_v54  ;;  %v2167_v54 = vld [vmem:[%s9551_s3 + $0x8] sm:$0xff] }
 0x491   : > { %v5886_v42 = vpop.f32.mrb[23].mxu1  ;;  %v6500_v31 = vpack.c.bf16 %v2167_v54, %v2166_v44 }
 0x492   : > { %6038 = vmatmul.mubr.msk.f32.gmra.mrb[54].mxu1 %vm986_vm4, %v1963_v4  ;;  %v2180_v4 = vld [vmem:[%s9551_s3 + $0x70] sm:$0xff] }
 0x493   : > { %6040 = vmatprep.mubr.msk.f32.mxu1 %vm7505_vm0, %v7503_v0  ;;  %6501 = vmatpush3.bf16.msra.mxu0 %v6500_v31  ;;  %v6521_v42 = vpack.c.bf16 %v2181_v40, %v2180_v4 }
 0x494   : > { %6502 = vmatprep.subr.bf16.mxu0 %v7504_v1 }
 0x496   : > { %6041 = vmatmul.mubr.msk.f32.gmra.mrb[56].mxu1 %vm986_vm4, %v1965_v14 }
 0x497   : > { %6043 = vmatprep.mubr.msk.f32.mxu1 %vm7505_vm0, %v7503_v0  ;;  %6504 = vmatpush3.bf16.msra.mxu0 %v6503_v6 }
 0x498   : > { %6505 = vmatprep.subr.bf16.mxu0 %v7504_v1 }
 0x49a   : > { %6044 = vmatmul.mubr.msk.f32.gmra.mrb[58].mxu1 %vm986_vm4, %v1967_v34 }
 0x49b   : > { %2474 = vmatprep.mubr.f32.mxu1 %v7503_v0  ;;  %6507 = vmatpush3.bf16.msra.mxu0 %v6506_v60 }
 0x49c   : > { %6508 = vmatprep.subr.bf16.mxu0 %v7504_v1 }
 0x49f   : > { %6510 = vmatpush3.bf16.msra.mxu0 %v6509_v22 }
 0x4a0   : > { %6511 = vmatprep.subr.bf16.mxu0 %v7504_v1 }
 0x4a3   : > { %6513 = vmatpush3.bf16.msra.mxu0 %v6512_v10 }
 0x4a4   : > { %6514 = vmatprep.subr.bf16.mxu0 %v7504_v1 }
 0x4a7   : > { %6516 = vmatpush3.bf16.msra.mxu0 %v6515_v17 }
 0x4a8   : > { %6517 = vmatprep.subr.bf16.mxu0 %v7504_v1 }
 0x4ab   : > { %6519 = vmatpush3.bf16.msra.mxu0 %v6518_v38 }
 0x4ac   : > { %6520 = vmatprep.subr.bf16.mxu0 %v7504_v1 }
 0x4af   : > { %6522 = vmatpush3.bf16.msra.mxu0 %v6521_v42 }
 0x4bf   : > { %v8420_v53 = vpop.f32.mrb[24].mxu1 }
 0x4c0   : > { %v5889_v43 = vpop.f32.mrb[25].mxu1 }
 0x4c3   : > { %v8422_v21 = vpop.f32.mrb[26].mxu1 }
 0x4c4   : > { %v5892_v50 = vpop.f32.mrb[27].mxu1 }
 0x4fc   : > { %v8424_v51 = vpop.f32.mrb[28].mxu1 }
 0x4fd   : > { %v5895_v26 = vpop.f32.mrb[29].mxu1 }
 0x501   : > { %v1443_v52 = vpop.f32.mrb[30].mxu1 }
 0x502   : > { %v5933_v24 = vpop.f32.mrb[31].mxu1 }
 0x505   : > { %v1448_v27 = vpop.f32.mrb[32].mxu1 }
 0x506   : > { %v7002_v58 = vpack.i.bf16 %v1448_v27, %v1443_v52  ;;  %v5936_v32 = vpop.f32.mrb[33].mxu1 }
 0x508   : > { %7003 = vrot.lane.b32.xlu1 %v7002_v58, %s7508_s16 }
 0x509   : > { %v1453_v41 = vpop.f32.mrb[34].mxu1 }
 0x50a   : > { %v5939_v47 = vpop.f32.mrb[35].mxu1 }
 0x50c   : > { %2098 = vrot.lane.b32.xlu1 %v1453_v41, %s7508_s16 }
 0x50d   : > { %v1458_v63 = vpop.f32.mrb[36].mxu1 }
 0x50e   : > { %v5942_v48 = vpop.f32.mrb[37].mxu1 }
 0x511   : > { %v1463_v37 = vpop.f32.mrb[38].mxu1 }
 0x512   : > { %v5945_v15 = vpop.f32.mrb[39].mxu1 }
 0x542   : > { %v1754_v16 = vpop.f32.mrb[40].mxu1 }
 0x543   : > { %v5983_v3 = vpop.f32.mrb[41].mxu1 }
 0x546   : > { %v1759_v13 = vpop.f32.mrb[42].mxu1 }
 0x547   : > { %v7007_v62 = vpack.i.bf16 %v1759_v13, %v1754_v16  ;;  %v5986_v59 = vpop.f32.mrb[43].mxu1 }
 0x549   : > { %7008 = vrot.lane.b32.xlu1 %v7007_v62, %s7507_s18 }
 0x54a   : > { %v1764_v20 = vpop.f32.mrb[44].mxu1 }
 0x54b   : > { %v5989_v30 = vpop.f32.mrb[45].mxu1 }
 0x54c   : > { %v5275_v30 = vld [vmem:[%s9552_s4] ss:$0 sm:$0xff] }
 0x54e   : > { %v1769_v25 = vpop.f32.mrb[46].mxu1 }
 0x54f   : > { %v5992_v23 = vpop.f32.mrb[47].mxu1 }
 0x552   : > { %v1774_v39 = vpop.f32.mrb[48].mxu1 }
 0x553   : > { %v5995_v61 = vpop.f32.mrb[49].mxu1 }
 0x554   : > { %v7303_v61 = vld [vmem:[%s7920_s1 + $0x8] sm:$0xff] }
 0x55d   : > { %v2065_v14 = vpop.f32.mrb[50].mxu1 }
 0x55e   : > { %v6033_v45 = vpop.f32.mrb[51].mxu1 }
 0x55f   : > { %v7304_v45 = vld [vmem:[%s7920_s1 + $0x10] sm:$0xff] }
 0x561   : > { %v2070_v34 = vpop.f32.mrb[52].mxu1 }
 0x562   : > { %v7012_v43 = vpack.i.bf16 %v2070_v34, %v2065_v14  ;;  %v6036_v50 = vpop.f32.mrb[53].mxu1 }
 0x564   : > { %7013 = vrot.lane.b32.xlu1 %v7012_v43, %s7506_s17 }
 0x565   : > { %v2075_v26 = vpop.f32.mrb[54].mxu1 }
 0x566   : > { %2138 = vrot.lane.b32.xlu0 %v2075_v26, %s7506_s17  ;;  %v6039_v44 = vpop.f32.mrb[55].mxu1 }
 0x567   : > { %v7305_v44 = vld [vmem:[%s7920_s1 + $0x18] sm:$0xff] }
 0x568   : > { %2118 = vrot.lane.b32.xlu1 %v1764_v20, %s7507_s18 }
 0x569   : > { %v2080_v54 = vpop.f32.mrb[56].mxu1 }
 0x56a   : > { %2120 = vrot.lane.b32.xlu0 %v1769_v25, %s7507_s18  ;;  %v6042_v31 = vpop.f32.mrb[57].mxu1 }
 0x56c   : > { %2100 = vrot.lane.b32.xlu1 %v1458_v63, %s7508_s16 }
 0x56d   : > { %v2085_v52 = vpop.f32.mrb[58].mxu1 }
 0x56e   : > { %2102 = vrot.lane.b32.xlu0 %v1463_v37, %s7508_s16  ;;  %v6045_v24 = vpop.f32.mrb[59].mxu1 }
 0x570   : > { %2140 = vrot.lane.b32.xlu1 %v2080_v54, %s7506_s17 }
 0x572   : > { %2142 = vrot.lane.b32.xlu0 %v2085_v52, %s7506_s17 }
 0x574   : > { %2122 = vrot.lane.b32.xlu1 %v1774_v39, %s7507_s18 }
 0x57a   : > { %v7004_v27 = vpop.permute.xlu1 %7003 }
 0x57b   : > { %v7005_v41 = vunpack.i.l.bf16 %v7004_v27  ;;  %v7006_v15 = vunpack.i.h.bf16 %v7004_v27  ;;  %v7306_v27 = vld [vmem:[%s7920_s1 + $0x20] sm:$0x1] }
 0x57d   : > { %v2149_v63 = vsel %vm860_vm1, %v8401_v36, %v7005_v41  ;;  %v2150_v55 = vsel %vm860_vm1, %v8407_v2, %v7006_v15  ;;  %v2367_v41 = vld [vmem:[#allocation2 + $0x8] sm:$0xff] }
 0x57e   : > { %v2099_v58 = vpop.permute.xlu1 %2098 }
 0x57f   : > { %v2151_v36 = vsel %vm860_vm1, %v8420_v53, %v2099_v58 }
 0x5bb   : > { %v7009_v32 = vpop.permute.xlu1 %7008 }
 0x5bc   : > { %v7010_v47 = vunpack.i.l.bf16 %v7009_v32  ;;  %v7011_v46 = vunpack.i.h.bf16 %v7009_v32 }
 0x5be   : > { %v2155_v5 = vsel %vm2154_vm6, %v2149_v63, %v7010_v47  ;;  %v2156_v16 = vsel %vm2154_vm6, %v2150_v55, %v7011_v46  ;;  %v2369_v47 = vld [vmem:[#allocation2 + $0x18] sm:$0xff]  ;;  %v2368_v63 = vld [vmem:[#allocation2 + $0x10] sm:$0xff] }
 0x5bf   : > { %v6523_v15 = vpack.c.bf16 %v2369_v47, %v2367_v41  ;;  %v2373_v46 = vld [vmem:[#allocation2 + $0x38] sm:$0xff]  ;;  %v2391_v41 = vld [vmem:[#allocation2 + $0xc8] sm:$0xff] }
 0x5c0   : > { %v2377_v55 = vld [vmem:[#allocation2 + $0x58] sm:$0xff] }
 0x5c1   : > { %6524 = vmatprep.subr.bf16.mxu1 %v6523_v15  ;;  %v2393_v47 = vld [vmem:[#allocation2 + $0xd8] sm:$0xff]  ;;  %v2390_v15 = vld [vmem:[#allocation2 + $0xc0] sm:$0xff] }
 0x5d6   : > { %v7014_v48 = vpop.permute.xlu1 %7013 }
 0x5d7   : > { %v7015_v37 = vunpack.i.l.bf16 %v7014_v48  ;;  %v7016_v6 = vunpack.i.h.bf16 %v7014_v48  ;;  %v2366_v48 = vld [vmem:[#allocation2] sm:$0xff] }
 0x5d8   : > { %v2139_v56 = vpop.permute.xlu0 %2138 }
 0x5d9   : > { %v2161_v12 = vsel %vm2160_vm7, %v2155_v5, %v7015_v37  ;;  %v2162_v3 = vsel %vm2160_vm7, %v2156_v16, %v7016_v6  ;;  %v2371_v37 = vld [vmem:[#allocation2 + $0x28] sm:$0xff]  ;;  %v2370_v6 = vld [vmem:[#allocation2 + $0x20] sm:$0xff] }
 0x5da   : > { %v2119_v60 = vpop.permute.xlu1 %2118  ;;  %6079 = vmatmul.mubr.f32.vlgmr.msra.gmra.mrb[40].mxu0 %v2161_v12  ;;  %v6527_v5 = vpack.c.bf16 %v2373_v46, %v2371_v37  ;;  %v2372_v12 = vld [vmem:[#allocation2 + $0x30] sm:$0xff]  ;;  %v2395_v46 = vld [vmem:[#allocation2 + $0xe8] sm:$0xff] }
 0x5db   : > { %6081 = vmatprep.mubr.msk.f32.mxu0 %vm7505_vm0, %v7503_v0  ;;  %v2157_v22 = vsel %vm2154_vm6, %v2151_v36, %v2119_v60  ;;  %v2375_v60 = vld [vmem:[#allocation2 + $0x48] sm:$0xff]  ;;  %v2374_v36 = vld [vmem:[#allocation2 + $0x40] sm:$0xff] }
 0x5dc   : > { %v2121_v11 = vpop.permute.xlu0 %2120  ;;  %v2163_v2 = vsel %vm2160_vm7, %v2157_v22, %v2139_v56  ;;  %v6525_v56 = vpack.c.bf16 %v2368_v63, %v2366_v48  ;;  %v6531_v16 = vpack.c.bf16 %v2377_v55, %v2375_v60  ;;  %v6547_v48 = vpack.c.bf16 %v2393_v47, %v2391_v41  ;;  %v2392_v63 = vld [vmem:[#allocation2 + $0xd0] sm:$0xff]  ;;  %v2531_v55 = vld [vmem:[#allocation5 + $0x80] sm:$0xff] }
 0x5dd   : > { %v6549_v37 = vpack.c.bf16 %v2392_v63, %v2390_v15 }
 0x5de   : > { %v2101_v57 = vpop.permute.xlu1 %2100  ;;  %6082 = vmatmul.mubr.f32.gmra.mrb[42].mxu0 %v2162_v3  ;;  %6526 = vmatpush1.bf16.msra.mxu1 %v6525_v56  ;;  %v2376_v3 = vld [vmem:[#allocation2 + $0x50] sm:$0xff]  ;;  %v2397_v56 = vld [vmem:[#allocation2 + $0xf8] sm:$0xff] }
 0x5df   : > { %6084 = vmatprep.mubr.msk.f32.mxu0 %vm7505_vm0, %v7503_v0  ;;  %v2152_v7 = vsel %vm860_vm1, %v8422_v21, %v2101_v57  ;;  %6528 = vmatprep.subr.bf16.mxu1 %v6527_v5  ;;  %v6533_v22 = vpack.c.bf16 %v2376_v3, %v2374_v36  ;;  %v6551_v5 = vpack.c.bf16 %v2397_v56, %v2395_v46  ;;  %v2516_v3 = vld [vmem:[#allocation5 + $0x8] sm:$0xff] }
 0x5e0   : > { %v2103_v13 = vpop.permute.xlu0 %2102  ;;  %v2158_v53 = vsel %vm2154_vm6, %v2152_v7, %v2121_v11  ;;  %v6529_v11 = vpack.c.bf16 %v2372_v12, %v2370_v6  ;;  %v2394_v6 = vld [vmem:[#allocation2 + $0xe0] sm:$0xff]  ;;  %v2396_v12 = vld [vmem:[#allocation2 + $0xf0] sm:$0xff] }
 0x5e1   : > { %v2153_v10 = vsel %vm860_vm1, %v8424_v51, %v2103_v13  ;;  %v6553_v60 = vpack.c.bf16 %v2396_v12, %v2394_v6 }
 0x5e2   : > { %6085 = vmatmul.mubr.f32.gmra.mrb[44].mxu0 %v2163_v2  ;;  %v2141_v62 = vpop.permute.xlu1 %2140  ;;  %6530 = vmatpush1.bf16.msra.mxu1 %v6529_v11  ;;  %v2532_v11 = vld [vmem:[#allocation5 + $0x88] sm:$0xff] }
 0x5e3   : > { %6087 = vmatprep.mubr.msk.f32.mxu0 %vm7505_vm0, %v7503_v0  ;;  %v2164_v59 = vsel %vm2160_vm7, %v2158_v53, %v2141_v62  ;;  %6532 = vmatprep.subr.bf16.mxu1 %v6531_v16  ;;  %v2515_v16 = vld [vmem:[#allocation5] sm:$0xff]  ;;  %v6555_v36 = vpack.c.bf16 %v2532_v11, %v2531_v55 }
 0x5e4   : > { %v2143_v21 = vpop.permute.xlu0 %2142  ;;  %v5276_v55 = vld [vmem:[%s9553_s5] ss:$0 sm:$0xff] }
 0x5e5   : > { %6556 = vmatprep.subr.bf16.mxu0 %v6555_v36 }
 0x5e6   : > { %6088 = vmatmul.mubr.f32.gmra.mrb[46].mxu0 %v2164_v59  ;;  %v2123_v8 = vpop.permute.xlu1 %2122  ;;  %6534 = vmatpush1.bf16.msra.mxu1 %v6533_v22  ;;  %v2533_v22 = vld [vmem:[#allocation5 + $0x90] sm:$0xff] }
 0x5e7   : > { %v2159_v9 = vsel %vm2154_vm6, %v2153_v10, %v2123_v8  ;;  %6090 = vmatprep.mubr.msk.f32.mxu0 %vm7505_vm0, %v7503_v0 }
 0x5e8   : > { %v2165_v20 = vsel %vm2160_vm7, %v2159_v9, %v2143_v21 }
 0x5ea   : > { %6091 = vmatmul.mubr.f32.gmra.mrb[48].mxu0 %v2165_v20 }
 0x6ad   : > { %v2255_v17 = vpop.f32.mrb[40].mxu0 }
 0x6ae   : > { %v2256_v29 = vadd.f32 %v5275_v30, %v2255_v17  ;;  %v6080_v51 = vpop.f32.mrb[41].mxu0 }
 0x6b0   : > { %v2279_v25 = vadd.f32 %v7302_v35, %v2256_v29 }
 0x6b1   : > { %v2260_v23 = vpop.f32.mrb[42].mxu0 }
 0x6b2   : > { %v2261_v38 = vadd.f32 %v5275_v30, %v2260_v23  ;;  %v6083_v39 = vpop.f32.mrb[43].mxu0  ;;  %2286 = vadd.xlane.f32.xlu1 %v2279_v25 }
 0x6b3   : > { %v2381_v39 = vld [vmem:[#allocation2 + $0x78] sm:$0xff] }
 0x6b4   : > { %v2280_v4 = vadd.f32 %v7303_v61, %v2261_v38  ;;  %v2379_v38 = vld [vmem:[#allocation2 + $0x68] sm:$0xff] }
 0x6b5   : > { %v2265_v40 = vpop.f32.mrb[44].mxu0 }
 0x6b6   : > { %v2266_v42 = vadd.f32 %v5275_v30, %v2265_v40  ;;  %v6086_v14 = vpop.f32.mrb[45].mxu0  ;;  %2288 = vadd.xlane.f32.xlu0 %v2280_v4  ;;  %v2378_v40 = vld [vmem:[#allocation2 + $0x60] sm:$0xff] }
 0x6b8   : > { %v2281_v34 = vadd.f32 %v7304_v45, %v2266_v42  ;;  %v2380_v42 = vld [vmem:[#allocation2 + $0x70] sm:$0xff] }
 0x6b9   : > { %v2270_v43 = vpop.f32.mrb[46].mxu0  ;;  %v6537_v14 = vpack.c.bf16 %v2380_v42, %v2378_v40  ;;  %v2540_v40 = vld [vmem:[#allocation5 + $0xc8] sm:$0xff] }
 0x6ba   : > { %v2271_v50 = vadd.f32 %v5275_v30, %v2270_v43  ;;  %v6089_v26 = vpop.f32.mrb[47].mxu0  ;;  %2290 = vadd.xlane.f32.xlu0 %v2281_v34  ;;  %v2385_v43 = vld [vmem:[#allocation2 + $0x98] sm:$0xff] }
 0x6bb   : > { %v2382_v26 = vld [vmem:[#allocation2 + $0x80] sm:$0xff] }
 0x6bc   : > { %v2282_v54 = vadd.f32 %v7305_v44, %v2271_v50  ;;  %v2384_v44 = vld [vmem:[#allocation2 + $0x90] sm:$0xff] }
 0x6bd   : > { %v2275_v31 = vpop.f32.mrb[48].mxu0 }
 0x6be   : > { %v2276_v52 = vadd.f32 %v5275_v30, %v2275_v31  ;;  %2292 = vadd.xlane.f32.xlu1 %v2282_v54  ;;  %v6092_v24 = vpop.f32.mrb[49].mxu0  ;;  %v2387_v31 = vld [vmem:[#allocation2 + $0xa8] sm:$0xff] }
 0x6c0   : > { %v2283_v58 = vadd.f32 %v7306_v27, %v2276_v52  ;;  %v2389_v52 = vld [vmem:[#allocation2 + $0xb8] sm:$0xff]  ;;  %v2386_v27 = vld [vmem:[#allocation2 + $0xa0] sm:$0xff] }
 0x6c1   : > { %v6543_v24 = vpack.c.bf16 %v2389_v52, %v2387_v31  ;;  %v2526_v31 = vld [vmem:[#allocation5 + $0x58] sm:$0xff]  ;;  %v2543_v52 = vld [vmem:[#allocation5 + $0xe0] sm:$0xff] }
 0x6c2   : > { %v2294_v32 = vsel %vm1058_vm3, %v2283_v58, 0.0 }
 0x6c3   : > { %2295 = vadd.xlane.f32.xlu0 %v2294_v32 }
 0x73f   : > { %v2287_v57 = vpop.xlane.xlu1 %2286 }
 0x740   : > { %v2298_v7 = vmul.f32 0.0078125, %v2287_v57  ;;  %v2534_v57 = vld [vmem:[#allocation5 + $0x98] sm:$0xff] }
 0x742   : > { %v8530_v13 = vsub.f32 %v2279_v25, %v2298_v7  ;;  %v6557_v7 = vpack.c.bf16 %v2516_v3, %v2515_v16  ;;  %v5277_v16 = vld [vmem:[%s9554_s6] ss:$0 sm:$0xff] }
 0x743   : > { %v2289_v2 = vpop.xlane.xlu0 %2288 }
 0x744   : > { %v2299_v62 = vmul.f32 0.0078125, %v2289_v2  ;;  %v2308_v53 = vmul.f32 %v8530_v13, %v8530_v13  ;;  %v6559_v2 = vpack.c.bf16 %v2534_v57, %v2533_v22  ;;  %6558 = vmatpush3.bf16.msra.mxu0 %v6557_v7 }
 0x746   : > { %2313 = vadd.xlane.f32.xlu1 %v2308_v53  ;;  %v8534_v59 = vsub.f32 %v2280_v4, %v2299_v62  ;;  %v6535_v4 = vpack.c.bf16 %v2381_v39, %v2379_v38  ;;  %v2517_v62 = vld [vmem:[#allocation5 + $0x10] sm:$0xff]  ;;  %v2518_v53 = vld [vmem:[#allocation5 + $0x18] sm:$0xff]  ;;  %6560 = vmatprep.subr.bf16.mxu0 %v6559_v2 }
 0x747   : > { %v2291_v10 = vpop.xlane.xlu0 %2290  ;;  %v2521_v39 = vld [vmem:[#allocation5 + $0x30] sm:$0xff] }
 0x748   : > { %v2300_v8 = vmul.f32 0.0078125, %v2291_v10  ;;  %v2309_v21 = vmul.f32 %v8534_v59, %v8534_v59  ;;  %6536 = vmatprep.subr.bf16.mxu1 %v6535_v4  ;;  %v2535_v10 = vld [vmem:[#allocation5 + $0xa0] sm:$0xff] }
 0x749   : > { %6538 = vmatpush1.bf16.msra.mxu1 %v6537_v14  ;;  %v2539_v4 = vld [vmem:[#allocation5 + $0xc0] sm:$0xff] }
 0x74a   : > { %2315 = vadd.xlane.f32.xlu0 %v2309_v21  ;;  %v8538_v9 = vsub.f32 %v2281_v34, %v2300_v8  ;;  %v2383_v34 = vld [vmem:[#allocation2 + $0x88] sm:$0xff]  ;;  %v6561_v21 = vpack.c.bf16 %v2518_v53, %v2517_v62  ;;  %v6571_v14 = vpack.c.bf16 %v2540_v40, %v2539_v4  ;;  %v2545_v4 = vld [vmem:[#allocation5 + $0xf0] sm:$0xff]  ;;  %v2546_v40 = vld [vmem:[#allocation5 + $0xf8] sm:$0xff] }
 0x74b   : > { %v2293_v20 = vpop.xlane.xlu1 %2292  ;;  %v6539_v50 = vpack.c.bf16 %v2385_v43, %v2383_v34  ;;  %v2536_v8 = vld [vmem:[#allocation5 + $0xa8] sm:$0xff]  ;;  %v2541_v43 = vld [vmem:[#allocation5 + $0xd0] sm:$0xff] }
 0x74c   : > { %v2301_v30 = vmul.f32 0.0078125, %v2293_v20  ;;  %v2310_v17 = vmul.f32 %v8538_v9, %v8538_v9  ;;  %v6563_v20 = vpack.c.bf16 %v2536_v8, %v2535_v10  ;;  %6562 = vmatpush3.bf16.msra.mxu0 %v6561_v21  ;;  %v2524_v34 = vld [vmem:[#allocation5 + $0x48] sm:$0xff] }
 0x74d   : > { %6540 = vmatprep.subr.bf16.mxu1 %v6539_v50  ;;  %v2542_v50 = vld [vmem:[#allocation5 + $0xd8] sm:$0xff] }
 0x74e   : > { %2317 = vadd.xlane.f32.xlu1 %v2310_v17  ;;  %v8542_v29 = vsub.f32 %v2282_v54, %v2301_v30  ;;  %v6541_v54 = vpack.c.bf16 %v2384_v44, %v2382_v26  ;;  %v2519_v30 = vld [vmem:[#allocation5 + $0x20] sm:$0xff]  ;;  %v2520_v17 = vld [vmem:[#allocation5 + $0x28] sm:$0xff]  ;;  %6564 = vmatprep.subr.bf16.mxu0 %v6563_v20  ;;  %v6575_v44 = vpack.c.bf16 %v2542_v50, %v2541_v43 }
 0x750   : > { %v2296_v51 = vpop.xlane.xlu0 %2295  ;;  %v2311_v35 = vmul.f32 %v8542_v29, %v8542_v29  ;;  %6542 = vmatpush1.bf16.msra.mxu1 %v6541_v54  ;;  %v2525_v54 = vld [vmem:[#allocation5 + $0x50] sm:$0xff] }
 0x751   : > { %v2302_v25 = vmul.f32 0.0078125, %v2296_v51  ;;  %6544 = vmatprep.subr.bf16.mxu1 %v6543_v24  ;;  %v2537_v51 = vld [vmem:[#allocation5 + $0xb0] sm:$0xff]  ;;  %v2544_v24 = vld [vmem:[#allocation5 + $0xe8] sm:$0xff] }
 0x752   : > { %2319 = vadd.xlane.f32.xlu0 %v2311_v35  ;;  %v2538_v35 = vld [vmem:[#allocation5 + $0xb8] sm:$0xff] }
 0x753   : > { %v8546_v23 = vsub.f32 %v2283_v58, %v2302_v25  ;;  %v2388_v58 = vld [vmem:[#allocation2 + $0xb0] sm:$0xff]  ;;  %v6565_v25 = vpack.c.bf16 %v2520_v17, %v2519_v30  ;;  %v6567_v38 = vpack.c.bf16 %v2538_v35, %v2537_v51 }
 0x754   : > { %v6545_v32 = vpack.c.bf16 %v2388_v58, %v2386_v27  ;;  %v6577_v27 = vpack.c.bf16 %v2526_v31, %v2525_v54  ;;  %v6579_v58 = vpack.c.bf16 %v2544_v24, %v2543_v52 }
 0x755   : > { %v2312_v61 = vmul.f32 %v8546_v23, %v8546_v23  ;;  %6566 = vmatpush3.bf16.msra.mxu0 %v6565_v25 }
 0x756   : > { %6546 = vmatpush1.bf16.msra.mxu1 %v6545_v32  ;;  %6568 = vmatprep.subr.bf16.mxu0 %v6567_v38 }
 0x757   : > { %v2321_v45 = vsel %vm1058_vm3, %v2312_v61, 0.0  ;;  %6548 = vmatprep.subr.bf16.mxu1 %v6547_v48  ;;  %v2522_v61 = vld [vmem:[#allocation5 + $0x38] sm:$0xff] }
 0x758   : > { %2322 = vadd.xlane.f32.xlu1 %v2321_v45  ;;  %v6569_v42 = vpack.c.bf16 %v2522_v61, %v2521_v39  ;;  %v2523_v45 = vld [vmem:[#allocation5 + $0x40] sm:$0xff]  ;;  %v2528_v39 = vld [vmem:[#allocation5 + $0x68] sm:$0xff] }
 0x759   : > { %v6573_v26 = vpack.c.bf16 %v2524_v34, %v2523_v45  ;;  %v2530_v45 = vld [vmem:[#allocation5 + $0x78] sm:$0xff] }
 0x75a   : > { %6550 = vmatpush1.bf16.msra.mxu1 %v6549_v37  ;;  %6570 = vmatpush3.bf16.msra.mxu0 %v6569_v42  ;;  %v6583_v42 = vpack.c.bf16 %v2546_v40, %v2545_v4 }
 0x75b   : > { %6552 = vmatprep.subr.bf16.mxu1 %v6551_v5  ;;  %6572 = vmatprep.subr.bf16.mxu0 %v6571_v14  ;;  %v2529_v14 = vld [vmem:[#allocation5 + $0x70] sm:$0xff] }
 0x75c   : > { %v6585_v34 = vpack.c.bf16 %v2530_v45, %v2529_v14 }
 0x75e   : > { %6554 = vmatpush1.bf16.msra.mxu1 %v6553_v60  ;;  %6574 = vmatpush3.bf16.msra.mxu0 %v6573_v26 }
 0x75f   : > { %6576 = vmatprep.subr.bf16.mxu0 %v6575_v44 }
 0x762   : > { %6578 = vmatpush3.bf16.msra.mxu0 %v6577_v27 }
 0x763   : > { %6580 = vmatprep.subr.bf16.mxu0 %v6579_v58 }
 0x7d3   : > { %v2314_v32 = vpop.xlane.xlu1 %2313 }
 0x7d4   : > { %v2324_v41 = vmul.f32 0.0078125, %v2314_v32 }
 0x7d6   : > { %v2329_v47 = vadd.f32 1e-05, %v2324_v41 }
 0x7d7   : > { %v2316_v48 = vpop.xlane.xlu0 %2315 }
 0x7d8   : > { %7182 = vrsqrt.f32 %v2329_v47  ;;  %v2325_v15 = vmul.f32 0.0078125, %v2316_v48 }
 0x7da   : > { %v2330_v63 = vadd.f32 1e-05, %v2325_v15 }
 0x7db   : > { %v2318_v37 = vpop.xlane.xlu1 %2317 }
 0x7dc   : > { %7184 = vrsqrt.f32 %v2330_v63  ;;  %v2326_v46 = vmul.f32 0.0078125, %v2318_v37 }
 0x7de   : > { %v2331_v56 = vadd.f32 1e-05, %v2326_v46 }
 0x7df   : > { %v2320_v5 = vpop.xlane.xlu0 %2319 }
 0x7e0   : > { %7186 = vrsqrt.f32 %v2331_v56  ;;  %v2327_v6 = vmul.f32 0.0078125, %v2320_v5 }
 0x7e2   : > { %v7183_v12 = vpop.eup %7182  ;;  %v2332_v60 = vadd.f32 1e-05, %v2327_v6 }
 0x7e3   : > { %v2339_v11 = vmul.f32 %v7183_v12, %v8530_v13 }
 0x7e4   : > { %7188 = vrsqrt.f32 %v2332_v60 }
 0x7e5   : > { %v2323_v36 = vpop.xlane.xlu1 %2322  ;;  %v2350_v3 = vmul.f32 %v5276_v55, %v2339_v11 }
 0x7e6   : > { %v7185_v22 = vpop.eup %7184  ;;  %v2328_v57 = vmul.f32 0.0078125, %v2323_v36 }
 0x7e7   : > { %v8558_v7 = vadd.f32 %v5277_v16, %v2350_v3  ;;  %v2340_v2 = vmul.f32 %v7185_v22, %v8534_v59 }
 0x7e8   : > { %v2333_v62 = vadd.f32 1e-05, %v2328_v57 }
 0x7e9   : > { %2475 = vmatmul.mubr.f32.vlgmr.msra.gmra.mrb[60].mxu1 %v8558_v7  ;;  %v2351_v53 = vmul.f32 %v5276_v55, %v2340_v2 }
 0x7ea   : > { %v7187_v10 = vpop.eup %7186  ;;  %7190 = vrsqrt.f32 %v2333_v62  ;;  %2480 = vmatprep.mubr.f32.mxu1 %v7503_v0 }
 0x7eb   : > { %v8563_v13 = vadd.f32 %v5277_v16, %v2351_v53  ;;  %v2341_v8 = vmul.f32 %v7187_v10, %v8538_v9  ;;  %v5278_v10 = vld [vmem:[%s9558_s10] ss:$0 sm:$0xff] }
 0x7ed   : > { %2481 = vmatmul.mubr.f32.gmra.mrb[62].mxu1 %v8563_v13  ;;  %v2352_v21 = vmul.f32 %v5276_v55, %v2341_v8 }
 0x7ee   : > { %v7189_v20 = vpop.eup %7188  ;;  %2486 = vmatprep.mubr.f32.mxu1 %v7503_v0 }
 0x7ef   : > { %v8568_v30 = vadd.f32 %v5277_v16, %v2352_v21  ;;  %v2342_v59 = vmul.f32 %v7189_v20, %v8542_v29  ;;  %v2527_v29 = vld [vmem:[#allocation5 + $0x60] sm:$0xff] }
 0x7f0   : > { %v6581_v61 = vpack.c.bf16 %v2528_v39, %v2527_v29 }
 0x7f1   : > { %2487 = vmatmul.mubr.f32.gmra.mrb[64].mxu1 %v8568_v30  ;;  %v2353_v17 = vmul.f32 %v5276_v55, %v2342_v59 }
 0x7f2   : > { %2492 = vmatprep.mubr.f32.mxu1 %v7503_v0  ;;  %6582 = vmatpush3.bf16.msra.mxu0 %v6581_v61 }
 0x7f3   : > { %v8573_v51 = vadd.f32 %v5277_v16, %v2353_v17  ;;  %6584 = vmatprep.subr.bf16.mxu0 %v6583_v42 }
 0x7f4   : > { %v7191_v35 = vpop.eup %7190 }
 0x7f5   : > { %2493 = vmatmul.mubr.f32.gmra.mrb[66].mxu1 %v8573_v51  ;;  %v2343_v9 = vmul.f32 %v7191_v35, %v8546_v23  ;;  %v2398_v23 = vld [vmem:[%s9556_s8] sm:$0x3] }
 0x7f6   : > { %2498 = vmatprep.mubr.f32.mxu1 %v7503_v0  ;;  %6586 = vmatpush3.bf16.msra.mxu0 %v6585_v34  ;;  %v2403_v43 = vrot.slane %v2398_v23, %v7982_v33  ;;  %v2407_v50 = vrot.slane %v2398_v23, %v7963_v19 }
 0x7f7   : > { %v2354_v25 = vmul.f32 %v5276_v55, %v2343_v9  ;;  %6619 = vmatprep.subr.bf16.mxu0 %v7504_v1 }
 0x7f9   : > { %v8578_v38 = vadd.f32 %v5277_v16, %v2354_v25 }
 0x7fb   : > { %2499 = vmatmul.mubr.f32.gmra.mrb[68].mxu1 %v8578_v38 }
 0x7fc   : > { %2861 = vmatprep.mubr.f32.mxu1 %v7503_v0 }
 0x8bc   : > { %v2476_v26 = vpop.f32.mrb[60].mxu1 }
 0x8bd   : > { %v2477_v44 = vadd.f32 %v2476_v26, %v2403_v43  ;;  %v2478_v54 = vpop.f32.mrb[61].mxu1 }
 0x8be   : > { %v2479_v31 = vadd.f32 %v2478_v54, %v2407_v50 }
 0x8bf   : > { %v2505_v27 = vmax.f32 %v2477_v44, 0.0 }
 0x8c0   : > { %v2506_v52 = vmax.f32 %v2479_v31, 0.0  ;;  %v2482_v24 = vpop.f32.mrb[62].mxu1  ;;  %v5281_v31 = vld [vmem:[%s9609_s22 + $0x180] sm:$0xff] }
 0x8c1   : > { %v2483_v58 = vadd.f32 %v2482_v24, %v2403_v43  ;;  %v2484_v32 = vpop.f32.mrb[63].mxu1  ;;  %v5283_v24 = vld [vmem:[%s9609_s22 + $0x190] sm:$0xff] }
 0x8c2   : > { %v2485_v41 = vadd.f32 %v2484_v32, %v2407_v50  ;;  %2618 = vmatprep.mubr.f32.mxu0 %v2506_v52 }
 0x8c3   : > { %2619 = vmatmul.mubr.f32.vlgmr.msra.gmra.mrb[50].mxu0 %v2505_v27  ;;  %v2507_v15 = vmax.f32 %v2483_v58, 0.0  ;;  %v5286_v27 = vld [vmem:[%s9609_s22 + $0x1a8] sm:$0xff] }
 0x8c4   : > { %v2508_v47 = vmax.f32 %v2485_v41, 0.0  ;;  %v2488_v48 = vpop.f32.mrb[64].mxu1  ;;  %v6620_v32 = vpack.c.bf16 %v5286_v27, %v5283_v24  ;;  %v5288_v41 = vld [vmem:[%s9609_s22 + $0x1b8] sm:$0xff]  ;;  %v5307_v24 = vld [vmem:[%s9609_s22 + $0x250] sm:$0xff] }
 0x8c5   : > { %v2489_v63 = vadd.f32 %v2488_v48, %v2403_v43  ;;  %v2490_v37 = vpop.f32.mrb[65].mxu1  ;;  %v5287_v48 = vld [vmem:[%s9609_s22 + $0x1b0] sm:$0xff] }
 0x8c6   : > { %v2491_v46 = vadd.f32 %v2490_v37, %v2407_v50  ;;  %2623 = vmatprep.mubr.f32.mxu0 %v2508_v47  ;;  %v5291_v47 = vld [vmem:[%s9609_s22 + $0x1d0] sm:$0xff]  ;;  %v5289_v37 = vld [vmem:[%s9609_s22 + $0x1c0] sm:$0xff]  ;;  %6621 = vmatpush3.bf16.msra.mxu0 %v6620_v32 }
 0x8c7   : > { %2624 = vmatmul.mubr.f32.gmra.mrb[52].mxu0 %v2507_v15  ;;  %v2509_v6 = vmax.f32 %v2489_v63, 0.0  ;;  %v6591_v15 = vpack.c.bf16 %v5291_v47, %v5288_v41  ;;  %v5290_v63 = vld [vmem:[%s9609_s22 + $0x1c8] sm:$0xff]  ;;  %6622 = vmatprep.subr.bf16.mxu0 %v7504_v1  ;;  %v5312_v41 = vld [vmem:[%s9609_s22 + $0x278] sm:$0xff]  ;;  %v5315_v47 = vld [vmem:[%s9609_s22 + $0x290] sm:$0xff] }
 0x8c8   : > { %v2510_v56 = vmax.f32 %v2491_v46, 0.0  ;;  %v2494_v5 = vpop.f32.mrb[66].mxu1  ;;  %v5292_v46 = vld [vmem:[%s9609_s22 + $0x1d8] sm:$0xff] }
 0x8c9   : > { %v2495_v12 = vadd.f32 %v2494_v5, %v2403_v43  ;;  %v2496_v60 = vpop.f32.mrb[67].mxu1  ;;  %v6623_v5 = vpack.c.bf16 %v5292_v46, %v5289_v37  ;;  %v5313_v37 = vld [vmem:[%s9609_s22 + $0x280] sm:$0xff] }
 0x8ca   : > { %v2497_v55 = vadd.f32 %v2496_v60, %v2407_v50  ;;  %2628 = vmatprep.mubr.f32.mxu0 %v2510_v56  ;;  %v6593_v56 = vpack.c.bf16 %v5290_v63, %v5287_v48  ;;  %v5293_v60 = vld [vmem:[%s9609_s22 + $0x1e0] sm:$0xff]  ;;  %v6607_v48 = vpack.c.bf16 %v5315_v47, %v5312_v41  ;;  %v5314_v63 = vld [vmem:[%s9609_s22 + $0x288] sm:$0xff] }
 0x8cb   : > { %2629 = vmatmul.mubr.f32.gmra.mrb[54].mxu0 %v2509_v6  ;;  %v2511_v16 = vmax.f32 %v2495_v12, 0.0  ;;  %v5294_v6 = vld [vmem:[%s9609_s22 + $0x1e8] sm:$0xff]  ;;  %v5297_v12 = vld [vmem:[%s9609_s22 + $0x200] sm:$0xff] }
 0x8cc   : > { %v2512_v11 = vmax.f32 %v2497_v55, 0.0  ;;  %v6595_v55 = vpack.c.bf16 %v5297_v12, %v5294_v6  ;;  %6624 = vmatpush3.bf16.msra.mxu0 %v6623_v5  ;;  %v5318_v6 = vld [vmem:[%s9609_s22 + $0x2a8] sm:$0xff]  ;;  %v5321_v12 = vld [vmem:[%s9609_s22 + $0x2c0] sm:$0xff] }
 0x8cd   : > { %6625 = vmatprep.subr.bf16.mxu0 %v7504_v1 }
 0x8ce   : > { %v2500_v36 = vpop.f32.mrb[68].mxu1  ;;  %2633 = vmatprep.mubr.f32.mxu0 %v2512_v11  ;;  %v5296_v11 = vld [vmem:[%s9609_s22 + $0x1f8] sm:$0xff] }
 0x8cf   : > { %v2501_v3 = vadd.f32 %v2500_v36, %v2403_v43  ;;  %v2502_v22 = vpop.f32.mrb[69].mxu1  ;;  %2634 = vmatmul.mubr.f32.gmra.mrb[56].mxu0 %v2511_v16  ;;  %v5295_v16 = vld [vmem:[%s9609_s22 + $0x1f0] sm:$0xff]  ;;  %v5298_v36 = vld [vmem:[%s9609_s22 + $0x208] sm:$0xff] }
 0x8d0   : > { %v2503_v57 = vadd.f32 %v2502_v22, %v2407_v50  ;;  %v6626_v22 = vpack.c.bf16 %v5298_v36, %v5295_v16  ;;  %v5319_v16 = vld [vmem:[%s9609_s22 + $0x2b0] sm:$0xff] }
 0x8d1   : > { %v2513_v62 = vmax.f32 %v2501_v3, 0.0  ;;  %v6597_v3 = vpack.c.bf16 %v5296_v11, %v5293_v60  ;;  %v6611_v60 = vpack.c.bf16 %v5321_v12, %v5318_v6  ;;  %v5320_v11 = vld [vmem:[%s9609_s22 + $0x2b8] sm:$0xff] }
 0x8d2   : > { %v2514_v2 = vmax.f32 %v2503_v57, 0.0  ;;  %6627 = vmatpush3.bf16.msra.mxu0 %v6626_v22 }
 0x8d3   : > { %6628 = vmatprep.subr.bf16.mxu0 %v7504_v1 }
 0x8d4   : > { %2638 = vmatprep.mubr.f32.mxu0 %v2514_v2 }
 0x8d5   : > { %2639 = vmatmul.mubr.f32.gmra.mrb[58].mxu0 %v2513_v62 }
 0x8d6   : > { %6125 = vmatprep.mubr.msk.f32.mxu0 %vm7505_vm0, %v7503_v0 }
 0x996   : > { %v5580_v53 = vpop.f32.mrb[50].mxu0 }
 0x997   : > { %v5581_v8 = vpop.f32.mrb[51].mxu0 }
 0x998   : > { %v5582_v21 = vadd.f32 %v5581_v8, %v5580_v53 }
 0x99a   : > { %v2621_v20 = vadd.f32 %v5582_v21, %v5278_v10  ;;  %v5583_v59 = vpop.f32.mrb[52].mxu0 }
 0x99b   : > { %v5584_v17 = vpop.f32.mrb[53].mxu0 }
 0x99c   : > { %v5585_v35 = vadd.f32 %v5584_v17, %v5583_v59  ;;  %v8594_v9 = vadd.f32 %v2621_v20, %v8558_v7 }
 0x99e   : > { %v2626_v25 = vadd.f32 %v5585_v35, %v5278_v10  ;;  %v5586_v29 = vpop.f32.mrb[54].mxu0  ;;  %2651 = vadd.xlane.f32.xlu0 %v8594_v9 }
 0x99f   : > { %v5587_v39 = vpop.f32.mrb[55].mxu0 }
 0x9a0   : > { %v5588_v61 = vadd.f32 %v5587_v39, %v5586_v29  ;;  %v8598_v4 = vadd.f32 %v2626_v25, %v8563_v13 }
 0x9a2   : > { %v2631_v40 = vadd.f32 %v5588_v61, %v5278_v10  ;;  %v5589_v42 = vpop.f32.mrb[56].mxu0  ;;  %2653 = vadd.xlane.f32.xlu1 %v8598_v4 }
 0x9a3   : > { %v5590_v14 = vpop.f32.mrb[57].mxu0 }
 0x9a4   : > { %v5591_v45 = vadd.f32 %v5590_v14, %v5589_v42  ;;  %v2646_v34 = vadd.f32 %v2631_v40, %v8568_v30  ;;  %v5282_v30 = vld [vmem:[%s9609_s22 + $0x188] sm:$0xff]  ;;  %v5300_v42 = vld [vmem:[%s9609_s22 + $0x218] sm:$0xff]  ;;  %v5303_v14 = vld [vmem:[%s9609_s22 + $0x230] sm:$0xff] }
 0x9a6   : > { %v2636_v23 = vadd.f32 %v5591_v45, %v5278_v10  ;;  %2655 = vadd.xlane.f32.xlu0 %v2646_v34 }
 0x9a8   : > { %v5592_v7 = vpop.f32.mrb[58].mxu0  ;;  %v8603_v43 = vadd.f32 %v2636_v23, %v8573_v51  ;;  %v5285_v51 = vld [vmem:[%s9609_s22 + $0x1a0] sm:$0xff]  ;;  %v5299_v23 = vld [vmem:[%s9609_s22 + $0x210] sm:$0xff] }
 0x9a9   : > { %v5593_v50 = vpop.f32.mrb[59].mxu0  ;;  %v6587_v52 = vpack.c.bf16 %v5285_v51, %v5282_v30  ;;  %v5309_v30 = vld [vmem:[%s9609_s22 + $0x260] sm:$0xff] }
 0x9aa   : > { %v5594_v26 = vadd.f32 %v5593_v50, %v5592_v7  ;;  %2657 = vadd.xlane.f32.xlu1 %v8603_v43  ;;  %v5302_v7 = vld [vmem:[%s9609_s22 + $0x228] sm:$0xff] }
 0x9ab   : > { %6588 = vmatprep.subr.bf16.mxu1 %v6587_v52  ;;  %v6601_v50 = vpack.c.bf16 %v5302_v7, %v5299_v23  ;;  %v5305_v52 = vld [vmem:[%s9609_s22 + $0x240] sm:$0xff] }
 0x9ac   : > { %v2641_v13 = vadd.f32 %v5594_v26, %v5278_v10  ;;  %v5304_v26 = vld [vmem:[%s9609_s22 + $0x238] sm:$0xff] }
 0x9ae   : > { %v8607_v44 = vadd.f32 %v2641_v13, %v8578_v38  ;;  %v5284_v38 = vld [vmem:[%s9609_s22 + $0x198] sm:$0xff] }
 0x9af   : > { %v6589_v58 = vpack.c.bf16 %v5284_v38, %v5281_v31  ;;  %v5308_v38 = vld [vmem:[%s9609_s22 + $0x258] sm:$0xff] }
 0x9b0   : > { %v2659_v54 = vsel %vm1058_vm3, %v8607_v44, 0.0  ;;  %v6605_v27 = vpack.c.bf16 %v5308_v38, %v5305_v52 }
 0x9b1   : > { %2660 = vadd.xlane.f32.xlu0 %v2659_v54  ;;  %6590 = vmatpush1.bf16.msra.mxu1 %v6589_v58  ;;  %v5306_v54 = vld [vmem:[%s9609_s22 + $0x248] sm:$0xff] }
 0x9b2   : > { %6592 = vmatprep.subr.bf16.mxu1 %v6591_v15  ;;  %v6603_v31 = vpack.c.bf16 %v5309_v30, %v5306_v54  ;;  %v5310_v58 = vld [vmem:[%s9609_s22 + $0x268] sm:$0xff]  ;;  %v5311_v15 = vld [vmem:[%s9609_s22 + $0x270] sm:$0xff]  ;;  %v5280_v54 = vld [vmem:[%s9560_s12] ss:$0 sm:$0xff] }
 0x9b3   : > { %v6632_v32 = vpack.c.bf16 %v5310_v58, %v5307_v24  ;;  %v6609_v46 = vpack.c.bf16 %v5314_v63, %v5311_v15 }
 0x9b5   : > { %6594 = vmatpush1.bf16.msra.mxu1 %v6593_v56  ;;  %v5316_v56 = vld [vmem:[%s9609_s22 + $0x298] sm:$0xff] }
 0x9b6   : > { %6596 = vmatprep.subr.bf16.mxu1 %v6595_v55  ;;  %v6635_v5 = vpack.c.bf16 %v5316_v56, %v5313_v37  ;;  %v5317_v55 = vld [vmem:[%s9609_s22 + $0x2a0] sm:$0xff] }
 0x9b7   : > { %v6613_v36 = vpack.c.bf16 %v5320_v11, %v5317_v55 }
 0x9b9   : > { %6598 = vmatpush1.bf16.msra.mxu1 %v6597_v3  ;;  %v5322_v3 = vld [vmem:[%s9609_s22 + $0x2c8] sm:$0xff] }
 0x9ba   : > { %v6638_v22 = vpack.c.bf16 %v5322_v3, %v5319_v16 }
 0xa2b   : > { %v2652_v57 = vpop.xlane.xlu0 %2651 }
 0xa2c   : > { %v2662_v2 = vmul.f32 0.0078125, %v2652_v57  ;;  %v5324_v57 = vld [vmem:[%s9609_s22 + $0x2d8] sm:$0xff] }
 0xa2e   : > { %v8669_v62 = vsub.f32 %v8594_v9, %v2662_v2  ;;  %v5327_v2 = vld [vmem:[%s9609_s22 + $0x2f0] sm:$0xff] }
 0xa2f   : > { %v2654_v53 = vpop.xlane.xlu1 %2653 }
 0xa30   : > { %v2663_v10 = vmul.f32 0.0078125, %v2654_v53  ;;  %v2672_v8 = vmul.f32 %v8669_v62, %v8669_v62  ;;  %v5323_v53 = vld [vmem:[%s9609_s22 + $0x2d0] sm:$0xff] }
 0xa32   : > { %v8674_v21 = vsub.f32 %v8598_v4, %v2663_v10  ;;  %2677 = vadd.xlane.f32.xlu1 %v2672_v8  ;;  %v6615_v10 = vpack.c.bf16 %v5327_v2, %v5324_v57  ;;  %v5326_v8 = vld [vmem:[%s9609_s22 + $0x2e8] sm:$0xff] }
 0xa33   : > { %v2656_v20 = vpop.xlane.xlu0 %2655 }
 0xa34   : > { %v2664_v59 = vmul.f32 0.0078125, %v2656_v20  ;;  %v2673_v17 = vmul.f32 %v8674_v21, %v8674_v21  ;;  %v5325_v20 = vld [vmem:[%s9609_s22 + $0x2e0] sm:$0xff] }
 0xa36   : > { %v8678_v35 = vsub.f32 %v2646_v34, %v2664_v59  ;;  %2679 = vadd.xlane.f32.xlu0 %v2673_v17  ;;  %v6599_v34 = vpack.c.bf16 %v5303_v14, %v5300_v42  ;;  %v5328_v59 = vld [vmem:[%s9609_s22 + $0x2f8] sm:$0xff]  ;;  %v6617_v17 = vpack.c.bf16 %v5326_v8, %v5323_v53 }
 0xa37   : > { %v2658_v25 = vpop.xlane.xlu1 %2657 }
 0xa38   : > { %v2665_v9 = vmul.f32 0.0078125, %v2658_v25  ;;  %v2674_v29 = vmul.f32 %v8678_v35, %v8678_v35  ;;  %6600 = vmatprep.subr.bf16.mxu1 %v6599_v34  ;;  %v6641_v25 = vpack.c.bf16 %v5328_v59, %v5325_v20 }
 0xa39   : > { %6602 = vmatpush1.bf16.msra.mxu1 %v6601_v50 }
 0xa3a   : > { %v8683_v39 = vsub.f32 %v8603_v43, %v2665_v9  ;;  %2681 = vadd.xlane.f32.xlu1 %v2674_v29  ;;  %v5301_v43 = vld [vmem:[%s9609_s22 + $0x220] sm:$0xff]  ;;  %6604 = vmatprep.subr.bf16.mxu1 %v6603_v31 }
 0xa3c   : > { %v2675_v61 = vmul.f32 %v8683_v39, %v8683_v39 }
 0xa3d   : > { %6606 = vmatpush1.bf16.msra.mxu1 %v6605_v27 }
 0xa3e   : > { %2683 = vadd.xlane.f32.xlu0 %v2675_v61  ;;  %v2661_v4 = vpop.xlane.xlu0 %2660  ;;  %6608 = vmatprep.subr.bf16.mxu1 %v6607_v48 }
 0xa3f   : > { %v2666_v40 = vmul.f32 0.0078125, %v2661_v4 }
 0xa41   : > { %v8694_v45 = vsub.f32 %v8607_v44, %v2666_v40  ;;  %v6629_v44 = vpack.c.bf16 %v5304_v26, %v5301_v43  ;;  %6610 = vmatpush1.bf16.msra.mxu1 %v6609_v46 }
 0xa42   : > { %6612 = vmatprep.subr.bf16.mxu1 %v6611_v60 }
 0xa43   : > { %v2676_v13 = vmul.f32 %v8694_v45, %v8694_v45  ;;  %6630 = vmatpush3.bf16.msra.mxu0 %v6629_v44 }
 0xa44   : > { %6631 = vmatprep.subr.bf16.mxu0 %v7504_v1 }
 0xa45   : > { %v2685_v51 = vsel %vm1058_vm3, %v2676_v13, 0.0  ;;  %6614 = vmatpush1.bf16.msra.mxu1 %v6613_v36  ;;  %v5279_v13 = vld [vmem:[%s9559_s11] ss:$0 sm:$0xff] }
 0xa46   : > { %2686 = vadd.xlane.f32.xlu1 %v2685_v51  ;;  %6616 = vmatprep.subr.bf16.mxu1 %v6615_v10 }
 0xa47   : > { %6633 = vmatpush3.bf16.msra.mxu0 %v6632_v32 }
 0xa48   : > { %6634 = vmatprep.subr.bf16.mxu0 %v7504_v1 }
 0xa49   : > { %6618 = vmatpush1.bf16.msra.mxu1 %v6617_v17 }
 0xa4a   : > { %6643 = vmatprep.subr.bf16.mxu1 %v7504_v1 }
 0xa4b   : > { %6636 = vmatpush3.bf16.msra.mxu0 %v6635_v5  ;;  %v5329_v5 = vld [vmem:[%s9550_s2 + $0x3] sm:$0x7] }
 0xa4c   : > { %6637 = vmatprep.subr.bf16.mxu0 %v7504_v1  ;;  %v2789_v11 = vrot.slane %v5329_v5, %v7963_v19 }
 0xa4f   : > { %6639 = vmatpush3.bf16.msra.mxu0 %v6638_v22 }
 0xa50   : > { %6640 = vmatprep.subr.bf16.mxu0 %v7504_v1 }
 0xa53   : > { %6642 = vmatpush3.bf16.msra.mxu0 %v6641_v25 }
 0xa54   : > { %6657 = vmatprep.subr.bf16.mxu0 %v7504_v1 }
 0xabf   : > { %v2678_v9 = vpop.xlane.xlu1 %2677 }
 0xac0   : > { %v2688_v29 = vmul.f32 0.0078125, %v2678_v9 }
 0xac2   : > { %v2693_v61 = vadd.f32 1e-05, %v2688_v29  ;;  %v2785_v29 = vrot.slane %v5329_v5, %v7982_v33 }
 0xac3   : > { %v2680_v4 = vpop.xlane.xlu0 %2679 }
 0xac4   : > { %7192 = vrsqrt.f32 %v2693_v61  ;;  %v2689_v40 = vmul.f32 0.0078125, %v2680_v4 }
 0xac6   : > { %v2694_v42 = vadd.f32 1e-05, %v2689_v40 }
 0xac7   : > { %v2682_v14 = vpop.xlane.xlu1 %2681 }
 0xac8   : > { %7194 = vrsqrt.f32 %v2694_v42  ;;  %v2690_v34 = vmul.f32 0.0078125, %v2682_v14 }
 0xaca   : > { %v2695_v23 = vadd.f32 1e-05, %v2690_v34 }
 0xacb   : > { %v2684_v7 = vpop.xlane.xlu0 %2683 }
 0xacc   : > { %7196 = vrsqrt.f32 %v2695_v23  ;;  %v2691_v43 = vmul.f32 0.0078125, %v2684_v7 }
 0xace   : > { %v7193_v50 = vpop.eup %7192  ;;  %v2696_v26 = vadd.f32 1e-05, %v2691_v43 }
 0xacf   : > { %v2703_v44 = vmul.f32 %v7193_v50, %v8669_v62 }
 0xad0   : > { %7198 = vrsqrt.f32 %v2696_v26 }
 0xad1   : > { %v2714_v30 = vmul.f32 %v5279_v13, %v2703_v44 }
 0xad2   : > { %v7195_v51 = vpop.eup %7194 }
 0xad3   : > { %v2687_v31 = vpop.xlane.xlu1 %2686  ;;  %v8796_v52 = vadd.f32 %v5280_v54, %v2714_v30  ;;  %v2704_v38 = vmul.f32 %v7195_v51, %v8674_v21 }
 0xad4   : > { %v2692_v24 = vmul.f32 0.0078125, %v2687_v31 }
 0xad5   : > { %2862 = vmatmul.mubr.f32.vlgmr.msra.gmra.mrb[70].mxu1 %v8796_v52  ;;  %6126 = vmatmul.mubr.f32.vlgmr.msra.gmra.mrb[60].mxu0 %v8796_v52  ;;  %v2715_v27 = vmul.f32 %v5279_v13, %v2704_v38 }
 0xad6   : > { %v7197_v58 = vpop.eup %7196  ;;  %v2697_v62 = vadd.f32 1e-05, %v2692_v24  ;;  %2867 = vmatprep.mubr.f32.mxu1 %v7503_v0  ;;  %6128 = vmatprep.mubr.msk.f32.mxu0 %vm7505_vm0, %v7503_v0 }
 0xad7   : > { %v8804_v32 = vadd.f32 %v5280_v54, %v2715_v27  ;;  %v2705_v41 = vmul.f32 %v7197_v58, %v8678_v35 }
 0xad8   : > { %7200 = vrsqrt.f32 %v2697_v62 }
 0xad9   : > { %2868 = vmatmul.mubr.f32.gmra.mrb[72].mxu1 %v8804_v32  ;;  %6129 = vmatmul.mubr.f32.gmra.mrb[62].mxu0 %v8804_v32  ;;  %v2716_v21 = vmul.f32 %v5279_v13, %v2705_v41 }
 0xada   : > { %v7199_v47 = vpop.eup %7198  ;;  %2873 = vmatprep.mubr.f32.mxu1 %v7503_v0  ;;  %6131 = vmatprep.mubr.msk.f32.mxu0 %vm7505_vm0, %v7503_v0 }
 0xadb   : > { %v8812_v48 = vadd.f32 %v5280_v54, %v2716_v21  ;;  %v2706_v15 = vmul.f32 %v7199_v47, %v8683_v39 }
 0xadd   : > { %2874 = vmatmul.mubr.f32.gmra.mrb[74].mxu1 %v8812_v48  ;;  %6132 = vmatmul.mubr.f32.gmra.mrb[64].mxu0 %v8812_v48  ;;  %v2717_v35 = vmul.f32 %v5279_v13, %v2706_v15 }
 0xade   : > { %2879 = vmatprep.mubr.f32.mxu1 %v7503_v0  ;;  %6134 = vmatprep.mubr.msk.f32.mxu0 %vm7505_vm0, %v7503_v0 }
 0xadf   : > { %v8820_v63 = vadd.f32 %v5280_v54, %v2717_v35 }
 0xae1   : > { %2880 = vmatmul.mubr.f32.gmra.mrb[76].mxu1 %v8820_v63  ;;  %6135 = vmatmul.mubr.f32.gmra.mrb[66].mxu0 %v8820_v63 }
 0xae2   : > { %v7201_v37 = vpop.eup %7200  ;;  %2885 = vmatprep.mubr.f32.mxu1 %v7503_v0  ;;  %6137 = vmatprep.mubr.msk.f32.mxu0 %vm7505_vm0, %v7503_v0 }
 0xae3   : > { %v2707_v39 = vmul.f32 %v7201_v37, %v8694_v45  ;;  %v8841_v45 = vrot.slane %v5329_v5, %v670_v49 }
 0xae5   : > { %v2718_v46 = vmul.f32 %v5279_v13, %v2707_v39 }
 0xae7   : > { %v8828_v56 = vadd.f32 %v5280_v54, %v2718_v46 }
 0xae9   : > { %2886 = vmatmul.mubr.f32.gmra.mrb[78].mxu1 %v8828_v56  ;;  %6138 = vmatmul.mubr.f32.gmra.mrb[68].mxu0 %v8828_v56 }
 0xaea   : > { %6150 = vmatprep.mubr.msk.f32.mxu1 %vm7505_vm0, %v7503_v0  ;;  %6200 = vmatprep.mubr.msk.f32.mxu0 %vm7505_vm0, %v7503_v0 }
 0xba8   : > { %v2863_v6 = vpop.f32.mrb[70].mxu1  ;;  %v2958_v12 = vpop.f32.mrb[60].mxu0 }
 0xba9   : > { %v2865_v60 = vpop.f32.mrb[71].mxu1  ;;  %v6127_v55 = vpop.f32.mrb[61].mxu0  ;;  %v2959_v3 = vadd.f32 %v2958_v12, %v8841_v45  ;;  %v2864_v58 = vadd.f32 %v2863_v6, %v2785_v29 }
 0xbaa   : > { %v2866_v53 = vadd.f32 %v2865_v60, %v2789_v11 }
 0xbac   : > { %v2869_v16 = vpop.f32.mrb[72].mxu1  ;;  %v2963_v36 = vpop.f32.mrb[62].mxu0 }
 0xbad   : > { %v2964_v22 = vadd.f32 %v2963_v36, %v8841_v45  ;;  %v2871_v57 = vpop.f32.mrb[73].mxu1  ;;  %v6130_v2 = vpop.f32.mrb[63].mxu0  ;;  %v2870_v23 = vadd.f32 %v2869_v16, %v2785_v29 }
 0xbae   : > { %v2872_v10 = vadd.f32 %v2871_v57, %v2789_v11 }
 0xbaf   : > { %v6652_v8 = vpack.c.bf16 %v2964_v22, %v2959_v3  ;;  %v8846_v20 = vpack.i.bf16 %v2964_v22, %v2959_v3 }
 0xbb0   : > { %v6644_v18 = vpack.c.bf16 %v2872_v10, %v2866_v53  ;;  %v2875_v49 = vpop.f32.mrb[74].mxu1  ;;  %v2968_v59 = vpop.f32.mrb[64].mxu0  ;;  %v7017_v17 = vpack.i.bf16 %v2872_v10, %v2866_v53 }
 0xbb1   : > { %v2877_v25 = vpop.f32.mrb[75].mxu1  ;;  %v6133_v9 = vpop.f32.mrb[65].mxu0  ;;  %v2969_v40 = vadd.f32 %v2968_v59, %v8841_v45  ;;  %v2876_v54 = vadd.f32 %v2875_v49, %v2785_v29 }
 0xbb2   : > { %7018 = vrot.lane.b32.xlu0 %v7017_v17, %s7506_s17  ;;  %6646 = vmatpush3.bf16.xpose.msk.msra.mxu1 %vm7974_vm2, %v6644_v18  ;;  %v2878_v7 = vadd.f32 %v2877_v25, %v2789_v11 }
 0xbb3   : > { %6647 = vmatprep.subr.bf16.mxu1 %v7504_v1 }
 0xbb4   : > { %v2881_v61 = vpop.f32.mrb[76].mxu1  ;;  %v2973_v4 = vpop.f32.mrb[66].mxu0 }
 0xbb5   : > { %v2974_v42 = vadd.f32 %v2973_v4, %v8841_v45  ;;  %v2883_v14 = vpop.f32.mrb[77].mxu1  ;;  %v6136_v34 = vpop.f32.mrb[67].mxu0  ;;  %v2882_v62 = vadd.f32 %v2881_v61, %v2785_v29 }
 0xbb6   : > { %v2884_v43 = vadd.f32 %v2883_v14, %v2789_v11  ;;  %7028 = vrot.lane.b32.xlu0 %v7017_v17, %s7507_s18 }
 0xbb7   : > { %v6655_v50 = vpack.c.bf16 %v2974_v42, %v2969_v40  ;;  %v8856_v26 = vpack.i.bf16 %v2974_v42, %v2969_v40 }
 0xbb8   : > { %v6648_v13 = vpack.c.bf16 %v2884_v43, %v2878_v7  ;;  %v7022_v44 = vpack.i.bf16 %v2884_v43, %v2878_v7 }
 0xbba   : > { %3272 = vrot.lane.b32.xlu0 %v2870_v23, %s7506_s17  ;;  %7023 = vrot.lane.b32.xlu1 %v7022_v44, %s7506_s17 }
 0xbbb   : > { %6650 = vmatpush3.bf16.xpose.msk.msra.mxu1 %vm7974_vm2, %v6648_v13 }
 0xbbc   : > { %v2887_v30 = vpop.f32.mrb[78].mxu1  ;;  %v2978_v51 = vpop.f32.mrb[68].mxu0  ;;  %6148 = vmatprep.subr.mxu1 %v7503_v0 }
 0xbbd   : > { %v2889_v31 = vpop.f32.mrb[79].mxu1  ;;  %v6139_v38 = vpop.f32.mrb[69].mxu0  ;;  %v2888_v27 = vadd.f32 %v2887_v30, %v2785_v29  ;;  %v8882_v41 = vadd.f32 %v2978_v51, %v8841_v45 }
 0xbbe   : > { %v2890_v24 = vadd.f32 %v2889_v31, %v2789_v11  ;;  %3274 = vrot.lane.b32.xlu0 %v2876_v54, %s7506_s17 }
 0xbc0   : > { %3288 = vrot.lane.b32.xlu1 %v2890_v24, %s7506_s17 }
 0xbc2   : > { %3278 = vrot.lane.b32.xlu0 %v2888_v27, %s7506_s17 }
 0xbc3   : > { %6149 = vmatpush3.xpose.msk.msra.mxu1 %vm860_vm1, %v2890_v24 }
 0xbc4   : > { %3270 = vrot.lane.b32.xlu1 %v2864_v58, %s7506_s17  ;;  %6651 = vmatprep.subr.bf16.mxu1 %v7504_v1 }
 0xbc6   : > { %6151 = vmatmul.mubr.msk.f32.vlgmr.msra.gmra.mrb[80].mxu1 %vm860_vm1, %v2864_v58  ;;  %7038 = vrot.lane.b32.xlu0 %v7017_v17, %s7508_s16 }
 0xbc7   : > { %6653 = vmatpush3.bf16.msra.mxu1 %v6652_v8  ;;  %6153 = vmatprep.mubr.msk.f32.mxu1 %vm7505_vm0, %v7503_v0 }
 0xbc8   : > { %7033 = vrot.lane.b32.xlu1 %v7022_v44, %s7507_s18  ;;  %6654 = vmatprep.subr.bf16.mxu1 %v7504_v1 }
 0xbca   : > { %6154 = vmatmul.mubr.msk.f32.gmra.mrb[82].mxu1 %vm860_vm1, %v2870_v23  ;;  %3587 = vrot.lane.b32.xlu0 %v2870_v23, %s7507_s18 }
 0xbcb   : > { %6656 = vmatpush3.bf16.msra.mxu1 %v6655_v50  ;;  %6156 = vmatprep.mubr.msk.f32.mxu1 %vm7505_vm0, %v7503_v0 }
 0xbcc   : > { %3276 = vrot.lane.b32.xlu1 %v2882_v62, %s7506_s17  ;;  %6173 = vmatprep.subr.mxu1 %v7503_v0 }
 0xbce   : > { %6157 = vmatmul.mubr.msk.f32.gmra.mrb[84].mxu1 %vm860_vm1, %v2876_v54  ;;  %3589 = vrot.lane.b32.xlu0 %v2876_v54, %s7507_s18 }
 0xbcf   : > { %6174 = vmatpush3.msk.msra.mxu1 %vm1058_vm3, %v8882_v41  ;;  %6159 = vmatprep.mubr.msk.f32.mxu1 %vm7505_vm0, %v7503_v0 }
 0xbd0   : > { %3603 = vrot.lane.b32.xlu1 %v2890_v24, %s7507_s18  ;;  %6665 = vmatprep.subr.bf16.mxu1 %v7504_v1 }
 0xbd2   : > { %6160 = vmatmul.mubr.msk.f32.gmra.mrb[86].mxu1 %vm860_vm1, %v2882_v62  ;;  %3593 = vrot.lane.b32.xlu0 %v2888_v27, %s7507_s18 }
 0xbd3   : > { %6162 = vmatprep.mubr.msk.f32.mxu1 %vm7505_vm0, %v7503_v0 }
 0xbd4   : > { %3585 = vrot.lane.b32.xlu1 %v2864_v58, %s7507_s18 }
 0xbd6   : > { %6163 = vmatmul.mubr.msk.f32.gmra.mrb[88].mxu1 %vm860_vm1, %v2888_v27  ;;  %3896 = vrot.lane.b32.xlu0 %v2864_v58, %s7508_s16 }
 0xbd7   : > { %6175 = vmatprep.mubr.msk.f32.mxu1 %vm7505_vm0, %v7503_v0 }
 0xbd8   : > { %7043 = vrot.lane.b32.xlu1 %v7022_v44, %s7508_s16 }
 0xbda   : > { %3900 = vrot.lane.b32.xlu0 %v2876_v54, %s7508_s16 }
 0xbdc   : > { %3591 = vrot.lane.b32.xlu1 %v2882_v62, %s7507_s18 }
 0xbde   : > { %3904 = vrot.lane.b32.xlu0 %v2888_v27, %s7508_s16 }
 0xbe0   : > { %3914 = vrot.lane.b32.xlu1 %v2890_v24, %s7508_s16 }
 0xbe2   : > { %7048 = vrot.lane.b32.xlu0 %v8846_v20, %s7506_s17 }
 0xbe4   : > { %3898 = vrot.lane.b32.xlu1 %v2870_v23, %s7508_s16 }
 0xbe6   : > { %3472 = vrot.lane.b32.xlu0 %v8882_v41, %s7506_s17 }
 0xbe8   : > { %3902 = vrot.lane.b32.xlu1 %v2882_v62, %s7508_s16 }
 0xbec   : > { %7053 = vrot.lane.b32.xlu1 %v8856_v26, %s7506_s17 }
 0xc24   : > { %v7019_v21 = vpop.permute.xlu0 %7018 }
 0xc25   : > { %v7021_v47 = vunpack.i.h.bf16 %v7019_v21  ;;  %v7020_v15 = vunpack.i.l.bf16 %v7019_v21 }
 0xc27   : > { %v6658_v35 = vpack.c.bf16 %v7021_v47, %v7020_v15 }
 0xc28   : > { %v7029_v6 = vpop.permute.xlu0 %7028 }
 0xc29   : > { %6660 = vmatpush3.bf16.xpose.msk.msra.mxu0 %vm7974_vm2, %v6658_v35  ;;  %v7031_v55 = vunpack.i.h.bf16 %v7029_v6  ;;  %v7030_v11 = vunpack.i.l.bf16 %v7029_v6 }
 0xc2a   : > { %6661 = vmatprep.subr.bf16.mxu0 %v7504_v1 }
 0xc2b   : > { %v6672_v36 = vpack.c.bf16 %v7031_v55, %v7030_v11 }
 0xc2c   : > { %v7024_v37 = vpop.permute.xlu1 %7023  ;;  %v3273_v45 = vpop.permute.xlu0 %3272 }
 0xc2d   : > { %v7026_v39 = vunpack.i.h.bf16 %v7024_v37  ;;  %v7025_v46 = vunpack.i.l.bf16 %v7024_v37 }
 0xc2f   : > { %v6662_v5 = vpack.c.bf16 %v7026_v39, %v7025_v46 }
 0xc30   : > { %v3275_v3 = vpop.permute.xlu0 %3274 }
 0xc31   : > { %6664 = vmatpush3.bf16.xpose.msk.msra.mxu0 %vm7974_vm2, %v6662_v5 }
 0xc32   : > { %v3289_v12 = vpop.permute.xlu1 %3288  ;;  %6198 = vmatprep.subr.mxu0 %v7503_v0 }
 0xc34   : > { %v3279_v53 = vpop.permute.xlu0 %3278 }
 0xc36   : > { %v3271_v60 = vpop.permute.xlu1 %3270 }
 0xc38   : > { %v7039_v18 = vpop.permute.xlu0 %7038 }
 0xc39   : > { %6199 = vmatpush3.xpose.msk.msra.mxu0 %vm860_vm1, %v3289_v12  ;;  %v7041_v59 = vunpack.i.h.bf16 %v7039_v18  ;;  %v7040_v17 = vunpack.i.l.bf16 %v7039_v18 }
 0xc3a   : > { %v7034_v16 = vpop.permute.xlu1 %7033  ;;  %6671 = vmatprep.subr.bf16.mxu0 %v7504_v1 }
 0xc3b   : > { %v7036_v57 = vunpack.i.h.bf16 %v7034_v16  ;;  %v7035_v2 = vunpack.i.l.bf16 %v7034_v16  ;;  %v6686_v25 = vpack.c.bf16 %v7041_v59, %v7040_v17 }
 0xc3c   : > { %6201 = vmatmul.mubr.msk.f32.vlgmr.msra.gmra.mrb[70].mxu0 %vm860_vm1, %v3271_v60  ;;  %v3588_v29 = vpop.permute.xlu0 %3587 }
 0xc3d   : > { %6674 = vmatpush3.bf16.xpose.msk.msra.mxu0 %vm7974_vm2, %v6672_v36  ;;  %6203 = vmatprep.mubr.msk.f32.mxu0 %vm7505_vm0, %v7503_v0  ;;  %v6676_v10 = vpack.c.bf16 %v7036_v57, %v7035_v2 }
 0xc3e   : > { %v3277_v22 = vpop.permute.xlu1 %3276  ;;  %6675 = vmatprep.subr.bf16.mxu0 %v7504_v1 }
 0xc40   : > { %6204 = vmatmul.mubr.msk.f32.gmra.mrb[72].mxu0 %vm860_vm1, %v3273_v45  ;;  %v3590_v40 = vpop.permute.xlu0 %3589 }
 0xc41   : > { %6206 = vmatprep.mubr.msk.f32.mxu0 %vm7505_vm0, %v7503_v0 }
 0xc42   : > { %v3604_v8 = vpop.permute.xlu1 %3603 }
 0xc44   : > { %6207 = vmatmul.mubr.msk.f32.gmra.mrb[74].mxu0 %vm860_vm1, %v3275_v3  ;;  %v3594_v34 = vpop.permute.xlu0 %3593 }
 0xc45   : > { %6678 = vmatpush3.bf16.xpose.msk.msra.mxu0 %vm7974_vm2, %v6676_v10  ;;  %6209 = vmatprep.mubr.msk.f32.mxu0 %vm7505_vm0, %v7503_v0 }
 0xc46   : > { %6248 = vmatprep.subr.mxu0 %v7503_v0  ;;  %v3586_v49 = vpop.permute.xlu1 %3585 }
 0xc48   : > { %6210 = vmatmul.mubr.msk.f32.gmra.mrb[76].mxu0 %vm860_vm1, %v3277_v22  ;;  %v3897_v28 = vpop.permute.xlu0 %3896 }
 0xc49   : > { %6212 = vmatprep.mubr.msk.f32.mxu0 %vm7505_vm0, %v7503_v0 }
 0xc4a   : > { %v7044_v9 = vpop.permute.xlu1 %7043 }
 0xc4b   : > { %v7046_v61 = vunpack.i.h.bf16 %v7044_v9  ;;  %v7045_v4 = vunpack.i.l.bf16 %v7044_v9 }
 0xc4c   : > { %6213 = vmatmul.mubr.msk.f32.gmra.mrb[78].mxu0 %vm860_vm1, %v3279_v53  ;;  %v3901_v43 = vpop.permute.xlu0 %3900 }
 0xc4d   : > { %6249 = vmatpush3.xpose.msk.msra.mxu0 %vm860_vm1, %v3604_v8  ;;  %6250 = vmatprep.mubr.msk.f32.mxu0 %vm7505_vm0, %v7503_v0  ;;  %v6690_v42 = vpack.c.bf16 %v7046_v61, %v7045_v4 }
 0xc4e   : > { %6685 = vmatprep.subr.bf16.mxu0 %v7504_v1  ;;  %v3592_v14 = vpop.permute.xlu1 %3591 }
 0xc50   : > { %6251 = vmatmul.mubr.msk.f32.vlgmr.msra.gmra.mrb[80].mxu0 %vm860_vm1, %v3586_v49  ;;  %v3905_v13 = vpop.permute.xlu0 %3904 }
 0xc51   : > { %6688 = vmatpush3.bf16.xpose.msk.msra.mxu0 %vm7974_vm2, %v6686_v25  ;;  %6253 = vmatprep.mubr.msk.f32.mxu0 %vm7505_vm0, %v7503_v0 }
 0xc52   : > { %6689 = vmatprep.subr.bf16.mxu0 %v7504_v1  ;;  %v3915_v23 = vpop.permute.xlu1 %3914 }
 0xc54   : > { %6254 = vmatmul.mubr.msk.f32.gmra.mrb[82].mxu0 %vm860_vm1, %v3588_v29  ;;  %v9023_v4 = vpop.permute.xlu0 %7048 }
 0xc55   : > { %6256 = vmatprep.mubr.msk.f32.mxu0 %vm7505_vm0, %v7503_v0 }
 0xc56   : > { %v3899_v7 = vpop.permute.xlu1 %3898 }
 0xc58   : > { %6257 = vmatmul.mubr.msk.f32.gmra.mrb[84].mxu0 %vm860_vm1, %v3590_v40 }
 0xc59   : > { %6692 = vmatpush3.bf16.xpose.msk.msra.mxu0 %vm7974_vm2, %v6690_v42  ;;  %6259 = vmatprep.mubr.msk.f32.mxu0 %vm7505_vm0, %v7503_v0 }
 0xc5a   : > { %6298 = vmatprep.subr.mxu0 %v7503_v0  ;;  %v3903_v50 = vpop.permute.xlu1 %3902 }
 0xc5c   : > { %6260 = vmatmul.mubr.msk.f32.gmra.mrb[86].mxu0 %vm860_vm1, %v3592_v14 }
 0xc5d   : > { %6262 = vmatprep.mubr.msk.f32.mxu0 %vm7505_vm0, %v7503_v0 }
 0xc5e   : > { %v9027_v14 = vpop.permute.xlu1 %7053 }
 0xc60   : > { %6263 = vmatmul.mubr.msk.f32.gmra.mrb[88].mxu0 %vm860_vm1, %v3594_v34 }
 0xc61   : > { %6299 = vmatpush3.xpose.msk.msra.mxu0 %vm860_vm1, %v3915_v23  ;;  %6300 = vmatprep.mubr.msk.f32.mxu0 %vm7505_vm0, %v7503_v0 }
 0xc62   : > { %6699 = vmatprep.subr.bf16.mxu0 %v7504_v1 }
 0xc64   : > { %6301 = vmatmul.mubr.msk.f32.vlgmr.msra.gmra.mrb[90].mxu0 %vm860_vm1, %v3897_v28 }
 0xc65   : > { %6303 = vmatprep.mubr.msk.f32.mxu0 %vm7505_vm0, %v7503_v0 }
 0xc68   : > { %6304 = vmatmul.mubr.msk.f32.gmra.mrb[92].mxu0 %vm860_vm1, %v3899_v7 }
 0xc69   : > { %6306 = vmatprep.mubr.msk.f32.mxu0 %vm7505_vm0, %v7503_v0 }
 0xc6c   : > { %6307 = vmatmul.mubr.msk.f32.gmra.mrb[94].mxu0 %vm860_vm1, %v3901_v43  ;;  %v9033_v43 = vpop.permute.xlu0 %3472 }
 0xc6d   : > { %6309 = vmatprep.mubr.msk.f32.mxu0 %vm7505_vm0, %v7503_v0 }
 0xc70   : > { %6310 = vmatmul.mubr.msk.f32.gmra.mrb[96].mxu0 %vm860_vm1, %v3903_v50 }
 0xc71   : > { %6312 = vmatprep.mubr.msk.f32.mxu0 %vm7505_vm0, %v7503_v0 }
 0xc74   : > { %6313 = vmatmul.mubr.msk.f32.gmra.mrb[98].mxu0 %vm860_vm1, %v3905_v13 }
 0xc75   : > { %6372 = vmatprep.mubr.msk.f32.mxu0 %vm7505_vm0, %v7503_v0 }
 0xc99   : > { %v3078_v44 = vpop.f32.mrb[80].mxu1 }
 0xc9a   : > { %v8983_v54 = vmul.f32 0.17677669, %v3078_v44  ;;  %v6152_v30 = vpop.f32.mrb[81].mxu1 }
 0xc9c   : > { %v3107_v51 = vsel %vm986_vm4, %v8983_v54, -inf }
 0xc9d   : > { %v3083_v31 = vpop.f32.mrb[82].mxu1  ;;  %3108 = vmax.xlane.f32.xlu1 %v3107_v51 }
 0xc9e   : > { %v8987_v38 = vmul.f32 0.17677669, %v3083_v31  ;;  %v6155_v24 = vpop.f32.mrb[83].mxu1 }
 0xca0   : > { %v3110_v27 = vsel %vm986_vm4, %v8987_v38, -inf }
 0xca1   : > { %3111 = vmax.xlane.f32.xlu0 %v3110_v27  ;;  %v3088_v58 = vpop.f32.mrb[84].mxu1 }
 0xca2   : > { %v8991_v62 = vmul.f32 0.17677669, %v3088_v58  ;;  %v6158_v21 = vpop.f32.mrb[85].mxu1 }
 0xca4   : > { %v3113_v47 = vsel %vm986_vm4, %v8991_v62, -inf }
 0xca5   : > { %3114 = vmax.xlane.f32.xlu0 %v3113_v47  ;;  %v3093_v15 = vpop.f32.mrb[86].mxu1 }
 0xca6   : > { %v8995_v35 = vmul.f32 0.17677669, %v3093_v15  ;;  %v6161_v37 = vpop.f32.mrb[87].mxu1 }
 0xca8   : > { %v3116_v39 = vsel %vm986_vm4, %v8995_v35, -inf }
 0xca9   : > { %3117 = vmax.xlane.f32.xlu1 %v3116_v39  ;;  %v3098_v46 = vpop.f32.mrb[88].mxu1 }
 0xcaa   : > { %v8999_v5 = vmul.f32 0.17677669, %v3098_v46  ;;  %v6164_v6 = vpop.f32.mrb[89].mxu1 }
 0xcac   : > { %v3119_v12 = vsel %vm999_vm5, %v8999_v5, -inf }
 0xcad   : > { %3120 = vmax.xlane.f32.xlu0 %v3119_v12 }
 0xd0f   : > { %v3376_v45 = vpop.f32.mrb[70].mxu0 }
 0xd10   : > { %v9003_v60 = vmul.f32 0.17677669, %v3376_v45  ;;  %v6202_v55 = vpop.f32.mrb[71].mxu0 }
 0xd12   : > { %v3405_v11 = vsel %vm986_vm4, %v9003_v60, -inf }
 0xd13   : > { %3406 = vmax.xlane.f32.xlu1 %v3405_v11  ;;  %v3381_v16 = vpop.f32.mrb[72].mxu0 }
 0xd14   : > { %v9007_v36 = vmul.f32 0.17677669, %v3381_v16  ;;  %v6205_v3 = vpop.f32.mrb[73].mxu0 }
 0xd16   : > { %v3408_v22 = vsel %vm986_vm4, %v9007_v36, -inf }
 0xd17   : > { %3409 = vmax.xlane.f32.xlu0 %v3408_v22  ;;  %v3386_v57 = vpop.f32.mrb[74].mxu0 }
 0xd18   : > { %v9011_v2 = vmul.f32 0.17677669, %v3386_v57  ;;  %v6208_v53 = vpop.f32.mrb[75].mxu0 }
 0xd1a   : > { %v3411_v10 = vsel %vm986_vm4, %v9011_v2, -inf }
 0xd1b   : > { %3412 = vmax.xlane.f32.xlu1 %v3411_v10  ;;  %v3391_v8 = vpop.f32.mrb[76].mxu0 }
 0xd1c   : > { %v9015_v18 = vmul.f32 0.17677669, %v3391_v8  ;;  %v6211_v49 = vpop.f32.mrb[77].mxu0 }
 0xd1e   : > { %v3414_v59 = vsel %vm986_vm4, %v9015_v18, -inf }
 0xd1f   : > { %3415 = vmax.xlane.f32.xlu0 %v3414_v59  ;;  %v3396_v17 = vpop.f32.mrb[78].mxu0 }
 0xd20   : > { %v9019_v25 = vmul.f32 0.17677669, %v3396_v17  ;;  %v6214_v9 = vpop.f32.mrb[79].mxu0 }
 0xd22   : > { %v3417_v29 = vsel %vm999_vm5, %v9019_v25, -inf }
 0xd23   : > { %3418 = vmax.xlane.f32.xlu1 %v3417_v29  ;;  %v3691_v61 = vpop.f32.mrb[80].mxu0 }
 0xd24   : > { %v9025_v40 = vmul.f32 0.17677669, %v3691_v61  ;;  %v6252_v42 = vpop.f32.mrb[81].mxu0 }
 0xd26   : > { %v3720_v34 = vsel %vm986_vm4, %v9025_v40, -inf }
 0xd27   : > { %3721 = vmax.xlane.f32.xlu0 %v3720_v34  ;;  %v3696_v23 = vpop.f32.mrb[82].mxu0 }
 0xd28   : > { %v9031_v28 = vmul.f32 0.17677669, %v3696_v23  ;;  %v6255_v7 = vpop.f32.mrb[83].mxu0 }
 0xd2a   : > { %v3109_v50 = vpop.xlane.xlu1 %3108  ;;  %v3723_v13 = vsel %vm986_vm4, %v9031_v28, -inf }
 0xd2b   : > { %v3122_v44 = vsub.f32 %v8983_v54, %v3109_v50  ;;  %3724 = vmax.xlane.f32.xlu1 %v3723_v13  ;;  %v3701_v30 = vpop.f32.mrb[84].mxu0 }
 0xd2c   : > { %v9038_v51 = vmul.f32 0.17677669, %v3701_v30  ;;  %v6258_v31 = vpop.f32.mrb[85].mxu0 }
 0xd2d   : > { %v3127_v24 = vmul.f32 1.442695, %v3122_v44 }
 0xd2e   : > { %v3112_v27 = vpop.xlane.xlu0 %3111  ;;  %v3726_v58 = vsel %vm986_vm4, %v9038_v51, -inf }
 0xd2f   : > { %7202 = vpow2.f32 %v3127_v24  ;;  %v3123_v21 = vsub.f32 %v8987_v38, %v3112_v27  ;;  %3727 = vmax.xlane.f32.xlu0 %v3726_v58  ;;  %v3706_v47 = vpop.f32.mrb[86].mxu0 }
 0xd30   : > { %v9043_v15 = vmul.f32 0.17677669, %v3706_v47  ;;  %v6261_v37 = vpop.f32.mrb[87].mxu0 }
 0xd31   : > { %v3129_v39 = vmul.f32 1.442695, %v3123_v21 }
 0xd32   : > { %v3115_v54 = vpop.xlane.xlu0 %3114  ;;  %v3729_v46 = vsel %vm986_vm4, %v9043_v15, -inf }
 0xd33   : > { %7204 = vpow2.f32 %v3129_v39  ;;  %v3124_v6 = vsub.f32 %v8991_v62, %v3115_v54  ;;  %3730 = vmax.xlane.f32.xlu1 %v3729_v46  ;;  %v3711_v12 = vpop.f32.mrb[88].mxu0 }
 0xd34   : > { %v9048_v45 = vmul.f32 0.17677669, %v3711_v12  ;;  %v6264_v55 = vpop.f32.mrb[89].mxu0 }
 0xd35   : > { %v3131_v11 = vmul.f32 1.442695, %v3124_v6 }
 0xd36   : > { %v3118_v38 = vpop.xlane.xlu1 %3117  ;;  %v3732_v16 = vsel %vm999_vm5, %v9048_v45, -inf }
 0xd37   : > { %7206 = vpow2.f32 %v3131_v11  ;;  %v3125_v3 = vsub.f32 %v8995_v35, %v3118_v38  ;;  %3733 = vmax.xlane.f32.xlu0 %v3732_v16  ;;  %v4002_v22 = vpop.f32.mrb[90].mxu0 }
 0xd38   : > { %v9053_v57 = vmul.f32 0.17677669, %v4002_v22  ;;  %v6302_v53 = vpop.f32.mrb[91].mxu0 }
 0xd39   : > { %v9055_v10 = vpop.eup %7202  ;;  %v3133_v62 = vmul.f32 1.442695, %v3125_v3 }
 0xd3a   : > { %v3137_v8 = vsel %vm986_vm4, %v9055_v10, 0.0  ;;  %v4031_v49 = vsel %vm986_vm4, %v9053_v57, -inf  ;;  %v3121_v54 = vpop.xlane.xlu0 %3120 }
 0xd3b   : > { %7208 = vpow2.f32 %v3133_v62  ;;  %3138 = vadd.xlane.f32.xlu0 %v3137_v8  ;;  %4032 = vmax.xlane.f32.xlu1 %v4031_v49  ;;  %v4007_v59 = vpop.f32.mrb[92].mxu0  ;;  %v3126_v46 = vsub.f32 %v8999_v5, %v3121_v54 }
 0xd3c   : > { %v9061_v17 = vmul.f32 0.17677669, %v4007_v59  ;;  %v6305_v35 = vpop.f32.mrb[93].mxu0 }
 0xd3d   : > { %v9063_v9 = vpop.eup %7204  ;;  %v3135_v6 = vmul.f32 1.442695, %v3126_v46 }
 0xd3e   : > { %v3140_v29 = vsel %vm986_vm4, %v9063_v9, 0.0  ;;  %v4034_v61 = vsel %vm986_vm4, %v9061_v17, -inf }
 0xd3f   : > { %3141 = vadd.xlane.f32.xlu1 %v3140_v29  ;;  %4035 = vmax.xlane.f32.xlu0 %v4034_v61  ;;  %v4012_v42 = vpop.f32.mrb[94].mxu0  ;;  %7210 = vpow2.f32 %v3135_v6 }
 0xd40   : > { %v9069_v34 = vmul.f32 0.17677669, %v4012_v42  ;;  %v6308_v23 = vpop.f32.mrb[95].mxu0 }
 0xd41   : > { %v9071_v7 = vpop.eup %7206 }
 0xd42   : > { %v3143_v50 = vsel %vm986_vm4, %v9071_v7, 0.0  ;;  %v4037_v13 = vsel %vm986_vm4, %v9069_v34, -inf }
 0xd43   : > { %3144 = vadd.xlane.f32.xlu0 %v3143_v50  ;;  %4038 = vmax.xlane.f32.xlu1 %v4037_v13  ;;  %v4017_v44 = vpop.f32.mrb[96].mxu0 }
 0xd44   : > { %v9077_v30 = vmul.f32 0.17677669, %v4017_v44  ;;  %v6311_v31 = vpop.f32.mrb[97].mxu0 }
 0xd45   : > { %v9079_v24 = vpop.eup %7208 }
 0xd46   : > { %v3146_v27 = vsel %vm986_vm4, %v9079_v24, 0.0  ;;  %v4040_v58 = vsel %vm986_vm4, %v9077_v30, -inf }
 0xd47   : > { %3147 = vadd.xlane.f32.xlu1 %v3146_v27  ;;  %4041 = vmax.xlane.f32.xlu0 %v4040_v58  ;;  %v4022_v21 = vpop.f32.mrb[98].mxu0 }
 0xd48   : > { %v9085_v47 = vmul.f32 0.17677669, %v4022_v21  ;;  %v6314_v37 = vpop.f32.mrb[99].mxu0 }
 0xd49   : > { %v9094_v12 = vpop.eup %7210 }
 0xd4a   : > { %v4043_v39 = vsel %vm999_vm5, %v9085_v47, -inf  ;;  %v3149_v55 = vsel %vm999_vm5, %v9094_v12, 0.0 }
 0xd4b   : > { %4044 = vmax.xlane.f32.xlu1 %v4043_v39 }
 0xd5c   : > { %7058 = vrot.lane.b32.xlu1 %v8846_v20, %s7507_s18 }
 0xd5d   : > { %7063 = vrot.lane.b32.xlu0 %v8856_v26, %s7507_s18 }
 0xd7c   : > { %3150 = vadd.xlane.f32.xlu0 %v3149_v55 }
 0xda0   : > { %v3407_v11 = vpop.xlane.xlu1 %3406 }
 0xda1   : > { %v3420_v38 = vsub.f32 %v9003_v60, %v3407_v11 }
 0xda3   : > { %v3425_v16 = vmul.f32 1.442695, %v3420_v38 }
 0xda4   : > { %v3410_v3 = vpop.xlane.xlu0 %3409 }
 0xda5   : > { %7212 = vpow2.f32 %v3425_v16  ;;  %v3421_v22 = vsub.f32 %v9007_v36, %v3410_v3 }
 0xda7   : > { %v3427_v53 = vmul.f32 1.442695, %v3421_v22 }
 0xda8   : > { %v3413_v62 = vpop.xlane.xlu1 %3412 }
 0xda9   : > { %7214 = vpow2.f32 %v3427_v53  ;;  %v3422_v5 = vsub.f32 %v9011_v2, %v3413_v62 }
 0xdab   : > { %v3429_v8 = vmul.f32 1.442695, %v3422_v5 }
 0xdac   : > { %v3416_v49 = vpop.xlane.xlu0 %3415 }
 0xdad   : > { %7216 = vpow2.f32 %v3429_v8  ;;  %v3423_v59 = vsub.f32 %v9015_v18, %v3416_v49 }
 0xdaf   : > { %v9102_v35 = vpop.eup %7212  ;;  %v3431_v29 = vmul.f32 1.442695, %v3423_v59 }
 0xdb0   : > { %v3419_v61 = vpop.xlane.xlu1 %3418  ;;  %v3435_v60 = vsel %vm986_vm4, %v9102_v35, 0.0 }
 0xdb1   : > { %7218 = vpow2.f32 %v3431_v29  ;;  %v3424_v36 = vsub.f32 %v9019_v25, %v3419_v61  ;;  %3436 = vadd.xlane.f32.xlu1 %v3435_v60 }
 0xdb3   : > { %v9107_v42 = vpop.eup %7214  ;;  %v3433_v23 = vmul.f32 1.442695, %v3424_v36 }
 0xdb4   : > { %v3722_v2 = vpop.xlane.xlu0 %3721  ;;  %v3438_v50 = vsel %vm986_vm4, %v9107_v42, 0.0 }
 0xdb5   : > { %7220 = vpow2.f32 %v3433_v23  ;;  %v3735_v18 = vsub.f32 %v9025_v40, %v3722_v2  ;;  %3439 = vadd.xlane.f32.xlu0 %v3438_v50 }
 0xdb7   : > { %v9112_v13 = vpop.eup %7216  ;;  %v3740_v44 = vmul.f32 1.442695, %v3735_v18  ;;  %v7051_v18 = vunpack.i.h.bf16 %v9023_v4 }
 0xdb8   : > { %v3725_v31 = vpop.xlane.xlu1 %3724  ;;  %v3441_v27 = vsel %vm986_vm4, %v9112_v13, 0.0 }
 0xdb9   : > { %7222 = vpow2.f32 %v3740_v44  ;;  %v3736_v25 = vsub.f32 %v9031_v28, %v3725_v31  ;;  %3442 = vadd.xlane.f32.xlu1 %v3441_v27  ;;  %v7050_v44 = vunpack.i.l.bf16 %v9023_v4  ;;  %v7056_v4 = vunpack.i.h.bf16 %v9027_v14 }
 0xdbb   : > { %v9117_v58 = vpop.eup %7218  ;;  %v3742_v21 = vmul.f32 1.442695, %v3736_v25 }
 0xdbc   : > { %v3728_v37 = vpop.xlane.xlu0 %3727  ;;  %v3444_v39 = vsel %vm986_vm4, %v9117_v58, 0.0 }
 0xdbd   : > { %7224 = vpow2.f32 %v3742_v21  ;;  %v3737_v40 = vsub.f32 %v9038_v51, %v3728_v37  ;;  %3445 = vadd.xlane.f32.xlu0 %v3444_v39 }
 0xdbf   : > { %v9122_v54 = vpop.eup %7220  ;;  %v3744_v46 = vmul.f32 1.442695, %v3737_v40  ;;  %v6666_v40 = vpack.c.bf16 %v7051_v18, %v7050_v44 }
 0xdc0   : > { %v3731_v6 = vpop.xlane.xlu1 %3730  ;;  %v3447_v55 = vsel %vm999_vm5, %v9122_v54, 0.0 }
 0xdc1   : > { %7226 = vpow2.f32 %v3744_v46  ;;  %v3738_v28 = vsub.f32 %v9043_v15, %v3731_v6  ;;  %3448 = vadd.xlane.f32.xlu1 %v3447_v55  ;;  %v7055_v46 = vunpack.i.l.bf16 %v9027_v14 }
 0xdc3   : > { %v9127_v11 = vpop.eup %7222  ;;  %v3746_v38 = vmul.f32 1.442695, %v3738_v28 }
 0xdc4   : > { %v3734_v16 = vpop.xlane.xlu0 %3733  ;;  %v3750_v3 = vsel %vm986_vm4, %v9127_v11, 0.0 }
 0xdc5   : > { %7228 = vpow2.f32 %v3746_v38  ;;  %v3739_v51 = vsub.f32 %v9048_v45, %v3734_v16  ;;  %3751 = vadd.xlane.f32.xlu1 %v3750_v3  ;;  %v6669_v16 = vpack.c.bf16 %v7056_v4, %v7055_v46 }
 0xdc7   : > { %v9132_v22 = vpop.eup %7224  ;;  %v3748_v53 = vmul.f32 1.442695, %v3739_v51 }
 0xdc8   : > { %v3139_v62 = vpop.xlane.xlu0 %3138  ;;  %v9134_v5 = vpop.xlane.xlu1 %4032  ;;  %v3753_v15 = vsel %vm986_vm4, %v9132_v22, 0.0 }
 0xdc9   : > { %7230 = vpow2.f32 %v3748_v53  ;;  %3754 = vadd.xlane.f32.xlu0 %v3753_v15 }
 0xdca   : > { %7232 = vrcp.f32 %v3139_v62 }
 0xdcb   : > { %v9138_v8 = vpop.eup %7226 }
 0xdcc   : > { %v3142_v49 = vpop.xlane.xlu1 %3141  ;;  %v4036_v59 = vpop.xlane.xlu0 %4035  ;;  %v3756_v45 = vsel %vm986_vm4, %v9138_v8, 0.0 }
 0xdcd   : > { %v4047_v29 = vsub.f32 %v9061_v17, %v4036_v59  ;;  %3757 = vadd.xlane.f32.xlu1 %v3756_v45  ;;  %7234 = vrcp.f32 %v3142_v49  ;;  %v4046_v59 = vsub.f32 %v9053_v57, %v9134_v5 }
 0xdcf   : > { %v9143_v61 = vpop.eup %7228  ;;  %v4053_v60 = vmul.f32 1.442695, %v4047_v29  ;;  %v4051_v45 = vmul.f32 1.442695, %v4046_v59 }
 0xdd0   : > { %v3145_v36 = vpop.xlane.xlu0 %3144  ;;  %v4039_v23 = vpop.xlane.xlu1 %4038  ;;  %v3759_v2 = vsel %vm986_vm4, %v9143_v61, 0.0 }
 0xdd1   : > { %7236 = vpow2.f32 %v4053_v60  ;;  %v4048_v50 = vsub.f32 %v9069_v34, %v4039_v23  ;;  %3760 = vadd.xlane.f32.xlu1 %v3759_v2 }
 0xdd2   : > { %7238 = vrcp.f32 %v3145_v36 }
 0xdd3   : > { %v9150_v17 = vpop.eup %7230  ;;  %v4055_v31 = vmul.f32 1.442695, %v4048_v50 }
 0xdd4   : > { %v7233_v27 = vpop.eup %7232  ;;  %v3148_v25 = vpop.xlane.xlu1 %3147  ;;  %v3762_v37 = vsel %vm999_vm5, %v9150_v17, 0.0 }
 0xdd5   : > { %v4042_v21 = vpop.xlane.xlu0 %4041  ;;  %v3153_v39 = vmul.f32 %v7233_v27, %v9055_v10  ;;  %7240 = vpow2.f32 %v4055_v31  ;;  %3763 = vadd.xlane.f32.xlu1 %v3762_v37 }
 0xdd6   : > { %v4049_v34 = vsub.f32 %v9077_v30, %v4042_v21  ;;  %7242 = vrcp.f32 %v3148_v25 }
 0xdd7   : > { %6176 = vmatmul.mubr.msk.f32.vlgmr.msra.gmra.mrb[90].mxu1 %vm986_vm4, %v3153_v39  ;;  %v7235_v55 = vpop.eup %7234 }
 0xdd8   : > { %v4057_v6 = vmul.f32 1.442695, %v4049_v34  ;;  %6667 = vmatpush3.bf16.msra.mxu1 %v6666_v40  ;;  %v4045_v28 = vpop.xlane.xlu1 %4044  ;;  %6178 = vmatprep.mubr.msk.f32.mxu1 %vm7505_vm0, %v7503_v0  ;;  %v3155_v30 = vmul.f32 %v7235_v55, %v9063_v9 }
 0xdd9   : > { %v4050_v10 = vsub.f32 %v9085_v47, %v4045_v28  ;;  %6668 = vmatprep.subr.bf16.mxu1 %v7504_v1  ;;  %v7064_v36 = vpop.permute.xlu0 %7063 }
 0xdda   : > { %7244 = vpow2.f32 %v4057_v6  ;;  %v7066_v25 = vunpack.i.h.bf16 %v7064_v36  ;;  %v7065_v21 = vunpack.i.l.bf16 %v7064_v36 }
 0xddb   : > { %v9164_v38 = vpop.eup %7236  ;;  %v4059_v14 = vmul.f32 1.442695, %v4050_v10  ;;  %6179 = vmatmul.mubr.msk.f32.gmra.mrb[92].mxu1 %vm986_vm4, %v3155_v30 }
 0xddc   : > { %v7239_v3 = vpop.eup %7238  ;;  %v4064_v51 = vsel %vm986_vm4, %v9164_v38, 0.0  ;;  %6670 = vmatpush3.bf16.msra.mxu1 %v6669_v16  ;;  %6181 = vmatprep.mubr.msk.f32.mxu1 %vm7505_vm0, %v7503_v0  ;;  %v6683_v40 = vpack.c.bf16 %v7066_v25, %v7065_v21 }
 0xddd   : > { %7246 = vpow2.f32 %v4059_v14  ;;  %v3157_v47 = vmul.f32 %v7239_v3, %v9071_v7  ;;  %6223 = vmatprep.subr.mxu1 %v7503_v0  ;;  %4065 = vadd.xlane.f32.xlu1 %v4064_v51 }
 0xdde   : > { %7248 = vpow2.f32 %v4051_v45 }
 0xddf   : > { %v9173_v9 = vpop.eup %7240  ;;  %3783 = vrot.lane.b32.xlu0 %v8882_v41, %s7507_s18  ;;  %6182 = vmatmul.mubr.msk.f32.gmra.mrb[94].mxu1 %vm986_vm4, %v3157_v47 }
 0xde0   : > { %v7243_v53 = vpop.eup %7242  ;;  %v4067_v62 = vsel %vm986_vm4, %v9173_v9, 0.0  ;;  %6224 = vmatpush3.msk.msra.mxu1 %vm1058_vm3, %v9033_v43  ;;  %6184 = vmatprep.mubr.msk.f32.mxu1 %vm7505_vm0, %v7503_v0 }
 0xde1   : > { %v3159_v7 = vmul.f32 %v7243_v53, %v9079_v24  ;;  %4068 = vadd.xlane.f32.xlu1 %v4067_v62  ;;  %6679 = vmatprep.subr.bf16.mxu1 %v7504_v1 }
 0xde3   : > { %6185 = vmatmul.mubr.msk.f32.gmra.mrb[96].mxu1 %vm986_vm4, %v3159_v7 }
 0xde4   : > { %v9186_v15 = vpop.eup %7244  ;;  %6187 = vmatprep.mubr.msk.f32.mxu1 %vm7505_vm0, %v7503_v0 }
 0xde5   : > { %v4070_v49 = vsel %vm986_vm4, %v9186_v15, 0.0 }
 0xde6   : > { %4071 = vadd.xlane.f32.xlu1 %v4070_v49 }
 0xde7   : > { %v9193_v43 = vpop.eup %7246 }
 0xde8   : > { %v4073_v24 = vsel %vm999_vm5, %v9193_v43, 0.0  ;;  %v9199_v29 = vpop.eup %7248 }
 0xde9   : > { %v4061_v60 = vsel %vm986_vm4, %v9199_v29, 0.0 }
 0xdea   : > { %4074 = vadd.xlane.f32.xlu1 %v4073_v24 }
 0xdfb   : > { %7068 = vrot.lane.b32.xlu1 %v8846_v20, %s7508_s16  ;;  %v7059_v20 = vpop.permute.xlu1 %7058 }
 0xdfc   : > { %v7061_v44 = vunpack.i.h.bf16 %v7059_v20  ;;  %v7060_v31 = vunpack.i.l.bf16 %v7059_v20 }
 0xdfe   : > { %4062 = vadd.xlane.f32.xlu0 %v4061_v60  ;;  %v6680_v37 = vpack.c.bf16 %v7061_v44, %v7060_v31 }
 0xe09   : > { %v3151_v23 = vpop.xlane.xlu0 %3150 }
 0xe0a   : > { %7250 = vrcp.f32 %v3151_v23 }
 0xe14   : > { %v7251_v2 = vpop.eup %7250  ;;  %7073 = vrot.lane.b32.xlu0 %v8856_v26, %s7508_s16 }
 0xe15   : > { %v3161_v57 = vmul.f32 %v7251_v2, %v9094_v12 }
 0xe17   : > { %6188 = vmatmul.mubr.msk.f32.gmra.mrb[98].mxu1 %vm986_vm4, %v3161_v57 }
 0xe18   : > { %4094 = vrot.lane.b32.xlu0 %v8882_v41, %s7508_s16  ;;  %6225 = vmatprep.mubr.msk.f32.mxu1 %vm7505_vm0, %v7503_v0 }
 0xe3e   : > { %v3437_v5 = vpop.xlane.xlu1 %3436 }
 0xe3f   : > { %7252 = vrcp.f32 %v3437_v5 }
 0xe42   : > { %v3440_v50 = vpop.xlane.xlu0 %3439 }
 0xe43   : > { %7254 = vrcp.f32 %v3440_v50 }
 0xe46   : > { %v3443_v18 = vpop.xlane.xlu1 %3442 }
 0xe47   : > { %7256 = vrcp.f32 %v3443_v18 }
 0xe49   : > { %v7253_v26 = vpop.eup %7252 }
 0xe4a   : > { %v3451_v12 = vmul.f32 %v7253_v26, %v9102_v35  ;;  %v3446_v27 = vpop.xlane.xlu0 %3445 }
 0xe4b   : > { %7258 = vrcp.f32 %v3446_v27 }
 0xe4c   : > { %6226 = vmatmul.mubr.msk.f32.vlgmr.msra.gmra.mrb[100].mxu1 %vm986_vm4, %v3451_v12 }
 0xe4d   : > { %v7255_v41 = vpop.eup %7254  ;;  %6681 = vmatpush3.bf16.msra.mxu1 %v6680_v37  ;;  %6228 = vmatprep.mubr.msk.f32.mxu1 %vm7505_vm0, %v7503_v0 }
 0xe4e   : > { %v3449_v39 = vpop.xlane.xlu1 %3448  ;;  %6682 = vmatprep.subr.bf16.mxu1 %v7504_v1  ;;  %v3453_v34 = vmul.f32 %v7255_v41, %v9107_v42 }
 0xe4f   : > { %7260 = vrcp.f32 %v3449_v39 }
 0xe50   : > { %6229 = vmatmul.mubr.msk.f32.gmra.mrb[102].mxu1 %vm986_vm4, %v3453_v34 }
 0xe51   : > { %v7257_v35 = vpop.eup %7256  ;;  %6684 = vmatpush3.bf16.msra.mxu1 %v6683_v40  ;;  %6231 = vmatprep.mubr.msk.f32.mxu1 %vm7505_vm0, %v7503_v0 }
 0xe52   : > { %v3752_v4 = vpop.xlane.xlu1 %3751  ;;  %v3455_v46 = vmul.f32 %v7257_v35, %v9112_v13  ;;  %6273 = vmatprep.subr.mxu1 %v7503_v0 }
 0xe53   : > { %7262 = vrcp.f32 %v3752_v4 }
 0xe54   : > { %6232 = vmatmul.mubr.msk.f32.gmra.mrb[104].mxu1 %vm986_vm4, %v3455_v46 }
 0xe55   : > { %v7259_v6 = vpop.eup %7258  ;;  %6234 = vmatprep.mubr.msk.f32.mxu1 %vm7505_vm0, %v7503_v0 }
 0xe56   : > { %v3755_v42 = vpop.xlane.xlu0 %3754  ;;  %v3457_v55 = vmul.f32 %v7259_v6, %v9117_v58 }
 0xe57   : > { %7264 = vrcp.f32 %v3755_v42 }
 0xe58   : > { %6235 = vmatmul.mubr.msk.f32.gmra.mrb[106].mxu1 %vm986_vm4, %v3457_v55 }
 0xe59   : > { %v7261_v28 = vpop.eup %7260  ;;  %6237 = vmatprep.mubr.msk.f32.mxu1 %vm7505_vm0, %v7503_v0 }
 0xe5a   : > { %v3784_v13 = vpop.permute.xlu0 %3783  ;;  %v3758_v10 = vpop.xlane.xlu1 %3757  ;;  %v3459_v30 = vmul.f32 %v7261_v28, %v9122_v54 }
 0xe5b   : > { %7266 = vrcp.f32 %v3758_v10  ;;  %6274 = vmatpush3.msk.msra.mxu1 %vm1058_vm3, %v3784_v13 }
 0xe5c   : > { %6238 = vmatmul.mubr.msk.f32.gmra.mrb[108].mxu1 %vm986_vm4, %v3459_v30  ;;  %6693 = vmatprep.subr.bf16.mxu1 %v7504_v1 }
 0xe5d   : > { %v7263_v16 = vpop.eup %7262  ;;  %6275 = vmatprep.mubr.msk.f32.mxu1 %vm7505_vm0, %v7503_v0 }
 0xe5e   : > { %v3766_v58 = vmul.f32 %v7263_v16, %v9127_v11  ;;  %v3761_v14 = vpop.xlane.xlu1 %3760 }
 0xe5f   : > { %7268 = vrcp.f32 %v3761_v14  ;;  %v5394_v14 = vld [vmem:[%s9551_s3 + $0x80] sm:$0xff] }
 0xe60   : > { %6276 = vmatmul.mubr.msk.f32.vlgmr.msra.gmra.mrb[110].mxu1 %vm986_vm4, %v3766_v58 }
 0xe61   : > { %v7265_v3 = vpop.eup %7264  ;;  %6278 = vmatprep.mubr.msk.f32.mxu1 %vm7505_vm0, %v7503_v0 }
 0xe62   : > { %v3764_v54 = vpop.xlane.xlu1 %3763  ;;  %v3768_v51 = vmul.f32 %v7265_v3, %v9132_v22  ;;  %v5395_v3 = vld [vmem:[%s9551_s3 + $0x88] sm:$0xff] }
 0xe63   : > { %7270 = vrcp.f32 %v3764_v54  ;;  %v5396_v54 = vld [vmem:[%s9551_s3 + $0x90] sm:$0xff] }
 0xe64   : > { %6279 = vmatmul.mubr.msk.f32.gmra.mrb[112].mxu1 %vm986_vm4, %v3768_v51 }
 0xe65   : > { %v7267_v47 = vpop.eup %7266  ;;  %6281 = vmatprep.mubr.msk.f32.mxu1 %vm7505_vm0, %v7503_v0 }
 0xe66   : > { %v3770_v11 = vmul.f32 %v7267_v47, %v9138_v8  ;;  %v6700_v47 = vpack.c.bf16 %v5395_v3, %v5394_v14 }
 0xe68   : > { %6282 = vmatmul.mubr.msk.f32.gmra.mrb[114].mxu1 %vm986_vm4, %v3770_v11  ;;  %v5397_v11 = vld [vmem:[%s9551_s3 + $0x98] sm:$0xff]  ;;  %6701 = vmatpush3.bf16.msra.mxu0 %v6700_v47 }
 0xe69   : > { %v7269_v53 = vpop.eup %7268  ;;  %6284 = vmatprep.mubr.msk.f32.mxu1 %vm7505_vm0, %v7503_v0  ;;  %6702 = vmatprep.subr.bf16.mxu0 %v7504_v1 }
 0xe6a   : > { %v3772_v62 = vmul.f32 %v7269_v53, %v9143_v61  ;;  %v4066_v7 = vpop.xlane.xlu1 %4065  ;;  %v6703_v53 = vpack.c.bf16 %v5397_v11, %v5396_v54 }
 0xe6c   : > { %6285 = vmatmul.mubr.msk.f32.gmra.mrb[116].mxu1 %vm986_vm4, %v3772_v62  ;;  %6704 = vmatpush3.bf16.msra.mxu0 %v6703_v53 }
 0xe6d   : > { %v7271_v22 = vpop.eup %7270  ;;  %6287 = vmatprep.mubr.msk.f32.mxu1 %vm7505_vm0, %v7503_v0  ;;  %6705 = vmatprep.subr.bf16.mxu0 %v7504_v1 }
 0xe6e   : > { %v3774_v49 = vmul.f32 %v7271_v22, %v9150_v17  ;;  %v4069_v59 = vpop.xlane.xlu1 %4068  ;;  %v5399_v22 = vld [vmem:[%s9551_s3 + $0xa8] sm:$0xff] }
 0xe70   : > { %6288 = vmatmul.mubr.msk.f32.gmra.mrb[118].mxu1 %vm986_vm4, %v3774_v49 }
 0xe71   : > { %6325 = vmatprep.mubr.msk.f32.mxu1 %vm7505_vm0, %v7503_v0 }
 0xe73   : > { %v4072_v8 = vpop.xlane.xlu1 %4071 }
 0xe77   : > { %v4075_v24 = vpop.xlane.xlu1 %4074 }
 0xe7b   : > { %v7069_v45 = vpop.permute.xlu1 %7068 }
 0xe7c   : > { %v7071_v60 = vunpack.i.h.bf16 %v7069_v45  ;;  %v7070_v61 = vunpack.i.l.bf16 %v7069_v45  ;;  %v5401_v45 = vld [vmem:[%s9551_s3 + $0xb8] sm:$0xff] }
 0xe7e   : > { %v6694_v36 = vpack.c.bf16 %v7071_v60, %v7070_v61 }
 0xe80   : > { %6695 = vmatpush3.bf16.msra.mxu1 %v6694_v36 }
 0xe81   : > { %6696 = vmatprep.subr.bf16.mxu1 %v7504_v1 }
 0xe8b   : > { %v4063_v23 = vpop.xlane.xlu0 %4062 }
 0xe8c   : > { %7272 = vrcp.f32 %v4063_v23 }
 0xe8d   : > { %7274 = vrcp.f32 %v4066_v7  ;;  %v5398_v7 = vld [vmem:[%s9551_s3 + $0xa0] sm:$0xff] }
 0xe8e   : > { %7276 = vrcp.f32 %v4069_v59  ;;  %v6706_v59 = vpack.c.bf16 %v5399_v22, %v5398_v7 }
 0xe8f   : > { %v7074_v2 = vpop.permute.xlu0 %7073  ;;  %7278 = vrcp.f32 %v4072_v8 }
 0xe90   : > { %v7076_v17 = vunpack.i.h.bf16 %v7074_v2  ;;  %v7075_v57 = vunpack.i.l.bf16 %v7074_v2  ;;  %7280 = vrcp.f32 %v4075_v24  ;;  %v5400_v24 = vld [vmem:[%s9551_s3 + $0xb0] sm:$0xff]  ;;  %6707 = vmatpush3.bf16.msra.mxu0 %v6706_v59  ;;  %v5402_v2 = vld [vmem:[%s9551_s3 + $0xc0] sm:$0xff] }
 0xe91   : > { %v6709_v36 = vpack.c.bf16 %v5401_v45, %v5400_v24  ;;  %6708 = vmatprep.subr.bf16.mxu0 %v7504_v1 }
 0xe92   : > { %v6697_v20 = vpack.c.bf16 %v7076_v17, %v7075_v57  ;;  %v5403_v17 = vld [vmem:[%s9551_s3 + $0xc8] sm:$0xff] }
 0xe93   : > { %v4095_v18 = vpop.permute.xlu0 %4094 }
 0xe94   : > { %6698 = vmatpush3.bf16.msra.mxu1 %v6697_v20  ;;  %6710 = vmatpush3.bf16.msra.mxu0 %v6709_v36  ;;  %v6712_v20 = vpack.c.bf16 %v5403_v17, %v5402_v2 }
 0xe95   : > { %6323 = vmatprep.subr.mxu1 %v7503_v0  ;;  %6711 = vmatprep.subr.bf16.mxu0 %v7504_v1 }
 0xe96   : > { %v7273_v5 = vpop.eup %7272 }
 0xe97   : > { %v4077_v50 = vmul.f32 %v7273_v5, %v9199_v29  ;;  %v7275_v44 = vpop.eup %7274 }
 0xe98   : > { %6324 = vmatpush3.msk.msra.mxu1 %vm1058_vm3, %v4095_v18  ;;  %v4079_v31 = vmul.f32 %v7275_v44, %v9164_v38  ;;  %v7277_v26 = vpop.eup %7276  ;;  %v5405_v18 = vld [vmem:[%s9551_s3 + $0xd8] sm:$0xff]  ;;  %6713 = vmatpush3.bf16.msra.mxu0 %v6712_v20 }
 0xe99   : > { %6326 = vmatmul.mubr.msk.f32.vlgmr.msra.gmra.mrb[120].mxu1 %vm986_vm4, %v4077_v50  ;;  %v4081_v29 = vmul.f32 %v7277_v26, %v9173_v9  ;;  %v7279_v12 = vpop.eup %7278  ;;  %v5404_v50 = vld [vmem:[%s9551_s3 + $0xd0] sm:$0xff]  ;;  %6714 = vmatprep.subr.bf16.mxu0 %v7504_v1 }
 0xe9a   : > { %6328 = vmatprep.mubr.msk.f32.mxu1 %vm7505_vm0, %v7503_v0  ;;  %v4083_v27 = vmul.f32 %v7279_v12, %v9186_v15  ;;  %v7281_v25 = vpop.eup %7280  ;;  %v6715_v26 = vpack.c.bf16 %v5405_v18, %v5404_v50  ;;  %v5406_v12 = vld [vmem:[%s9551_s3 + $0xe0] sm:$0xff] }
 0xe9b   : > { %v4085_v38 = vmul.f32 %v7281_v25, %v9193_v43 }
 0xe9c   : > { %6716 = vmatpush3.bf16.msra.mxu0 %v6715_v26  ;;  %v5411_v26 = vld [vmem:[%s9552_s4 + $0x1] ss:$0 sm:$0xff] }
 0xe9d   : > { %6329 = vmatmul.mubr.msk.f32.gmra.mrb[122].mxu1 %vm986_vm4, %v4079_v31  ;;  %6717 = vmatprep.subr.bf16.mxu0 %v7504_v1 }
 0xe9e   : > { %6331 = vmatprep.mubr.msk.f32.mxu1 %vm7505_vm0, %v7503_v0 }
 0xea1   : > { %6332 = vmatmul.mubr.msk.f32.gmra.mrb[124].mxu1 %vm986_vm4, %v4081_v29 }
 0xea2   : > { %6334 = vmatprep.mubr.msk.f32.mxu1 %vm7505_vm0, %v7503_v0 }
 0xea5   : > { %6335 = vmatmul.mubr.msk.f32.gmra.mrb[126].mxu1 %vm986_vm4, %v4083_v27  ;;  %v5407_v27 = vld [vmem:[%s9551_s3 + $0xe8] sm:$0xff] }
 0xea6   : > { %6337 = vmatprep.mubr.msk.f32.mxu1 %vm7505_vm0, %v7503_v0 }
 0xea9   : > { %6338 = vmatmul.mubr.msk.f32.gmra.mrb[128].mxu1 %vm986_vm4, %v4085_v38  ;;  %v6718_v38 = vpack.c.bf16 %v5407_v27, %v5406_v12 }
 0xeaa   : > { %v9278_v21 = vpop.f32.mrb[90].mxu1  ;;  %4595 = vmatprep.mubr.f32.mxu1 %v7503_v0 }
 0xeab   : > { %v6177_v9 = vpop.f32.mrb[91].mxu1  ;;  %6719 = vmatpush3.bf16.msra.mxu0 %v6718_v38 }
 0xeac   : > { %6720 = vmatprep.subr.bf16.mxu0 %v7504_v1  ;;  %v5408_v9 = vld [vmem:[%s9551_s3 + $0xf0] sm:$0xff] }
 0xeae   : > { %v9281_v37 = vpop.f32.mrb[92].mxu1 }
 0xeaf   : > { %v6180_v41 = vpop.f32.mrb[93].mxu1 }
 0xeb0   : > { %v5409_v41 = vld [vmem:[%s9551_s3 + $0xf8] sm:$0xff] }
 0xeb2   : > { %v9283_v39 = vpop.f32.mrb[94].mxu1 }
 0xeb3   : > { %v6183_v15 = vpop.f32.mrb[95].mxu1 }
 0xeb4   : > { %v6721_v15 = vpack.c.bf16 %v5409_v41, %v5408_v9 }
 0xeb6   : > { %v9285_v34 = vpop.f32.mrb[96].mxu1  ;;  %6722 = vmatpush3.bf16.msra.mxu0 %v6721_v15 }
 0xeb7   : > { %v6186_v40 = vpop.f32.mrb[97].mxu1 }
 0xeea   : > { %v9287_v35 = vpop.f32.mrb[98].mxu1 }
 0xeeb   : > { %v6189_v4 = vpop.f32.mrb[99].mxu1 }
 0xf1f   : > { %v3561_v43 = vpop.f32.mrb[100].mxu1 }
 0xf20   : > { %v6227_v46 = vpop.f32.mrb[101].mxu1 }
 0xf23   : > { %v3566_v6 = vpop.f32.mrb[102].mxu1 }
 0xf24   : > { %v7077_v42 = vpack.i.bf16 %v3566_v6, %v3561_v43  ;;  %v6230_v55 = vpop.f32.mrb[103].mxu1 }
 0xf26   : > { %7078 = vrot.lane.b32.xlu0 %v7077_v42, %s7508_s16 }
 0xf27   : > { %v3571_v28 = vpop.f32.mrb[104].mxu1 }
 0xf28   : > { %v6233_v13 = vpop.f32.mrb[105].mxu1 }
 0xf2b   : > { %v3576_v10 = vpop.f32.mrb[106].mxu1 }
 0xf2c   : > { %v7092_v30 = vpack.i.bf16 %v3576_v10, %v3571_v28  ;;  %v6236_v16 = vpop.f32.mrb[107].mxu1 }
 0xf2e   : > { %7093 = vrot.lane.b32.xlu1 %v7092_v30, %s7508_s16 }
 0xf2f   : > { %v9291_v58 = vpop.f32.mrb[108].mxu1 }
 0xf30   : > { %v6239_v51 = vpop.f32.mrb[109].mxu1 }
 0xf33   : > { %v3872_v62 = vpop.f32.mrb[110].mxu1 }
 0xf34   : > { %v6277_v49 = vpop.f32.mrb[111].mxu1 }
 0xf37   : > { %v3877_v8 = vpop.f32.mrb[112].mxu1 }
 0xf38   : > { %v7082_v60 = vpack.i.bf16 %v3877_v8, %v3872_v62  ;;  %v6280_v61 = vpop.f32.mrb[113].mxu1 }
 0xf3a   : > { %7083 = vrot.lane.b32.xlu0 %v7082_v60, %s7507_s18 }
 0xf3b   : > { %v3882_v23 = vpop.f32.mrb[114].mxu1 }
 0xf3c   : > { %v6283_v57 = vpop.f32.mrb[115].mxu1 }
 0xf3f   : > { %v3887_v5 = vpop.f32.mrb[116].mxu1 }
 0xf40   : > { %v7097_v44 = vpack.i.bf16 %v3887_v5, %v3882_v23  ;;  %v6286_v31 = vpop.f32.mrb[117].mxu1 }
 0xf43   : > { %v3892_v29 = vpop.f32.mrb[118].mxu1 }
 0xf44   : > { %v6289_v25 = vpop.f32.mrb[119].mxu1 }
 0xf6c   : > { %v4183_v40 = vpop.f32.mrb[120].mxu1 }
 0xf6d   : > { %v6327_v4 = vpop.f32.mrb[121].mxu1 }
 0xf70   : > { %v4188_v43 = vpop.f32.mrb[122].mxu1 }
 0xf71   : > { %v7087_v46 = vpack.i.bf16 %v4188_v43, %v4183_v40  ;;  %v6330_v6 = vpop.f32.mrb[123].mxu1 }
 0xf73   : > { %7088 = vrot.lane.b32.xlu0 %v7087_v46, %s7506_s17 }
 0xf74   : > { %v4193_v42 = vpop.f32.mrb[124].mxu1 }
 0xf75   : > { %4256 = vrot.lane.b32.xlu1 %v4193_v42, %s7506_s17  ;;  %v6333_v1 = vpop.f32.mrb[125].mxu1 }
 0xf77   : > { %7098 = vrot.lane.b32.xlu0 %v7097_v44, %s7507_s18 }
 0xf78   : > { %v4198_v55 = vpop.f32.mrb[126].mxu1 }
 0xf79   : > { %4220 = vrot.lane.b32.xlu1 %v9291_v58, %s7508_s16  ;;  %v6336_v28 = vpop.f32.mrb[127].mxu1  ;;  %s598_s16 = sand.u32 1, %s7485_s25  }
 0xf7a   : > { %s599_s14 = scalar_lea.vmem [#allocation10], %s598_s16  ;;  %s5090_s30 = scalar_lea.sflag [#allocation4], %s598_s16 }
 0xf7b   : > { %4258 = vrot.lane.b32.xlu0 %v4198_v55, %s7506_s17  ;;  %s5102_s0 = sshll.u32 %s599_s14, 4  ;;  %s9508_s0 = int_to_ptr.vmem [resolvable:$true] %s5102_s0 }
 0xf7c   : > { %v4203_v13 = vpop.f32.mrb[128].mxu1  ;;  %s7419_s19 = scalar_lea.vmem %s9508_s0, 16  ;;  %p7426_p8 = scmp.lt.s32.totalorder %s9508_s0, %s7424_s24 }
 0xf7d   : > { %4260 = vrot.lane.b32.xlu1 %v4203_v13, %s7506_s17  ;;  %v6339_v10 = vpop.f32.mrb[129].mxu1  ;;  %s9613_s17 = sld [smem:[#allocation25_spill]]  ;;  %p7420_p2 = scmp.ne.s32.totalorder %s9508_s0, %s7419_s19 }
 0xf7e   : > { %v4487_v10 = vld [vmem:[#allocation2 + $0x108] sm:$0xff] }
 0xf7f   : > { %4240 = vrot.lane.b32.xlu0 %v3892_v29, %s7507_s18  ;;  %s9614_s18 = sld [smem:[#allocation20_spill]] }
 0xf85   : > { %p9617_p3 = scmp.ne.s32.totalorder %s9614_s18, 0 }
 0xf87   : > { %p7421_p4 = pnand %p7420_p2, %p9617_p3 }
 0xf89   : > { %p7422_p7 = pneg %p7421_p4 }
 0xf98   : > { %v7079_v30 = vpop.permute.xlu0 %7078 }
 0xf99   : > { %v7080_v14 = vunpack.i.l.bf16 %v7079_v30  ;;  %v7081_v47 = vunpack.i.h.bf16 %v7079_v30  ;;  %v4489_v30 = vld [vmem:[#allocation2 + $0x118] sm:$0xff] }
 0xf9b   : > { %v4267_v11 = vsel %vm860_vm1, %v9278_v21, %v7080_v14  ;;  %v4268_v24 = vsel %vm860_vm1, %v9281_v37, %v7081_v47  ;;  %v6723_v14 = vpack.c.bf16 %v4489_v30, %v4487_v10  ;;  %v4512_v10 = vld [vmem:[#allocation2 + $0x1d0] sm:$0xff] }
 0xf9d   : > { %6724 = vmatprep.subr.bf16.mxu1 %v6723_v14  ;;  %v4517_v14 = vld [vmem:[#allocation2 + $0x1f8] sm:$0xff] }
 0xfa0   : > { %v7094_v54 = vpop.permute.xlu1 %7093 }
 0xfa1   : > { %v7095_v7 = vunpack.i.l.bf16 %v7094_v54  ;;  %v7096_v60 = vunpack.i.h.bf16 %v7094_v54  ;;  %v4493_v54 = vld [vmem:[#allocation2 + $0x138] sm:$0xff] }
 0xfa3   : > { %v4269_v36 = vsel %vm860_vm1, %v9283_v39, %v7095_v7  ;;  %v4270_v37 = vsel %vm860_vm1, %v9285_v34, %v7096_v60  ;;  %v4494_v7 = vld [vmem:[#allocation2 + $0x140] sm:$0xff] }
 0xfac   : > { %v7084_v16 = vpop.permute.xlu0 %7083 }
 0xfad   : > { %v7085_v3 = vunpack.i.l.bf16 %v7084_v16  ;;  %v7086_v53 = vunpack.i.h.bf16 %v7084_v16  ;;  %v4486_v16 = vld [vmem:[#allocation2 + $0x100] sm:$0xff] }
 0xfaf   : > { %v4272_v62 = vsel %vm2154_vm6, %v4267_v11, %v7085_v3  ;;  %v4273_v21 = vsel %vm2154_vm6, %v4268_v24, %v7086_v53  ;;  %v4491_v3 = vld [vmem:[#allocation2 + $0x128] sm:$0xff]  ;;  %v4490_v11 = vld [vmem:[#allocation2 + $0x120] sm:$0xff]  ;;  %v4497_v53 = vld [vmem:[#allocation2 + $0x158] sm:$0xff] }
 0xfb0   : > { %v6727_v47 = vpack.c.bf16 %v4493_v54, %v4491_v3  ;;  %v4514_v3 = vld [vmem:[#allocation2 + $0x1e0] sm:$0xff]  ;;  %v4516_v54 = vld [vmem:[#allocation2 + $0x1f0] sm:$0xff] }
 0xfe5   : > { %v7089_v51 = vpop.permute.xlu0 %7088 }
 0xfe6   : > { %v7090_v58 = vunpack.i.l.bf16 %v7089_v51  ;;  %v7091_v22 = vunpack.i.h.bf16 %v7089_v51 }
 0xfe7   : > { %v4257_v45 = vpop.permute.xlu1 %4256 }
 0xfe8   : > { %v4277_v49 = vsel %vm2160_vm7, %v4272_v62, %v7090_v58  ;;  %v4278_v61 = vsel %vm2160_vm7, %v4273_v21, %v7091_v22  ;;  %v4495_v58 = vld [vmem:[#allocation2 + $0x148] sm:$0xff]  ;;  %v4496_v22 = vld [vmem:[#allocation2 + $0x150] sm:$0xff] }
 0xfe9   : > { %v7099_v59 = vpop.permute.xlu0 %7098  ;;  %6373 = vmatmul.mubr.f32.vlgmr.msra.gmra.mrb[100].mxu0 %v4277_v49  ;;  %v6733_v49 = vpack.c.bf16 %v4496_v22, %v4494_v7 }
 0xfea   : > { %v7100_v8 = vunpack.i.l.bf16 %v7099_v59  ;;  %6375 = vmatprep.mubr.msk.f32.mxu0 %vm7505_vm0, %v7503_v0  ;;  %v7101_v23 = vunpack.i.h.bf16 %v7099_v59 }
 0xfeb   : > { %v4221_v20 = vpop.permute.xlu1 %4220 }
 0xfec   : > { %v4274_v17 = vsel %vm2154_vm6, %v4269_v36, %v7100_v8  ;;  %v4275_v5 = vsel %vm2154_vm6, %v4270_v37, %v7101_v23  ;;  %v4271_v39 = vsel %vm860_vm1, %v9287_v35, %v4221_v20 }
 0xfed   : > { %6376 = vmatmul.mubr.f32.gmra.mrb[102].mxu0 %v4278_v61  ;;  %v4259_v2 = vpop.permute.xlu0 %4258  ;;  %v4279_v57 = vsel %vm2160_vm7, %v4274_v17, %v4257_v45 }
 0xfee   : > { %6378 = vmatprep.mubr.msk.f32.mxu0 %vm7505_vm0, %v7503_v0  ;;  %v4280_v18 = vsel %vm2160_vm7, %v4275_v5, %v4259_v2 }
 0xfef   : > { %v4261_v34 = vpop.permute.xlu1 %4260 }
 0xff1   : > { %6379 = vmatmul.mubr.f32.gmra.mrb[104].mxu0 %v4279_v57  ;;  %v4241_v50 = vpop.permute.xlu0 %4240 }
 0xff2   : > { %6381 = vmatprep.mubr.msk.f32.mxu0 %vm7505_vm0, %v7503_v0  ;;  %v4276_v44 = vsel %vm2154_vm6, %v4271_v39, %v4241_v50 }
 0xff3   : > { %v4281_v31 = vsel %vm2160_vm7, %v4276_v44, %v4261_v34 }
 0xff5   : > { %6382 = vmatmul.mubr.f32.gmra.mrb[106].mxu0 %v4280_v18 }
 0xff6   : > { %6384 = vmatprep.mubr.msk.f32.mxu0 %vm7505_vm0, %v7503_v0 }
 0xff9   : > { %6385 = vmatmul.mubr.f32.gmra.mrb[108].mxu0 %v4281_v31  ;;  %v4499_v31 = vld [vmem:[#allocation2 + $0x168] sm:$0xff] }
0x10bc   : > { %v4373_v29 = vpop.f32.mrb[100].mxu0 }
0x10bd   : > { %v4374_v12 = vadd.f32 %v5411_v26, %v4373_v29  ;;  %v6374_v27 = vpop.f32.mrb[101].mxu0 }
0x10be   : > { %v4500_v27 = vld [vmem:[#allocation2 + $0x170] sm:$0xff] }
0x10bf   : > { %v4397_v35 = vadd.f32 %v4374_v12, %v8796_v52  ;;  %v4498_v12 = vld [vmem:[#allocation2 + $0x160] sm:$0xff] }
0x10c0   : > { %v4378_v25 = vpop.f32.mrb[102].mxu0 }
0x10c1   : > { %v4379_v38 = vadd.f32 %v5411_v26, %v4378_v25  ;;  %4406 = vadd.xlane.f32.xlu0 %v4397_v35  ;;  %v6377_v9 = vpop.f32.mrb[103].mxu0  ;;  %v6737_v25 = vpack.c.bf16 %v4500_v27, %v4498_v12  ;;  %v4646_v12 = vld [vmem:[#allocation5 + $0x148] sm:$0xff]  ;;  %v4663_v27 = vld [vmem:[#allocation5 + $0x1d0] sm:$0xff] }
0x10c2   : > { %v4505_v9 = vld [vmem:[#allocation2 + $0x198] sm:$0xff] }
0x10c3   : > { %v4398_v41 = vadd.f32 %v4379_v38, %v8804_v32  ;;  %v4503_v38 = vld [vmem:[#allocation2 + $0x188] sm:$0xff] }
0x10c4   : > { %v4383_v15 = vpop.f32.mrb[104].mxu0 }
0x10c5   : > { %v4384_v40 = vadd.f32 %v5411_v26, %v4383_v15  ;;  %4408 = vadd.xlane.f32.xlu1 %v4398_v41  ;;  %v6380_v4 = vpop.f32.mrb[105].mxu0  ;;  %v4502_v15 = vld [vmem:[#allocation2 + $0x180] sm:$0xff] }
0x10c7   : > { %v4399_v43 = vadd.f32 %v4384_v40, %v8812_v48  ;;  %v4488_v48 = vld [vmem:[#allocation2 + $0x110] sm:$0xff] }
0x10c8   : > { %v4388_v46 = vpop.f32.mrb[106].mxu0  ;;  %v6725_v51 = vpack.c.bf16 %v4488_v48, %v4486_v16  ;;  %v4504_v40 = vld [vmem:[#allocation2 + $0x190] sm:$0xff]  ;;  %v4515_v16 = vld [vmem:[#allocation2 + $0x1e8] sm:$0xff] }
0x10c9   : > { %v4389_v6 = vadd.f32 %v5411_v26, %v4388_v46  ;;  %4410 = vadd.xlane.f32.xlu0 %v4399_v43  ;;  %v6383_v42 = vpop.f32.mrb[107].mxu0  ;;  %v6741_v4 = vpack.c.bf16 %v4504_v40, %v4502_v15  ;;  %v4509_v46 = vld [vmem:[#allocation2 + $0x1b8] sm:$0xff]  ;;  %v6751_v48 = vpack.c.bf16 %v4517_v14, %v4515_v16  ;;  %v4665_v15 = vld [vmem:[#allocation5 + $0x1e0] sm:$0xff]  ;;  %v4666_v40 = vld [vmem:[#allocation5 + $0x1e8] sm:$0xff] }
0x10ca   : > { %6726 = vmatpush1.bf16.msra.mxu1 %v6725_v51  ;;  %v4506_v42 = vld [vmem:[#allocation2 + $0x1a0] sm:$0xff]  ;;  %v6753_v51 = vpack.c.bf16 %v4516_v54, %v4514_v3 }
0x10cb   : > { %v4400_v1 = vadd.f32 %v4389_v6, %v8820_v63  ;;  %v4492_v63 = vld [vmem:[#allocation2 + $0x130] sm:$0xff]  ;;  %6728 = vmatprep.subr.bf16.mxu1 %v6727_v47  ;;  %v4653_v47 = vld [vmem:[#allocation5 + $0x180] sm:$0xff] }
0x10cc   : > { %v4393_v55 = vpop.f32.mrb[108].mxu0  ;;  %v6729_v62 = vpack.c.bf16 %v4492_v63, %v4490_v11  ;;  %v4654_v11 = vld [vmem:[#allocation5 + $0x188] sm:$0xff]  ;;  %v4637_v63 = vld [vmem:[#allocation5 + $0x100] sm:$0xff] }
0x10cd   : > { %v4394_v52 = vadd.f32 %v5411_v26, %v4393_v55  ;;  %4412 = vadd.xlane.f32.xlu0 %v4400_v1  ;;  %v6386_v28 = vpop.f32.mrb[109].mxu0  ;;  %v4501_v26 = vld [vmem:[#allocation2 + $0x178] sm:$0xff]  ;;  %v5415_v54 = vld [vmem:[%s9554_s6 + $0x1] ss:$0 sm:$0xff] }
0x10ce   : > { %6730 = vmatpush1.bf16.msra.mxu1 %v6729_v62  ;;  %v6735_v29 = vpack.c.bf16 %v4501_v26, %v4499_v31  ;;  %v4513_v28 = vld [vmem:[#allocation2 + $0x1d8] sm:$0xff]  ;;  %v4655_v62 = vld [vmem:[#allocation5 + $0x190] sm:$0xff] }
0x10cf   : > { %v4401_v13 = vadd.f32 %v4394_v52, %v8828_v56  ;;  %v6731_v56 = vpack.c.bf16 %v4497_v53, %v4495_v58  ;;  %v4511_v52 = vld [vmem:[#allocation2 + $0x1c8] sm:$0xff]  ;;  %v6755_v58 = vpack.c.bf16 %v4654_v11, %v4653_v47 }
0x10d0   : > { %v4638_v53 = vld [vmem:[#allocation5 + $0x108] sm:$0xff] }
0x10d1   : > { %v4414_v32 = vsel %vm1058_vm3, %v4401_v13, 0.0  ;;  %6732 = vmatprep.subr.bf16.mxu1 %v6731_v56  ;;  %v4656_v56 = vld [vmem:[#allocation5 + $0x198] sm:$0xff]  ;;  %v6757_v7 = vpack.c.bf16 %v4638_v53, %v4637_v63  ;;  %6756 = vmatprep.subr.bf16.mxu0 %v6755_v58 }
0x10d2   : > { %4415 = vadd.xlane.f32.xlu1 %v4414_v32  ;;  %6734 = vmatpush1.bf16.msra.mxu1 %v6733_v49  ;;  %v4510_v32 = vld [vmem:[#allocation2 + $0x1c0] sm:$0xff]  ;;  %v6759_v22 = vpack.c.bf16 %v4656_v56, %v4655_v62  ;;  %v4639_v49 = vld [vmem:[#allocation5 + $0x110] sm:$0xff] }
0x10d3   : > { %6736 = vmatprep.subr.bf16.mxu1 %v6735_v29  ;;  %v6749_v30 = vpack.c.bf16 %v4512_v10, %v4510_v32  ;;  %6758 = vmatpush3.bf16.msra.mxu0 %v6757_v7  ;;  %v4645_v29 = vld [vmem:[#allocation5 + $0x140] sm:$0xff] }
0x10d4   : > { %6760 = vmatprep.subr.bf16.mxu0 %v6759_v22 }
0x10d6   : > { %6738 = vmatpush1.bf16.msra.mxu1 %v6737_v25  ;;  %v6773_v25 = vpack.c.bf16 %v4646_v12, %v4645_v29 }
0x114e   : > { %v4407_v59 = vpop.xlane.xlu0 %4406 }
0x114f   : > { %v4417_v8 = vmul.f32 0.0078125, %v4407_v59  ;;  %v4640_v59 = vld [vmem:[#allocation5 + $0x118] sm:$0xff] }
0x1151   : > { %v9394_v24 = vsub.f32 %v4397_v35, %v4417_v8  ;;  %v4657_v8 = vld [vmem:[#allocation5 + $0x1a0] sm:$0xff] }
0x1152   : > { %v4409_v45 = vpop.xlane.xlu1 %4408 }
0x1153   : > { %v4418_v21 = vmul.f32 0.0078125, %v4409_v45  ;;  %v4427_v60 = vmul.f32 %v9394_v24, %v9394_v24  ;;  %v4658_v45 = vld [vmem:[#allocation5 + $0x1a8] sm:$0xff] }
0x1155   : > { %v9398_v61 = vsub.f32 %v4398_v41, %v4418_v21  ;;  %4432 = vadd.xlane.f32.xlu0 %v4427_v60  ;;  %v6739_v41 = vpack.c.bf16 %v4505_v9, %v4503_v38  ;;  %v6761_v21 = vpack.c.bf16 %v4640_v59, %v4639_v49  ;;  %v6763_v60 = vpack.c.bf16 %v4658_v45, %v4657_v8  ;;  %v4647_v9 = vld [vmem:[#allocation5 + $0x150] sm:$0xff] }
0x1156   : > { %v4411_v36 = vpop.xlane.xlu0 %4410 }
0x1157   : > { %v4419_v23 = vmul.f32 0.0078125, %v4411_v36  ;;  %v4428_v2 = vmul.f32 %v9398_v61, %v9398_v61  ;;  %6740 = vmatprep.subr.bf16.mxu1 %v6739_v41  ;;  %v4641_v36 = vld [vmem:[#allocation5 + $0x120] sm:$0xff]  ;;  %6762 = vmatpush3.bf16.msra.mxu0 %v6761_v21  ;;  %v4648_v41 = vld [vmem:[#allocation5 + $0x158] sm:$0xff] }
0x1158   : > { %6742 = vmatpush1.bf16.msra.mxu1 %v6741_v4  ;;  %6764 = vmatprep.subr.bf16.mxu0 %v6763_v60  ;;  %v6777_v4 = vpack.c.bf16 %v4648_v41, %v4647_v9 }
0x1159   : > { %v9402_v17 = vsub.f32 %v4399_v43, %v4419_v23  ;;  %4434 = vadd.xlane.f32.xlu1 %v4428_v2  ;;  %v4507_v43 = vld [vmem:[#allocation2 + $0x1a8] sm:$0xff]  ;;  %v4659_v2 = vld [vmem:[#allocation5 + $0x1b0] sm:$0xff] }
0x115a   : > { %v4413_v57 = vpop.xlane.xlu0 %4412  ;;  %v6743_v6 = vpack.c.bf16 %v4509_v46, %v4507_v43  ;;  %v4642_v23 = vld [vmem:[#allocation5 + $0x128] sm:$0xff]  ;;  %v6779_v43 = vpack.c.bf16 %v4666_v40, %v4665_v15 }
0x115b   : > { %v4420_v37 = vmul.f32 0.0078125, %v4413_v57  ;;  %v4429_v20 = vmul.f32 %v9402_v17, %v9402_v17  ;;  %v4660_v57 = vld [vmem:[#allocation5 + $0x1b8] sm:$0xff] }
0x115c   : > { %6744 = vmatprep.subr.bf16.mxu1 %v6743_v6 }
0x115d   : > { %v9406_v5 = vsub.f32 %v4400_v1, %v4420_v37  ;;  %4436 = vadd.xlane.f32.xlu0 %v4429_v20  ;;  %v4508_v1 = vld [vmem:[#allocation2 + $0x1b0] sm:$0xff]  ;;  %v6765_v37 = vpack.c.bf16 %v4642_v23, %v4641_v36  ;;  %v6767_v20 = vpack.c.bf16 %v4660_v57, %v4659_v2  ;;  %v4650_v2 = vld [vmem:[#allocation5 + $0x168] sm:$0xff] }
0x115e   : > { %v6745_v55 = vpack.c.bf16 %v4508_v1, %v4506_v42 }
0x115f   : > { %v4416_v50 = vpop.xlane.xlu1 %4415  ;;  %v4430_v39 = vmul.f32 %v9406_v5, %v9406_v5  ;;  %6766 = vmatpush3.bf16.msra.mxu0 %v6765_v37  ;;  %v4667_v37 = vld [vmem:[#allocation5 + $0x1f0] sm:$0xff] }
0x1160   : > { %v4421_v18 = vmul.f32 0.0078125, %v4416_v50  ;;  %6746 = vmatpush1.bf16.msra.mxu1 %v6745_v55  ;;  %v4643_v50 = vld [vmem:[#allocation5 + $0x130] sm:$0xff]  ;;  %6768 = vmatprep.subr.bf16.mxu0 %v6767_v20  ;;  %v4668_v20 = vld [vmem:[#allocation5 + $0x1f8] sm:$0xff] }
0x1161   : > { %4438 = vadd.xlane.f32.xlu1 %v4430_v39  ;;  %v4644_v39 = vld [vmem:[#allocation5 + $0x138] sm:$0xff] }
0x1162   : > { %v9410_v44 = vsub.f32 %v4401_v13, %v4421_v18  ;;  %v6747_v13 = vpack.c.bf16 %v4513_v28, %v4511_v52  ;;  %v4661_v18 = vld [vmem:[#allocation5 + $0x1c0] sm:$0xff]  ;;  %v6769_v31 = vpack.c.bf16 %v4644_v39, %v4643_v50  ;;  %v6783_v50 = vpack.c.bf16 %v4668_v20, %v4667_v37  ;;  %v4651_v39 = vld [vmem:[#allocation5 + $0x170] sm:$0xff] }
0x1164   : > { %v4431_v34 = vmul.f32 %v9410_v44, %v9410_v44  ;;  %6748 = vmatprep.subr.bf16.mxu1 %v6747_v13  ;;  %6770 = vmatpush3.bf16.msra.mxu0 %v6769_v31 }
0x1165   : > { %6750 = vmatpush1.bf16.msra.mxu1 %v6749_v30 }
0x1166   : > { %v4440_v35 = vsel %vm1058_vm3, %v4431_v34, 0.0  ;;  %6752 = vmatprep.subr.bf16.mxu1 %v6751_v48  ;;  %v4662_v34 = vld [vmem:[#allocation5 + $0x1c8] sm:$0xff]  ;;  %v5414_v48 = vld [vmem:[%s9553_s5 + $0x1] ss:$0 sm:$0xff] }
0x1167   : > { %4441 = vadd.xlane.f32.xlu0 %v4440_v35  ;;  %v6771_v26 = vpack.c.bf16 %v4662_v34, %v4661_v18  ;;  %v4664_v35 = vld [vmem:[#allocation5 + $0x1d8] sm:$0xff] }
0x1168   : > { %v6775_v38 = vpack.c.bf16 %v4664_v35, %v4663_v27  ;;  %v4652_v18 = vld [vmem:[#allocation5 + $0x178] sm:$0xff] }
0x1169   : > { %6754 = vmatpush1.bf16.msra.mxu1 %v6753_v51  ;;  %6772 = vmatprep.subr.bf16.mxu0 %v6771_v26  ;;  %v6785_v34 = vpack.c.bf16 %v4652_v18, %v4651_v39 }
0x116a   : > { %6774 = vmatpush3.bf16.msra.mxu0 %v6773_v25 }
0x116b   : > { %6776 = vmatprep.subr.bf16.mxu0 %v6775_v38 }
0x116e   : > { %6778 = vmatpush3.bf16.msra.mxu0 %v6777_v4 }
0x116f   : > { %6780 = vmatprep.subr.bf16.mxu0 %v6779_v43 }
0x11e2   : > { %v4433_v46 = vpop.xlane.xlu0 %4432 }
0x11e3   : > { %v4443_v6 = vmul.f32 0.0078125, %v4433_v46 }
0x11e5   : > { %v4448_v42 = vadd.f32 1e-05, %v4443_v6 }
0x11e6   : > { %v4435_v1 = vpop.xlane.xlu1 %4434 }
0x11e7   : > { %7282 = vrsqrt.f32 %v4448_v42  ;;  %v4444_v55 = vmul.f32 0.0078125, %v4435_v1 }
0x11e9   : > { %v4449_v52 = vadd.f32 1e-05, %v4444_v55 }
0x11ea   : > { %v4437_v28 = vpop.xlane.xlu0 %4436 }
0x11eb   : > { %7284 = vrsqrt.f32 %v4449_v52  ;;  %v4445_v13 = vmul.f32 0.0078125, %v4437_v28 }
0x11ed   : > { %v4450_v32 = vadd.f32 1e-05, %v4445_v13 }
0x11ee   : > { %v4439_v10 = vpop.xlane.xlu1 %4438 }
0x11ef   : > { %7286 = vrsqrt.f32 %v4450_v32  ;;  %v4446_v30 = vmul.f32 0.0078125, %v4439_v10 }
0x11f1   : > { %v7283_v16 = vpop.eup %7282  ;;  %v4451_v14 = vadd.f32 1e-05, %v4446_v30 }
0x11f2   : > { %v4458_v3 = vmul.f32 %v7283_v16, %v9394_v24 }
0x11f3   : > { %7288 = vrsqrt.f32 %v4451_v14 }
0x11f4   : > { %v4442_v51 = vpop.xlane.xlu0 %4441  ;;  %v4469_v47 = vmul.f32 %v5414_v48, %v4458_v3 }
0x11f5   : > { %v7285_v11 = vpop.eup %7284  ;;  %v4447_v63 = vmul.f32 0.0078125, %v4442_v51 }
0x11f6   : > { %v9422_v58 = vadd.f32 %v5415_v54, %v4469_v47  ;;  %v4459_v53 = vmul.f32 %v7285_v11, %v9398_v61  ;;  %v5418_v11 = vld [vmem:[%s9558_s10 + $0x1] ss:$0 sm:$0xff] }
0x11f7   : > { %v4452_v62 = vadd.f32 1e-05, %v4447_v63 }
0x11f8   : > { %4596 = vmatmul.mubr.f32.vlgmr.msra.gmra.mrb[130].mxu1 %v9422_v58  ;;  %v4470_v56 = vmul.f32 %v5414_v48, %v4459_v53 }
0x11f9   : > { %v7287_v7 = vpop.eup %7286  ;;  %7290 = vrsqrt.f32 %v4452_v62  ;;  %4601 = vmatprep.mubr.f32.mxu1 %v7503_v0 }
0x11fa   : > { %v9427_v24 = vadd.f32 %v5415_v54, %v4470_v56  ;;  %v4460_v22 = vmul.f32 %v7287_v7, %v9402_v17 }
0x11fc   : > { %4602 = vmatmul.mubr.f32.gmra.mrb[132].mxu1 %v9427_v24  ;;  %v4471_v49 = vmul.f32 %v5414_v48, %v4460_v22 }
0x11fd   : > { %v7289_v59 = vpop.eup %7288  ;;  %4607 = vmatprep.mubr.f32.mxu1 %v7503_v0 }
0x11fe   : > { %v9432_v8 = vadd.f32 %v5415_v54, %v4471_v49  ;;  %v4461_v61 = vmul.f32 %v7289_v59, %v9406_v5  ;;  %v4649_v5 = vld [vmem:[#allocation5 + $0x160] sm:$0xff] }
0x11ff   : > { %v6781_v57 = vpack.c.bf16 %v4650_v2, %v4649_v5 }
0x1200   : > { %4608 = vmatmul.mubr.f32.gmra.mrb[134].mxu1 %v9432_v8  ;;  %v4472_v45 = vmul.f32 %v5414_v48, %v4461_v61 }
0x1201   : > { %4613 = vmatprep.mubr.f32.mxu1 %v7503_v0  ;;  %6782 = vmatpush3.bf16.msra.mxu0 %v6781_v57 }
0x1202   : > { %v9437_v21 = vadd.f32 %v5415_v54, %v4472_v45  ;;  %6784 = vmatprep.subr.bf16.mxu0 %v6783_v50 }
0x1203   : > { %v7291_v60 = vpop.eup %7290 }
0x1204   : > { %4614 = vmatmul.mubr.f32.gmra.mrb[136].mxu1 %v9437_v21  ;;  %v4462_v17 = vmul.f32 %v7291_v60, %v9410_v44  ;;  %v5416_v44 = vld [vmem:[%s9556_s8 + $0x2] sm:$0x3] }
0x1205   : > { %4619 = vmatprep.mubr.f32.mxu1 %v7503_v0  ;;  %6786 = vmatpush3.bf16.msra.mxu0 %v6785_v34  ;;  %v4524_v31 = vrot.slane %v5416_v44, %v7982_v33 }
0x1206   : > { %v4473_v36 = vmul.f32 %v5414_v48, %v4462_v17 }
0x1208   : > { %v9442_v23 = vadd.f32 %v5415_v54, %v4473_v36 }
0x120a   : > { %4620 = vmatmul.mubr.f32.gmra.mrb[138].mxu1 %v9442_v23 }
0x120b   : > { %4976 = vmatprep.mubr.f32.mxu1 %v7503_v0  ;;  %v4528_v0 = vrot.slane %v5416_v44, %v7963_v19 }
0x12cb   : > { %v4597_v26 = vpop.f32.mrb[130].mxu1 }
0x12cc   : > { %v4598_v29 = vadd.f32 %v4597_v26, %v4524_v31  ;;  %v4599_v12 = vpop.f32.mrb[131].mxu1 }
0x12cd   : > { %v4600_v27 = vadd.f32 %v4599_v12, %v4528_v0 }
0x12ce   : > { %v4626_v38 = vmax.f32 %v4598_v29, 0.0 }
0x12cf   : > { %v4627_v35 = vmax.f32 %v4600_v27, 0.0  ;;  %v4603_v25 = vpop.f32.mrb[132].mxu1 }
0x12d0   : > { %v4604_v9 = vadd.f32 %v4603_v25, %v4524_v31  ;;  %v4605_v41 = vpop.f32.mrb[133].mxu1 }
0x12d1   : > { %v4606_v15 = vadd.f32 %v4605_v41, %v4528_v0  ;;  %4741 = vmatprep.mubr.f32.mxu0 %v4627_v35 }
0x12d2   : > { %4742 = vmatmul.mubr.f32.vlgmr.msra.gmra.mrb[110].mxu0 %v4626_v38  ;;  %v4628_v43 = vmax.f32 %v4604_v9, 0.0 }
0x12d3   : > { %v4629_v40 = vmax.f32 %v4606_v15, 0.0  ;;  %v4609_v4 = vpop.f32.mrb[134].mxu1 }
0x12d4   : > { %v4610_v46 = vadd.f32 %v4609_v4, %v4524_v31  ;;  %v4611_v6 = vpop.f32.mrb[135].mxu1 }
0x12d5   : > { %v4612_v42 = vadd.f32 %v4611_v6, %v4528_v0  ;;  %4746 = vmatprep.mubr.f32.mxu0 %v4629_v40 }
0x12d6   : > { %4747 = vmatmul.mubr.f32.gmra.mrb[112].mxu0 %v4628_v43  ;;  %v4630_v52 = vmax.f32 %v4610_v46, 0.0 }
0x12d7   : > { %v4631_v1 = vmax.f32 %v4612_v42, 0.0  ;;  %v4615_v55 = vpop.f32.mrb[136].mxu1 }
0x12d8   : > { %v4616_v28 = vadd.f32 %v4615_v55, %v4524_v31  ;;  %v4617_v13 = vpop.f32.mrb[137].mxu1  ;;  %v4871_v55 = vld [vmem:[#allocation7 + $0x18] sm:$0xff] }
0x12d9   : > { %v4618_v32 = vadd.f32 %v4617_v13, %v4528_v0  ;;  %4751 = vmatprep.mubr.f32.mxu0 %v4631_v1  ;;  %v4869_v1 = vld [vmem:[#allocation7 + $0x8] sm:$0xff]  ;;  %v4870_v13 = vld [vmem:[#allocation7 + $0x10] sm:$0xff] }
0x12da   : > { %4752 = vmatmul.mubr.f32.gmra.mrb[114].mxu0 %v4630_v52  ;;  %v4632_v30 = vmax.f32 %v4616_v28, 0.0  ;;  %v6787_v52 = vpack.c.bf16 %v4871_v55, %v4869_v1  ;;  %v4868_v28 = vld [vmem:[#allocation7] sm:$0xff]  ;;  %v4987_v1 = vld [vmem:[#allocation8 + $0x10] sm:$0xff]  ;;  %v4988_v55 = vld [vmem:[#allocation8 + $0x18] sm:$0xff] }
0x12db   : > { %v4633_v10 = vmax.f32 %v4618_v32, 0.0  ;;  %v6789_v32 = vpack.c.bf16 %v4870_v13, %v4868_v28  ;;  %v5006_v28 = vld [vmem:[#allocation8 + $0xa8] sm:$0xff]  ;;  %v6825_v13 = vpack.c.bf16 %v4988_v55, %v4987_v1  ;;  %v5422_v1 = vld [vmem:[%s9560_s12 + $0x1] ss:$0 sm:$0xff] }
0x12dc   : > { %6788 = vmatprep.subr.bf16.mxu1 %v6787_v52  ;;  %v5005_v52 = vld [vmem:[#allocation8 + $0xa0] sm:$0xff] }
0x12dd   : > { %v4621_v16 = vpop.f32.mrb[138].mxu1  ;;  %4756 = vmatprep.mubr.f32.mxu0 %v4633_v10  ;;  %6790 = vmatpush1.bf16.msra.mxu1 %v6789_v32  ;;  %v4873_v10 = vld [vmem:[#allocation7 + $0x28] sm:$0xff]  ;;  %v6827_v32 = vpack.c.bf16 %v5006_v28, %v5005_v52 }
0x12de   : > { %v4622_v14 = vadd.f32 %v4621_v16, %v4524_v31  ;;  %v4623_v48 = vpop.f32.mrb[139].mxu1  ;;  %4757 = vmatmul.mubr.f32.gmra.mrb[116].mxu0 %v4632_v30  ;;  %v4875_v30 = vld [vmem:[#allocation7 + $0x38] sm:$0xff] }
0x12df   : > { %v4624_v3 = vadd.f32 %v4623_v48, %v4528_v0  ;;  %v6791_v16 = vpack.c.bf16 %v4875_v30, %v4873_v10  ;;  %v4874_v48 = vld [vmem:[#allocation7 + $0x30] sm:$0xff]  ;;  %v4989_v10 = vld [vmem:[#allocation8 + $0x20] sm:$0xff]  ;;  %v4990_v30 = vld [vmem:[#allocation8 + $0x28] sm:$0xff] }
0x12e0   : > { %v4634_v51 = vmax.f32 %v4622_v14, 0.0  ;;  %v4872_v14 = vld [vmem:[#allocation7 + $0x20] sm:$0xff] }
0x12e1   : > { %v4635_v54 = vmax.f32 %v4624_v3, 0.0  ;;  %v6793_v3 = vpack.c.bf16 %v4874_v48, %v4872_v14  ;;  %6792 = vmatprep.subr.bf16.mxu1 %v6791_v16  ;;  %v5007_v16 = vld [vmem:[#allocation8 + $0xb0] sm:$0xff]  ;;  %v5008_v14 = vld [vmem:[#allocation8 + $0xb8] sm:$0xff]  ;;  %v6829_v48 = vpack.c.bf16 %v4990_v30, %v4989_v10 }
0x12e3   : > { %4761 = vmatprep.mubr.f32.mxu0 %v4635_v54  ;;  %6794 = vmatpush1.bf16.msra.mxu1 %v6793_v3  ;;  %v4877_v54 = vld [vmem:[#allocation7 + $0x48] sm:$0xff]  ;;  %v6831_v3 = vpack.c.bf16 %v5008_v14, %v5007_v16 }
0x12e4   : > { %4762 = vmatmul.mubr.f32.gmra.mrb[118].mxu0 %v4634_v51  ;;  %v4879_v51 = vld [vmem:[#allocation7 + $0x58] sm:$0xff] }
0x13a5   : > { %v5749_v47 = vpop.f32.mrb[110].mxu0 }
0x13a6   : > { %v5750_v63 = vpop.f32.mrb[111].mxu0 }
0x13a7   : > { %v5751_v53 = vadd.f32 %v5750_v63, %v5749_v47  ;;  %v6795_v47 = vpack.c.bf16 %v4879_v51, %v4877_v54  ;;  %v4878_v63 = vld [vmem:[#allocation7 + $0x50] sm:$0xff]  ;;  %v4992_v51 = vld [vmem:[#allocation8 + $0x38] sm:$0xff] }
0x13a8   : > { %v4991_v54 = vld [vmem:[#allocation8 + $0x30] sm:$0xff] }
0x13a9   : > { %v4744_v62 = vadd.f32 %v5751_v53, %v5418_v11  ;;  %v5752_v56 = vpop.f32.mrb[112].mxu0  ;;  %6796 = vmatprep.subr.bf16.mxu1 %v6795_v47  ;;  %v5009_v47 = vld [vmem:[#allocation8 + $0xc0] sm:$0xff] }
0x13aa   : > { %v5753_v7 = vpop.f32.mrb[113].mxu0 }
0x13ab   : > { %v5754_v22 = vadd.f32 %v5753_v7, %v5752_v56  ;;  %v4767_v49 = vadd.f32 %v4744_v62, %v9422_v58  ;;  %v4881_v62 = vld [vmem:[#allocation7 + $0x68] sm:$0xff]  ;;  %v4883_v56 = vld [vmem:[#allocation7 + $0x78] sm:$0xff] }
0x13ac   : > { %v6799_v7 = vpack.c.bf16 %v4883_v56, %v4881_v62  ;;  %v4993_v62 = vld [vmem:[#allocation8 + $0x40] sm:$0xff]  ;;  %v4994_v56 = vld [vmem:[#allocation8 + $0x48] sm:$0xff] }
0x13ad   : > { %v4749_v59 = vadd.f32 %v5754_v22, %v5418_v11  ;;  %v5755_v61 = vpop.f32.mrb[114].mxu0  ;;  %4776 = vadd.xlane.f32.xlu1 %v4767_v49  ;;  %v4880_v22 = vld [vmem:[#allocation7 + $0x60] sm:$0xff] }
0x13ae   : > { %v5756_v45 = vpop.f32.mrb[115].mxu0 }
0x13af   : > { %v5757_v60 = vadd.f32 %v5756_v45, %v5755_v61  ;;  %v4768_v17 = vadd.f32 %v4749_v59, %v9427_v24  ;;  %v4885_v61 = vld [vmem:[#allocation7 + $0x88] sm:$0xff]  ;;  %v4887_v45 = vld [vmem:[#allocation7 + $0x98] sm:$0xff] }
0x13b1   : > { %v4754_v36 = vadd.f32 %v5757_v60, %v5418_v11  ;;  %v5758_v5 = vpop.f32.mrb[116].mxu0  ;;  %4778 = vadd.xlane.f32.xlu0 %v4768_v17  ;;  %v4884_v60 = vld [vmem:[#allocation7 + $0x80] sm:$0xff] }
0x13b2   : > { %v5759_v2 = vpop.f32.mrb[117].mxu0 }
0x13b3   : > { %v5760_v57 = vadd.f32 %v5759_v2, %v5758_v5  ;;  %v4769_v37 = vadd.f32 %v4754_v36, %v9432_v8  ;;  %v4886_v36 = vld [vmem:[#allocation7 + $0x90] sm:$0xff]  ;;  %v4889_v5 = vld [vmem:[#allocation7 + $0xa8] sm:$0xff]  ;;  %v4891_v2 = vld [vmem:[#allocation7 + $0xb8] sm:$0xff] }
0x13b5   : > { %v4759_v20 = vadd.f32 %v5760_v57, %v5418_v11  ;;  %4780 = vadd.xlane.f32.xlu1 %v4769_v37  ;;  %v6805_v57 = vpack.c.bf16 %v4886_v36, %v4884_v60  ;;  %v5013_v60 = vld [vmem:[#allocation8 + $0xe0] sm:$0xff] }
0x13b7   : > { %v5761_v50 = vpop.f32.mrb[118].mxu0  ;;  %v4770_v39 = vadd.f32 %v4759_v20, %v9437_v21  ;;  %v4888_v20 = vld [vmem:[#allocation7 + $0xa0] sm:$0xff] }
0x13b8   : > { %v5762_v58 = vpop.f32.mrb[119].mxu0 }
0x13b9   : > { %v5763_v18 = vadd.f32 %v5762_v58, %v5761_v50  ;;  %4782 = vadd.xlane.f32.xlu0 %v4770_v39  ;;  %v4890_v50 = vld [vmem:[#allocation7 + $0xb0] sm:$0xff]  ;;  %v4895_v58 = vld [vmem:[#allocation7 + $0xd8] sm:$0xff] }
0x13bb   : > { %v4764_v34 = vadd.f32 %v5763_v18, %v5418_v11  ;;  %v4876_v11 = vld [vmem:[#allocation7 + $0x40] sm:$0xff]  ;;  %v6809_v18 = vpack.c.bf16 %v4890_v50, %v4888_v20 }
0x13bc   : > { %v6797_v53 = vpack.c.bf16 %v4878_v63, %v4876_v11  ;;  %v5010_v11 = vld [vmem:[#allocation8 + $0xc8] sm:$0xff]  ;;  %v6833_v63 = vpack.c.bf16 %v4992_v51, %v4991_v54 }
0x13bd   : > { %v4771_v44 = vadd.f32 %v4764_v34, %v9442_v23 }
0x13be   : > { %6798 = vmatpush1.bf16.msra.mxu1 %v6797_v53  ;;  %v6835_v53 = vpack.c.bf16 %v5010_v11, %v5009_v47 }
0x13bf   : > { %v4784_v24 = vsel %vm1058_vm3, %v4771_v44, 0.0  ;;  %6800 = vmatprep.subr.bf16.mxu1 %v6799_v7  ;;  %v5011_v7 = vld [vmem:[#allocation8 + $0xd0] sm:$0xff] }
0x13c0   : > { %4785 = vadd.xlane.f32.xlu1 %v4784_v24  ;;  %v4894_v24 = vld [vmem:[#allocation7 + $0xd0] sm:$0xff] }
0x143a   : > { %v4777_v31 = vpop.xlane.xlu1 %4776 }
0x143b   : > { %v4787_v0 = vmul.f32 0.0078125, %v4777_v31  ;;  %v4897_v31 = vld [vmem:[#allocation7 + $0xe8] sm:$0xff] }
0x143d   : > { %v9460_v26 = vsub.f32 %v4767_v49, %v4787_v0  ;;  %v4882_v49 = vld [vmem:[#allocation7 + $0x70] sm:$0xff]  ;;  %v4899_v0 = vld [vmem:[#allocation7 + $0xf8] sm:$0xff] }
0x143e   : > { %v4779_v29 = vpop.xlane.xlu0 %4778  ;;  %v6801_v59 = vpack.c.bf16 %v4882_v49, %v4880_v22  ;;  %v5012_v22 = vld [vmem:[#allocation8 + $0xd8] sm:$0xff]  ;;  %v6837_v49 = vpack.c.bf16 %v4994_v56, %v4993_v62  ;;  %v4997_v62 = vld [vmem:[#allocation8 + $0x60] sm:$0xff]  ;;  %v4998_v56 = vld [vmem:[#allocation8 + $0x68] sm:$0xff] }
0x143f   : > { %v4788_v8 = vmul.f32 0.0078125, %v4779_v29  ;;  %v4797_v12 = vmul.f32 %v9460_v26, %v9460_v26 }
0x1440   : > { %6802 = vmatpush1.bf16.msra.mxu1 %v6801_v59  ;;  %v6839_v59 = vpack.c.bf16 %v5012_v22, %v5011_v7  ;;  %v5015_v7 = vld [vmem:[#allocation8 + $0xf0] sm:$0xff]  ;;  %v5016_v22 = vld [vmem:[#allocation8 + $0xf8] sm:$0xff] }
0x1441   : > { %v9464_v27 = vsub.f32 %v4768_v17, %v4788_v8  ;;  %4802 = vadd.xlane.f32.xlu0 %v4797_v12  ;;  %v6803_v17 = vpack.c.bf16 %v4887_v45, %v4885_v61  ;;  %v6815_v8 = vpack.c.bf16 %v4899_v0, %v4897_v31  ;;  %v4896_v12 = vld [vmem:[#allocation7 + $0xe0] sm:$0xff]  ;;  %v4995_v61 = vld [vmem:[#allocation8 + $0x50] sm:$0xff]  ;;  %v4996_v45 = vld [vmem:[#allocation8 + $0x58] sm:$0xff] }
0x1442   : > { %v4781_v21 = vpop.xlane.xlu1 %4780  ;;  %v6841_v36 = vpack.c.bf16 %v4996_v45, %v4995_v61  ;;  %v5000_v61 = vld [vmem:[#allocation8 + $0x78] sm:$0xff] }
0x1443   : > { %v4789_v35 = vmul.f32 0.0078125, %v4781_v21  ;;  %v4798_v23 = vmul.f32 %v9464_v27, %v9464_v27  ;;  %6804 = vmatprep.subr.bf16.mxu1 %v6803_v17  ;;  %v4898_v21 = vld [vmem:[#allocation7 + $0xf0] sm:$0xff]  ;;  %v5014_v17 = vld [vmem:[#allocation8 + $0xe8] sm:$0xff] }
0x1444   : > { %6806 = vmatpush1.bf16.msra.mxu1 %v6805_v57 }
0x1445   : > { %v9468_v25 = vsub.f32 %v4769_v37, %v4789_v35  ;;  %4804 = vadd.xlane.f32.xlu1 %v4798_v23  ;;  %v6807_v37 = vpack.c.bf16 %v4891_v2, %v4889_v5  ;;  %v6817_v35 = vpack.c.bf16 %v4898_v21, %v4896_v12  ;;  %v5001_v23 = vld [vmem:[#allocation8 + $0x80] sm:$0xff]  ;;  %v6843_v5 = vpack.c.bf16 %v5014_v17, %v5013_v60 }
0x1446   : > { %v4783_v38 = vpop.xlane.xlu0 %4782  ;;  %v4900_v60 = vld [vmem:[%s9613_s17] sm:$0x3]  ;;  %s7425_s17 = scalar_lea.vmem %s7424_s24, 32 }
0x1447   : > { %v4790_v9 = vmul.f32 0.0078125, %v4783_v38  ;;  %v4799_v41 = vmul.f32 %v9468_v25, %v9468_v25  ;;  %6808 = vmatprep.subr.bf16.mxu1 %v6807_v37  ;;  %v5002_v38 = vld [vmem:[#allocation8 + $0x88] sm:$0xff]  ;;  %v4905_v17 = vrot.slane %v4900_v60, %v7982_v33  ;;  %p7427_p11 = scmp.lt.s32.totalorder %s7425_s17, %s7419_s19 }
0x1448   : > { %6810 = vmatpush1.bf16.msra.mxu1 %v6809_v18 }
0x1449   : > { %v9472_v15 = vsub.f32 %v4770_v39, %v4790_v9  ;;  %4806 = vadd.xlane.f32.xlu0 %v4799_v41  ;;  %v4893_v39 = vld [vmem:[#allocation7 + $0xc8] sm:$0xff]  ;;  %v4985_v9 = vld [vmem:[#allocation8] sm:$0xff]  ;;  %v6819_v41 = vpack.c.bf16 %v5002_v38, %v5001_v23  ;;  %p7428_p5 = por %p7427_p11, %p7426_p8 }
0x144a   : > { %v6811_v34 = vpack.c.bf16 %v4895_v58, %v4893_v39 }
0x144b   : > { %v4800_v40 = vmul.f32 %v9472_v15, %v9472_v15  ;;  %6820 = vmatprep.subr.bf16.mxu0 %v6819_v41  ;;  %p7429_p0 = pnand %p7428_p5, %p7422_p7 }
0x144c   : > { %6812 = vmatprep.subr.bf16.mxu1 %v6811_v34 }
0x144d   : > { %4808 = vadd.xlane.f32.xlu1 %v4800_v40  ;;  %v4786_v4 = vpop.xlane.xlu1 %4785  ;;  %v4986_v40 = vld [vmem:[#allocation8 + $0x8] sm:$0xff] }
0x144e   : > { %v4791_v43 = vmul.f32 0.0078125, %v4786_v4  ;;  %v5003_v4 = vld [vmem:[#allocation8 + $0x90] sm:$0xff] }
0x1450   : > { %v9476_v46 = vsub.f32 %v4771_v44, %v4791_v43  ;;  %v4892_v44 = vld [vmem:[#allocation7 + $0xc0] sm:$0xff]  ;;  %v5004_v43 = vld [vmem:[#allocation8 + $0x98] sm:$0xff] }
0x1451   : > { %v6813_v29 = vpack.c.bf16 %v4894_v24, %v4892_v44 }
0x1452   : > { %v4801_v6 = vmul.f32 %v9476_v46, %v9476_v46 }
0x1453   : > { %6814 = vmatpush1.bf16.msra.mxu1 %v6813_v29 }
0x1454   : > { %v4810_v42 = vsel %vm1058_vm3, %v4801_v6, 0.0  ;;  %6816 = vmatprep.subr.bf16.mxu1 %v6815_v8  ;;  %v6821_v6 = vpack.c.bf16 %v4986_v40, %v4985_v9  ;;  %v5421_v40 = vld [vmem:[%s9559_s11 + $0x1] ss:$0 sm:$0xff] }
0x1455   : > { %4811 = vadd.xlane.f32.xlu0 %v4810_v42  ;;  %v6823_v42 = vpack.c.bf16 %v5004_v43, %v5003_v4 }
0x1456   : > { %6822 = vmatpush3.bf16.msra.mxu0 %v6821_v6 }
0x1457   : > { %6818 = vmatpush1.bf16.msra.mxu1 %v6817_v35  ;;  %6824 = vmatprep.subr.bf16.mxu0 %v6823_v42 }
0x145a   : > { %6826 = vmatpush3.bf16.msra.mxu0 %v6825_v13 }
0x145b   : > { %6828 = vmatprep.subr.bf16.mxu0 %v6827_v32 }
0x145e   : > { %6830 = vmatpush3.bf16.msra.mxu0 %v6829_v48 }
0x145f   : > { %6832 = vmatprep.subr.bf16.mxu0 %v6831_v3 }
0x1462   : > { %6834 = vmatpush3.bf16.msra.mxu0 %v6833_v63 }
0x1463   : > { %6836 = vmatprep.subr.bf16.mxu0 %v6835_v53 }
0x1466   : > { %6838 = vmatpush3.bf16.msra.mxu0 %v6837_v49  ;;  %v6847_v49 = vpack.c.bf16 %v5016_v22, %v5015_v7 }
0x1467   : > { %6840 = vmatprep.subr.bf16.mxu0 %v6839_v59  ;;  %v4999_v59 = vld [vmem:[#allocation8 + $0x70] sm:$0xff] }
0x1468   : > { %v6849_v45 = vpack.c.bf16 %v5000_v61, %v4999_v59 }
0x146a   : > { %6842 = vmatpush3.bf16.msra.mxu0 %v6841_v36  ;;  %v4909_v36 = vrot.slane %v4900_v60, %v7963_v19 }
0x146b   : > { %6844 = vmatprep.subr.bf16.mxu0 %v6843_v5 }
0x14ce   : > { %v4803_v2 = vpop.xlane.xlu0 %4802 }
0x14cf   : > { %v4813_v37 = vmul.f32 0.0078125, %v4803_v2 }
0x14d1   : > { %v4818_v58 = vadd.f32 1e-05, %v4813_v37 }
0x14d2   : > { %v4805_v57 = vpop.xlane.xlu1 %4804 }
0x14d3   : > { %v4814_v20 = vmul.f32 0.0078125, %v4805_v57 }
0x14d5   : > { %v4819_v50 = vadd.f32 1e-05, %v4814_v20 }
0x14d6   : > { %v4807_v39 = vpop.xlane.xlu0 %4806 }
0x14d7   : > { %v4815_v18 = vmul.f32 0.0078125, %v4807_v39  ;;  %7292 = vrsqrt.f32 %v4819_v50 }
0x14d8   : > { %7294 = vrsqrt.f32 %v4818_v58  ;;  %v5017_v58 = vld [vmem:[%s9615_s20] sm:$0x1] }
0x14d9   : > { %v4820_v34 = vadd.f32 1e-05, %v4815_v18 }
0x14da   : > { %v4809_v44 = vpop.xlane.xlu1 %4808 }
0x14db   : > { %v4816_v24 = vmul.f32 0.0078125, %v4809_v44  ;;  %7296 = vrsqrt.f32 %v4820_v34 }
0x14dd   : > { %v4821_v31 = vadd.f32 1e-05, %v4816_v24 }
0x14df   : > { %7298 = vrsqrt.f32 %v4821_v31 }
0x14e1   : > { %v7293_v8 = vpop.eup %7292 }
0x14e2   : > { %v4812_v0 = vpop.xlane.xlu0 %4811  ;;  %v7295_v12 = vpop.eup %7294  ;;  %v4829_v23 = vmul.f32 %v7293_v8, %v9464_v27 }
0x14e3   : > { %v4817_v29 = vmul.f32 0.0078125, %v4812_v0  ;;  %v4828_v9 = vmul.f32 %v7295_v12, %v9460_v26 }
0x14e4   : > { %v4840_v4 = vmul.f32 %v5421_v40, %v4829_v23 }
0x14e5   : > { %v4822_v21 = vadd.f32 1e-05, %v4817_v29  ;;  %v7297_v35 = vpop.eup %7296  ;;  %v4839_v6 = vmul.f32 %v5421_v40, %v4828_v9 }
0x14e6   : > { %v4830_v41 = vmul.f32 %v7297_v35, %v9468_v25  ;;  %v4851_v27 = vadd.f32 %v5422_v1, %v4840_v4 }
0x14e7   : > { %7300 = vrsqrt.f32 %v4822_v21  ;;  %v4850_v28 = vadd.f32 %v5422_v1, %v4839_v6 }
0x14e8   : > { %v4841_v42 = vmul.f32 %v5421_v40, %v4830_v41 }
0x14e9   : > { %v7299_v38 = vpop.eup %7298  ;;  %v4855_v13 = vadd.f32 %v4851_v27, %v4850_v28 }
0x14ea   : > { %v4831_v43 = vmul.f32 %v7299_v38, %v9472_v15  ;;  %v4852_v26 = vadd.f32 %v5422_v1, %v4841_v42 }
0x14ec   : > { %v4842_v55 = vmul.f32 %v5421_v40, %v4831_v43  ;;  %v4856_v30 = vadd.f32 %v4855_v13, %v4852_v26 }
0x14ee   : > { %v4853_v32 = vadd.f32 %v5422_v1, %v4842_v55 }
0x14f0   : > { %v4857_v14 = vadd.f32 %v4856_v30, %v4853_v32 }
0x14f1   : > { %v7301_v52 = vpop.eup %7300 }
0x14f2   : > { %v4832_v25 = vmul.f32 %v7301_v52, %v9476_v46  ;;  %v6845_v46 = vpack.c.bf16 %v4998_v56, %v4997_v62 }
0x14f4   : > { %v4843_v10 = vmul.f32 %v5421_v40, %v4832_v25  ;;  %6846 = vmatpush3.bf16.msra.mxu0 %v6845_v46 }
0x14f5   : > { %6848 = vmatprep.subr.bf16.mxu0 %v6847_v49 }
0x14f6   : > { %v4854_v16 = vadd.f32 %v5422_v1, %v4843_v10 }
0x14f8   : > { %v4858_v15 = vsel %vm1058_vm3, %v4854_v16, 0.0  ;;  %6850 = vmatpush3.bf16.msra.mxu0 %v6849_v45 }
0x14f9   : > { %v4859_v48 = vadd.f32 %v4858_v15, %v4857_v14 }
0x14fb   : > { %v4860_v3 = vrot.slane %v4859_v48, 4 }
0x14fd   : > { %v4861_v54 = vadd.f32 %v4860_v3, %v4859_v48 }
0x14ff   : > { %v4862_v51 = vrot.slane %v4861_v54, 2 }
0x1501   : > { %v4863_v47 = vadd.f32 %v4862_v51, %v4861_v54 }
0x1503   : > { %v4864_v11 = vrot.slane %v4863_v47, 1 }
0x1505   : > { %v4865_v63 = vadd.f32 %v4864_v11, %v4863_v47 }
0x1507   : > { %v4867_v53 = vmul.f32 0.030303031, %v4865_v63 }
0x1509   : > { %4977 = vmatmul.mubr.f32.vlgmr.msra.gmra.mrb[140].mxu1 %v4867_v53 }
0x15dc   : > { %v4978_v5 = vpop.f32.mrb[140].mxu1 }
0x15dd   : > { %v4979_v2 = vadd.f32 %v4978_v5, %v4905_v17  ;;  %v4980_v57 = vpop.f32.mrb[141].mxu1 }
0x15de   : > { %v4981_v37 = vadd.f32 %v4980_v57, %v4909_v36 }
0x15df   : > { %v4983_v50 = vmax.f32 %v4979_v2, 0.0 }
0x15e0   : > { %v4984_v20 = vmax.f32 %v4981_v37, 0.0 }
0x15e2   : > { %5082 = vmatprep.mubr.f32.mxu0 %v4984_v20 }
0x15e3   : > { %5083 = vmatmul.mubr.f32.vlgmr.msra.gmra.mrb[120].mxu0 %v4983_v50 }
0x16b6   : > { %v5796_v39 = vpop.f32.mrb[120].mxu0 }
0x16b7   : > { %v5797_v18 = vpop.f32.mrb[121].mxu0 }
0x16b8   : > { %v5798_v19 = vadd.f32 %v5797_v18, %v5796_v39 }
0x16ba   : > { %v5085_v33 = vadd.f32 %v5798_v19, %v5017_v58 }
0x16bc   : > { %5088 = vst [vmem:[%s599_s14] sm:$0x1] %v5085_v33 }
0x16bd   : > { %7432 = shalt.err (!%p7429_p0)
}
0x16be   : > { %s7433_s16 = scalar_lea.hbm %s9506_s29, 16  ;;  %s7437_s20 = scalar_lea.hbm %s9616_s21, 32 }
0x16bf   : > { %p7434_p6 = scmp.ne.s32.totalorder %s9506_s29, %s7433_s16  ;;  %p7438_p13 = scmp.lt.u32.totalorder %s9506_s29, %s9616_s21 }
0x16c0   : > { %p7439_p12 = scmp.lt.u32.totalorder %s7437_s20, %s7433_s16  ;;  %p7441_p2 = scmp.lt.u32.totalorder %s7433_s16, %s9506_s29 }
0x16c1   : > { %p7435_p9 = pnand %p7434_p6, %p9617_p3 }
0x16c2   : > { %p7440_p1 = por %p7439_p12, %p7438_p13 }
0x16c3   : > { %p7436_p10 = pneg %p7435_p9 }
0x16c4   : > { %p7442_p4 = por %p7441_p2, %p7440_p1 }
0x16c6   : > { %p7443_p7 = pnand %p7442_p4, %p7436_p10 }
0x16c8   : > { %7446 = shalt.err (!%p7443_p7)
}
0x16c9   : > { %6868 = dma.vmem_to_hbm [thread:$0]  (%p9617_p3), %s9508_s0, 16, %s9506_s29, %s5090_s30  }
0x16ca PF: > { %s9618_s23 = sld [smem:[#allocation17_spill]]  ;;  %s9619_s9 = sld [smem:[#allocation15_spill]] }
0x16cb   : > { %s9620_s19 = sld [smem:[#allocation21_spill]] }
0x16d0   : > { %p6895_p8 = scmp.ge.s32.totalorder %s9618_s23, 2  ;;  %s5114_s28 = sand.u32 1, %s9619_s9  }
0x16d1   : > { %p9621_p11 = scmp.ne.s32.totalorder %s9620_s19, 0  ;;  %s5115_s24 = scalar_lea.sflag [#allocation4], %s5114_s28 }
0x16d3   : > { %p6884_p5 = pnand %p6895_p8, %p9621_p11 }
0x16d5   : > { %7476 = dma.done.wait (!%p6884_p5), %s5115_s24, 16  }
0x16d6   : > { %7478 = vsyncadd (!%p6884_p5), %s5115_s24, 4294967280  ;;  %s9622_s27 = sld [smem:[#allocation18_spill]]  ;;  %s9623_s17 = sld [smem:[#allocation16_spill]] }
0x16d7   : > { %s9624_s26 = sld [smem:[#allocation19_spill]]  ;;  %s9625_s24 = smov %s7485_s25 }
0x16dc   : > { %p30_p0 = scmp.ge.s32.totalorder %s9622_s27, 4   ;;  %s9626_s25 = smov %s9623_s17 }
0x16de   :  { %32 = sbr.rel (!%p30_p0) target bundleno = 13 (0xd), region = 152 }
0x16e5   :  { %5119 = vsyncpa [#allocation3], 1 }
0x16e6   :  { %5121 = vsyncpa [#allocation3 + $0x1], 1 }
0x16e7   :  { %5122 = vsyncpa [#allocation6], 1 }
0x16e8   :  { %5123 = vsyncpa [#allocation9], 1 }
0x16e9   :  { %5124 = vsyncpa [#allocation4], 1 }
0x16ea   :  { %5126 = vsyncpa [#allocation4 + $0x1], 1 }

</bundles_post_ra>
